<compile_context>
chip_gen: v6e
topology: v6e:2x2x1
jax: 0.10.0
libtpu: 0.0.40
codegen_flags: <defaults>
</compile_context>

<pallas_src>
import functools

import jax
import jax.numpy as jnp
from jax.experimental import pallas as pl
from jax.experimental.pallas import tpu as pltpu


def _vmem_capacity_bytes():
    try:
        return int(pltpu.get_tpu_info().vmem_capacity_bytes)
    except Exception:
        return 64 * 1024 * 1024  # conservative fallback (v7x-sized)


_VMEM_CAP = _vmem_capacity_bytes()
# Explicit VMEM budget with headroom below physical capacity
# (96 MiB on the 128 MiB v5e/v6e, 48 MiB on the 64 MiB v7x).
_VMEM_LIMIT_BYTES = int(min(96 * 1024 * 1024, (_VMEM_CAP * 3) // 4))
# Per-block byte target: ~8 MiB on 128 MiB-VMEM chips, ~4 MiB on v7x. Bigger
# blocks amortize the ~0.35 us per-grid-step overhead on mem-bound kernels.
_BLOCK_TARGET_BYTES = int(max(2 << 20, _VMEM_CAP // 16))


def _pick_rows(total_rows, row_bytes, *, multiple=8):
    """Rows per block: ~_BLOCK_TARGET_BYTES blocks, multiple-of-8 sublanes, and
    >=2 grid steps where possible (so a 'parallel' axis feeds both v7x TCs)."""
    rows = max(multiple, min(total_rows, _BLOCK_TARGET_BYTES // max(int(row_bytes), 1)))
    if rows >= total_rows and total_rows > multiple:
        rows = -(-total_rows // 2)
    if rows < total_rows:
        rows = max(multiple, (rows // multiple) * multiple)
    return int(min(rows, total_rows))


# ----------------------------------------------------------------------------
# Kernel A: 1x1 conv (channel matmul) + folded BN + optional ReLU
# ----------------------------------------------------------------------------
def _matmul_bn_act_kernel(x_ref, w_ref, scale_ref, bias_ref, o_ref, *, apply_relu):
    # x_ref: (TM, Cin)  w_ref: (Cin, Cout)  scale/bias: (1, Cout)  o_ref: (TM, Cout)
    acc = jnp.dot(x_ref[...], w_ref[...], preferred_element_type=jnp.float32)
    acc = acc * scale_ref[...] + bias_ref[...]
    if apply_relu:
        acc = jnp.maximum(acc, 0.0)
    o_ref[...] = acc.astype(o_ref.dtype)


def _conv1x1_bn_act(x2d, w_ic, scale, bias, *, relu):
    M, Cin = x2d.shape
    Cout = w_ic.shape[1]
    # Size the row tile on input+output row bytes so the double-buffered output
    # block can't silently overshoot the VMEM budget when Cout > Cin.
    tm = _pick_rows(M, (Cin + Cout) * x2d.dtype.itemsize)
    grid = (pl.cdiv(M, tm),)
    kernel = functools.partial(_matmul_bn_act_kernel, apply_relu=relu)
    return pl.pallas_call(
        kernel,
        out_shape=jax.ShapeDtypeStruct((M, Cout), x2d.dtype),
        grid=grid,
        in_specs=[
            pl.BlockSpec((tm, Cin), lambda i: (i, 0)),
            pl.BlockSpec((Cin, Cout), lambda i: (0, 0)),
            pl.BlockSpec((1, Cout), lambda i: (0, 0)),
            pl.BlockSpec((1, Cout), lambda i: (0, 0)),
        ],
        out_specs=pl.BlockSpec((tm, Cout), lambda i: (i, 0)),
        compiler_params=pltpu.CompilerParams(
            dimension_semantics=("parallel",),
            vmem_limit_bytes=_VMEM_LIMIT_BYTES,
        ),
    )(x2d, w_ic, scale.reshape(1, Cout), bias.reshape(1, Cout))


# ----------------------------------------------------------------------------
# Kernel B: 3x3 conv (pad=1, stride=1) + folded BN + ReLU, in-kernel halo pad
# ----------------------------------------------------------------------------
def _conv3x3_bn_relu_kernel(x_ref, w_ref, scale_ref, bias_ref, o_ref, xp_ref):
    # x_ref: (1, H, W, Cin) unpadded NHWC   w_ref: (9, Cin, Cout)
    # scale/bias: (1, Cout)                 o_ref: (1, H, W, Cout)
    # xp_ref: VMEM scratch (H+2, W+2, Cin) used for the halo padding.
    _, H, W, Cin = x_ref.shape
    Cout = o_ref.shape[3]
    # In-kernel zero padding: no XLA pad pass over HBM. The whole scratch is
    # re-zeroed each step so this stays correct under megacore partitioning.
    xp_ref[...] = jnp.zeros(xp_ref.shape, xp_ref.dtype)
    xp_ref[1:H + 1, 1:W + 1, :] = x_ref[0]

    acc = jnp.zeros((H * W, Cout), jnp.float32)
    for kx in range(3):
        # One W-window load per kx (3 relayouts/image instead of 9); the ky
        # shift below is a cheap leading-dim slice of this value.
        xs = xp_ref[:, kx:kx + W, :]                       # (H+2, W, Cin)
        for ky in range(3):
            tap = xs[ky:ky + H].reshape(H * W, Cin)
            acc = acc + jnp.dot(tap, w_ref[ky * 3 + kx],
                                preferred_element_type=jnp.float32)
    acc = acc * scale_ref[...] + bias_ref[...]
    acc = jnp.maximum(acc, 0.0)
    o_ref[...] = acc.reshape(1, H, W, Cout).astype(o_ref.dtype)


def _conv3x3_bn_relu(x_nhwc, w9, scale, bias):
    B, H, W, Cin = x_nhwc.shape
    Cout = w9.shape[2]
    return pl.pallas_call(
        _conv3x3_bn_relu_kernel,
        out_shape=jax.ShapeDtypeStruct((B, H, W, Cout), x_nhwc.dtype),
        grid=(B,),
        in_specs=[
            pl.BlockSpec((1, H, W, Cin), lambda b: (b, 0, 0, 0)),
            pl.BlockSpec((9, Cin, Cout), lambda b: (0, 0, 0)),
            pl.BlockSpec((1, Cout), lambda b: (0, 0)),
            pl.BlockSpec((1, Cout), lambda b: (0, 0)),
        ],
        out_specs=pl.BlockSpec((1, H, W, Cout), lambda b: (b, 0, 0, 0)),
        scratch_shapes=[pltpu.VMEM((H + 2, W + 2, Cin), x_nhwc.dtype)],
        compiler_params=pltpu.CompilerParams(
            dimension_semantics=("parallel",),
            vmem_limit_bytes=_VMEM_LIMIT_BYTES,
        ),
    )(x_nhwc, w9, scale.reshape(1, Cout), bias.reshape(1, Cout))


# ----------------------------------------------------------------------------
# Kernel C: conv3 (1x1) + bn3 + SE gate + residual add + final ReLU (fused)
# ----------------------------------------------------------------------------
def _conv3_bn_se_residual_kernel(x_ref, res_ref, w3_ref, s3_ref, b3_ref,
                                 fc1_ref, fc2_ref, o_ref):
    # x_ref: (TB, HW, Cp)  res_ref/o_ref: (TB, HW, C2)
    # w3_ref: (Cp, C2)  s3/b3: (1, C2)  fc1_ref: (C2, Cr)  fc2_ref: (Cr, C2)
    TB, HW, Cp = x_ref.shape
    C2 = o_ref.shape[2]

    # conv3 (1x1) + folded bn3, f32 accumulation. h3 never leaves VMEM.
    h3f = jnp.dot(x_ref[...].reshape(TB * HW, Cp), w3_ref[...],
                  preferred_element_type=jnp.float32)
    h3f = h3f * s3_ref[...] + b3_ref[...]                     # (TB*HW, C2) f32

    # SE squeeze: per-(image, channel) spatial mean straight off the f32 result.
    y = jnp.mean(h3f.reshape(TB, HW, C2), axis=1)             # (TB, C2) f32
    h3 = h3f.astype(x_ref.dtype).reshape(TB, HW, C2)

    # Excitation: bias-free FC -> ReLU -> FC -> sigmoid (tiny, f32-only path).
    h = jnp.maximum(
        jnp.dot(y, fc1_ref[...].astype(jnp.float32),
                preferred_element_type=jnp.float32), 0.0)     # (TB, Cr)
    s = jax.nn.sigmoid(
        jnp.dot(h, fc2_ref[...].astype(jnp.float32),
                preferred_element_type=jnp.float32))          # (TB, C2)
    gate = s.astype(h3.dtype)[:, None, :]                     # (TB, 1, C2)

    # Channel rescale + residual add + final ReLU in the activation dtype.
    out = h3 * gate + res_ref[...].astype(h3.dtype)
    o_ref[...] = jnp.maximum(out, 0.0).astype(o_ref.dtype)


def _conv3_bn_se_residual_relu(h2_3d, res3d, w3_ic, s3, b3, fc1_t, fc2_t):
    B, HW, Cp = h2_3d.shape
    C2 = w3_ic.shape[1]
    Cr = fc1_t.shape[1]
    itemsize = h2_3d.dtype.itemsize
    # Per-image bytes moved through HBM for this kernel (h2 + residual + out).
    img_bytes = HW * (Cp + 2 * C2) * itemsize
    tb = max(1, min(B, _BLOCK_TARGET_BYTES // max(int(img_bytes), 1)))
    if tb >= B and B >= 2:
        tb = -(-B // 2)          # >=2 grid steps so both v7x TCs get work
    grid = (pl.cdiv(B, tb),)
    return pl.pallas_call(
        _conv3_bn_se_residual_kernel,
        out_shape=jax.ShapeDtypeStruct((B, HW, C2), h2_3d.dtype),
        grid=grid,
        in_specs=[
            pl.BlockSpec((tb, HW, Cp), lambda b: (b, 0, 0)),
            pl.BlockSpec((tb, HW, C2), lambda b: (b, 0, 0)),
            pl.BlockSpec((Cp, C2), lambda b: (0, 0)),
            pl.BlockSpec((1, C2), lambda b: (0, 0)),
            pl.BlockSpec((1, C2), lambda b: (0, 0)),
            pl.BlockSpec((C2, Cr), lambda b: (0, 0)),
            pl.BlockSpec((Cr, C2), lambda b: (0, 0)),
        ],
        out_specs=pl.BlockSpec((tb, HW, C2), lambda b: (b, 0, 0)),
        compiler_params=pltpu.CompilerParams(
            dimension_semantics=("parallel",),
            vmem_limit_bytes=_VMEM_LIMIT_BYTES,
        ),
    )(h2_3d, res3d, w3_ic, s3.reshape(1, C2), b3.reshape(1, C2), fc1_t, fc2_t)


# ----------------------------------------------------------------------------
# Full SEBottleneck forward (NCHW in / NCHW out, like the PyTorch module)
# ----------------------------------------------------------------------------
def se_bottleneck_forward(x_nchw, p):
    B, Cin, H, W = x_nchw.shape
    planes = p["w1_oi"].shape[0]
    C2 = p["w3_oi"].shape[0]
    assert Cin == C2, "downsample=None requires inplanes == planes * expansion"

    # TODO(synk): boundary layout conversions left to XLA; in an NHWC end-to-end
    # network these two transposes disappear.
    x_nhwc = jnp.transpose(x_nchw, (0, 2, 3, 1))              # (B, H, W, Cin)

    # conv1 (1x1) + bn1 + ReLU
    h1 = _conv1x1_bn_act(x_nhwc.reshape(B * H * W, Cin),
                         p["w1_oi"].T, p["s1"], p["b1"], relu=True)
    h1 = h1.reshape(B, H, W, planes)

    # conv2 (3x3, pad=1, stride=1) + bn2 + ReLU (halo padding done in-kernel)
    w9 = jnp.transpose(p["w2_oihw"], (2, 3, 1, 0)).reshape(9, planes, planes)
    h2 = _conv3x3_bn_relu(h1, w9, p["s2"], p["b2"])

    # conv3 (1x1) + bn3 + SE gate + residual + final ReLU, fused in one kernel
    res = x_nhwc.reshape(B, H * W, C2)
    out = _conv3_bn_se_residual_relu(h2.reshape(B, H * W, planes), res,
                                     p["w3_oi"].T, p["s3"], p["b3"],
                                     p["fc1_oi"].T, p["fc2_oi"].T)

    out = out.reshape(B, H, W, C2)
    return jnp.transpose(out, (0, 3, 1, 2))                   # NCHW


# ----------------------------------------------------------------------------
# Pure-JAX reference (same folded-BN eval semantics, same algebra)
# ----------------------------------------------------------------------------
def se_bottleneck_ref(x, p):
    def bn(z, scale, bias):
        return z * scale[None, :, None, None] + bias[None, :, None, None]

    out = jnp.einsum("bihw,oi->bohw", x, p["w1_oi"])
    out = jax.nn.relu(bn(out, p["s1"], p["b1"]))

    B, I, H, W = out.shape
    xp = jnp.pad(out, ((0, 0), (0, 0), (1, 1), (1, 1)))
    acc = jnp.zeros((B, p["w2_oihw"].shape[0], H, W), jnp.float32)
    for ky in range(3):
        for kx in range(3):
            acc = acc + jnp.einsum("bihw,oi->bohw",
                                   xp[:, :, ky:ky + H, kx:kx + W],
                                   p["w2_oihw"][:, :, ky, kx])
    out = jax.nn.relu(bn(acc, p["s2"], p["b2"]))

    out = jnp.einsum("bihw,oi->bohw", out, p["w3_oi"])
    out = bn(out, p["s3"], p["b3"])

    y = out.mean(axis=(2, 3))
    g = jax.nn.sigmoid(jnp.maximum(y @ p["fc1_oi"].T, 0.0) @ p["fc2_oi"].T)
    out = out * g[:, :, None, None]
    return jax.nn.relu(out + x)


def _fold_bn(gamma, beta, mean, var, eps=1e-5):
    scale = gamma / jnp.sqrt(var + eps)
    bias = beta - mean * scale
    return scale, bias


if __name__ == "__main__":
    # Small demo sizes; C2=128 keeps the wide (conv3+SE) stage lane-dense.
    B, inplanes, planes, H, W = 2, 128, 64, 16, 16
    expansion, reduction = 2, 16
    C2 = planes * expansion          # 128 == inplanes (so downsample=None is valid)
    Cr = C2 // reduction             # 8
    f32 = jnp.float32

    key = jax.random.PRNGKey(0)
    ks = jax.random.split(key, 20)

    x = jax.random.normal(ks[0], (B, inplanes, H, W), dtype=f32)

    def init_w(k, shape, fan_in):
        return jax.random.normal(k, shape, dtype=f32) * (1.0 / jnp.sqrt(fan_in))

    w1 = init_w(ks[1], (planes, inplanes), inplanes)          # conv1: (O, I)
    w2 = init_w(ks[2], (planes, planes, 3, 3), planes * 9)    # conv2: (O, I, kh, kw)
    w3 = init_w(ks[3], (C2, planes), planes)                  # conv3: (O, I)
    fc1 = init_w(ks[4], (Cr, C2), C2)                         # Linear(C2 -> Cr), (out, in)
    fc2 = init_w(ks[5], (C2, Cr), Cr)                         # Linear(Cr -> C2), (out, in)

    def bn_params(kg, kb, km, kv, c):
        gamma = 1.0 + 0.1 * jax.random.normal(kg, (c,), dtype=f32)
        beta = 0.1 * jax.random.normal(kb, (c,), dtype=f32)
        mean = 0.1 * jax.random.normal(km, (c,), dtype=f32)
        var = jnp.abs(jax.random.normal(kv, (c,), dtype=f32)) + 0.5
        return _fold_bn(gamma, beta, mean, var)

    s1, b1 = bn_params(ks[6], ks[7], ks[8], ks[9], planes)
    s2, b2 = bn_params(ks[10], ks[11], ks[12], ks[13], planes)
    s3, b3 = bn_params(ks[14], ks[15], ks[16], ks[17], C2)

    params = dict(w1_oi=w1, w2_oihw=w2, w3_oi=w3, fc1_oi=fc1, fc2_oi=fc2,
                  s1=s1, b1=b1, s2=s2, b2=b2, s3=s3, b3=b3)

    fwd = jax.jit(se_bottleneck_forward)
    out = jax.block_until_ready(fwd(x, params))
    ref = jax.block_until_ready(se_bottleneck_ref(x, params))

    assert out.shape == (B, C2, H, W)
    err = float(jnp.max(jnp.abs(out - ref)))
    scale = float(jnp.max(jnp.abs(ref)))
    # Tolerance covers MXU default-precision differences between the XLA
    # reference and the Pallas matmuls; real indexing/math bugs are O(scale).
    assert err <= 1e-3 + 2e-2 * scale, f"mismatch vs reference: err={err}, scale={scale}"

    print("KERNEL_OK")
</pallas_src>

<mosaic_0001>
module attributes {stable_mosaic.version = 11 : i64} {
  func.func @_matmul_bn_act_kernel(%arg0: i32, %arg1: memref<256x128xf32, #tpu.memory_space<vmem>>, %arg2: memref<128x64xf32, #tpu.memory_space<vmem>>, %arg3: memref<1x64xf32, #tpu.memory_space<vmem>>, %arg4: memref<1x64xf32, #tpu.memory_space<vmem>>, %arg5: memref<256x64xf32, #tpu.memory_space<vmem>>) attributes {dimension_semantics = [#tpu.dimension_semantics<parallel>], iteration_bounds = array<i64: 2>, scalar_prefetch = 0 : i64, scratch_operands = 0 : i64, tpu.core_type = #tpu.core_type<tc>, window_params = [{transform_indices = @transform_0, window_bounds = array<i64: 256, 128>}, {pipeline_mode = #tpu.pipeline_mode<synchronous>, transform_indices = @transform_1, window_bounds = array<i64: 128, 64>}, {pipeline_mode = #tpu.pipeline_mode<synchronous>, transform_indices = @transform_2, window_bounds = array<i64: 1, 64>}, {pipeline_mode = #tpu.pipeline_mode<synchronous>, transform_indices = @transform_3, window_bounds = array<i64: 1, 64>}, {transform_indices = @transform_4, window_bounds = array<i64: 256, 64>}]} {
    %c0 = arith.constant 0 : index
    %c0_0 = arith.constant 0 : index
    %0 = vector.load %arg1[%c0, %c0_0] : memref<256x128xf32, #tpu.memory_space<vmem>>, vector<256x128xf32>
    %c0_1 = arith.constant 0 : index
    %c0_2 = arith.constant 0 : index
    %1 = vector.load %arg2[%c0_1, %c0_2] : memref<128x64xf32, #tpu.memory_space<vmem>>, vector<128x64xf32>
    %cst = arith.constant dense<0.000000e+00> : vector<256x64xf32>
    %2 = tpu.matmul %0, %1, %cst {dimension_numbers = #tpu.dot_dimension_numbers<[1], [0], [0], [1], [0, 0, 1, 1], [], []>} : vector<256x128xf32>, vector<128x64xf32>, vector<256x64xf32> -> vector<256x64xf32>
    %c0_3 = arith.constant 0 : index
    %c0_4 = arith.constant 0 : index
    %3 = vector.load %arg3[%c0_3, %c0_4] : memref<1x64xf32, #tpu.memory_space<vmem>>, vector<1x64xf32>
    %4 = vector.broadcast %3 : vector<1x64xf32> to vector<256x64xf32>
    %5 = arith.mulf %2, %4 : vector<256x64xf32>
    %c0_5 = arith.constant 0 : index
    %c0_6 = arith.constant 0 : index
    %6 = vector.load %arg4[%c0_5, %c0_6] : memref<1x64xf32, #tpu.memory_space<vmem>>, vector<1x64xf32>
    %7 = vector.broadcast %6 : vector<1x64xf32> to vector<256x64xf32>
    %8 = arith.addf %5, %7 : vector<256x64xf32>
    %cst_7 = arith.constant 0.000000e+00 : f32
    %9 = vector.broadcast %cst_7 : f32 to vector<256x64xf32>
    %10 = arith.maximumf %8, %9 : vector<256x64xf32>
    %c0_8 = arith.constant 0 : index
    %c0_9 = arith.constant 0 : index
    %11 = vector.load %arg5[%c0_8, %c0_9] : memref<256x64xf32, #tpu.memory_space<vmem>>, vector<256x64xf32>
    tpu.vector_store %arg5[%c0_8, %c0_9], %10 {strides = array<i32>} : memref<256x64xf32, #tpu.memory_space<vmem>>, vector<256x64xf32>,
    return
  }
  func.func @transform_0(%arg0: i32) -> (i32, i32) {
    %c0_i32 = arith.constant 0 : i32
    %c0_i32_0 = arith.constant 0 : i32
    return %arg0, %c0_i32 : i32, i32
  }
  func.func @transform_1(%arg0: i32) -> (i32, i32) {
    %c0_i32 = arith.constant 0 : i32
    %c0_i32_0 = arith.constant 0 : i32
    %c0_i32_1 = arith.constant 0 : i32
    return %c0_i32, %c0_i32_0 : i32, i32
  }
  func.func @transform_2(%arg0: i32) -> (i32, i32) {
    %c0_i32 = arith.constant 0 : i32
    %c0_i32_0 = arith.constant 0 : i32
    %c0_i32_1 = arith.constant 0 : i32
    return %c0_i32, %c0_i32_0 : i32, i32
  }
  func.func @transform_3(%arg0: i32) -> (i32, i32) {
    %c0_i32 = arith.constant 0 : i32
    %c0_i32_0 = arith.constant 0 : i32
    %c0_i32_1 = arith.constant 0 : i32
    return %c0_i32, %c0_i32_0 : i32, i32
  }
  func.func @transform_4(%arg0: i32) -> (i32, i32) {
    %c0_i32 = arith.constant 0 : i32
    %c0_i32_0 = arith.constant 0 : i32
    return %arg0, %c0_i32 : i32, i32
  }
}

module attributes {stable_mosaic.version = 11 : i64} {
  func.func @_conv3x3_bn_relu_kernel(%arg0: i32, %arg1: memref<1x16x16x64xf32, #tpu.memory_space<vmem>>, %arg2: memref<9x64x64xf32, #tpu.memory_space<vmem>>, %arg3: memref<1x64xf32, #tpu.memory_space<vmem>>, %arg4: memref<1x64xf32, #tpu.memory_space<vmem>>, %arg5: memref<1x16x16x64xf32, #tpu.memory_space<vmem>>, %arg6: memref<18x18x64xf32, #tpu.memory_space<vmem>>) attributes {dimension_semantics = [#tpu.dimension_semantics<parallel>], iteration_bounds = array<i64: 2>, scalar_prefetch = 0 : i64, scratch_operands = 1 : i64, tpu.core_type = #tpu.core_type<tc>, window_params = [{transform_indices = @transform_0, window_bounds = array<i64: 1, 16, 16, 64>}, {pipeline_mode = #tpu.pipeline_mode<synchronous>, transform_indices = @transform_1, window_bounds = array<i64: 9, 64, 64>}, {pipeline_mode = #tpu.pipeline_mode<synchronous>, transform_indices = @transform_2, window_bounds = array<i64: 1, 64>}, {pipeline_mode = #tpu.pipeline_mode<synchronous>, transform_indices = @transform_3, window_bounds = array<i64: 1, 64>}, {transform_indices = @transform_4, window_bounds = array<i64: 1, 16, 16, 64>}]} {
    %cst = arith.constant 0.000000e+00 : f32
    %0 = vector.broadcast %cst : f32 to vector<18x18x64xf32>
    %c0 = arith.constant 0 : index
    %c0_0 = arith.constant 0 : index
    %c0_1 = arith.constant 0 : index
    %1 = vector.load %arg6[%c0, %c0_0, %c0_1] : memref<18x18x64xf32, #tpu.memory_space<vmem>>, vector<18x18x64xf32>
    tpu.vector_store %arg6[%c0, %c0_0, %c0_1], %0 {strides = array<i32>} : memref<18x18x64xf32, #tpu.memory_space<vmem>>, vector<18x18x64xf32>,
    %c0_2 = arith.constant 0 : index
    %c0_3 = arith.constant 0 : index
    %c0_4 = arith.constant 0 : index
    %c0_5 = arith.constant 0 : index
    %2 = vector.load %arg1[%c0_2, %c0_3, %c0_4, %c0_5] : memref<1x16x16x64xf32, #tpu.memory_space<vmem>>, vector<1x16x16x64xf32>
    %3 = vector.shape_cast %2 : vector<1x16x16x64xf32> to vector<16x16x64xf32>
    %c1 = arith.constant 1 : index
    %c1_6 = arith.constant 1 : index
    %c0_7 = arith.constant 0 : index
    %4 = vector.load %arg6[%c1, %c1_6, %c0_7] : memref<18x18x64xf32, #tpu.memory_space<vmem>>, vector<16x16x64xf32>
    tpu.vector_store %arg6[%c1, %c1_6, %c0_7], %3 {strides = array<i32>} : memref<18x18x64xf32, #tpu.memory_space<vmem>>, vector<16x16x64xf32>,
    %cst_8 = arith.constant 0.000000e+00 : f32
    %5 = vector.broadcast %cst_8 : f32 to vector<256x64xf32>
    %c0_9 = arith.constant 0 : index
    %c0_10 = arith.constant 0 : index
    %c0_11 = arith.constant 0 : index
    %6 = vector.load %arg6[%c0_9, %c0_10, %c0_11] : memref<18x18x64xf32, #tpu.memory_space<vmem>>, vector<18x16x64xf32>
    %7 = vector.extract_strided_slice %6 {offsets = [0, 0, 0], sizes = [16, 16, 64], strides = [1, 1, 1]} : vector<18x16x64xf32> to vector<16x16x64xf32>
    %8 = vector.shape_cast %7 : vector<16x16x64xf32> to vector<256x64xf32>
    %c0_12 = arith.constant 0 : index
    %c0_13 = arith.constant 0 : index
    %c0_14 = arith.constant 0 : index
    %9 = vector.load %arg2[%c0_12, %c0_13, %c0_14] : memref<9x64x64xf32, #tpu.memory_space<vmem>>, vector<1x64x64xf32>
    %10 = vector.shape_cast %9 : vector<1x64x64xf32> to vector<64x64xf32>
    %cst_15 = arith.constant dense<0.000000e+00> : vector<256x64xf32>
    %11 = tpu.matmul %8, %10, %cst_15 {dimension_numbers = #tpu.dot_dimension_numbers<[1], [0], [0], [1], [0, 0, 1, 1], [], []>} : vector<256x64xf32>, vector<64x64xf32>, vector<256x64xf32> -> vector<256x64xf32>
    %12 = arith.addf %5, %11 : vector<256x64xf32>
    %13 = vector.extract_strided_slice %6 {offsets = [1, 0, 0], sizes = [16, 16, 64], strides = [1, 1, 1]} : vector<18x16x64xf32> to vector<16x16x64xf32>
    %14 = vector.shape_cast %13 : vector<16x16x64xf32> to vector<256x64xf32>
    %c3 = arith.constant 3 : index
    %c0_16 = arith.constant 0 : index
    %c0_17 = arith.constant 0 : index
    %15 = vector.load %arg2[%c3, %c0_16, %c0_17] : memref<9x64x64xf32, #tpu.memory_space<vmem>>, vector<1x64x64xf32>
    %16 = vector.shape_cast %15 : vector<1x64x64xf32> to vector<64x64xf32>
    %cst_18 = arith.constant dense<0.000000e+00> : vector<256x64xf32>
    %17 = tpu.matmul %14, %16, %cst_18 {dimension_numbers = #tpu.dot_dimension_numbers<[1], [0], [0], [1], [0, 0, 1, 1], [], []>} : vector<256x64xf32>, vector<64x64xf32>, vector<256x64xf32> -> vector<256x64xf32>
    %18 = arith.addf %12, %17 : vector<256x64xf32>
    %19 = vector.extract_strided_slice %6 {offsets = [2, 0, 0], sizes = [16, 16, 64], strides = [1, 1, 1]} : vector<18x16x64xf32> to vector<16x16x64xf32>
    %20 = vector.shape_cast %19 : vector<16x16x64xf32> to vector<256x64xf32>
    %c6 = arith.constant 6 : index
    %c0_19 = arith.constant 0 : index
    %c0_20 = arith.constant 0 : index
    %21 = vector.load %arg2[%c6, %c0_19, %c0_20] : memref<9x64x64xf32, #tpu.memory_space<vmem>>, vector<1x64x64xf32>
    %22 = vector.shape_cast %21 : vector<1x64x64xf32> to vector<64x64xf32>
    %cst_21 = arith.constant dense<0.000000e+00> : vector<256x64xf32>
    %23 = tpu.matmul %20, %22, %cst_21 {dimension_numbers = #tpu.dot_dimension_numbers<[1], [0], [0], [1], [0, 0, 1, 1], [], []>} : vector<256x64xf32>, vector<64x64xf32>, vector<256x64xf32> -> vector<256x64xf32>
    %24 = arith.addf %18, %23 : vector<256x64xf32>
    %c0_22 = arith.constant 0 : index
    %c1_23 = arith.constant 1 : index
    %c0_24 = arith.constant 0 : index
    %25 = vector.load %arg6[%c0_22, %c1_23, %c0_24] : memref<18x18x64xf32, #tpu.memory_space<vmem>>, vector<18x16x64xf32>
    %26 = vector.extract_strided_slice %25 {offsets = [0, 0, 0], sizes = [16, 16, 64], strides = [1, 1, 1]} : vector<18x16x64xf32> to vector<16x16x64xf32>
    %27 = vector.shape_cast %26 : vector<16x16x64xf32> to vector<256x64xf32>
    %c1_25 = arith.constant 1 : index
    %c0_26 = arith.constant 0 : index
    %c0_27 = arith.constant 0 : index
    %28 = vector.load %arg2[%c1_25, %c0_26, %c0_27] : memref<9x64x64xf32, #tpu.memory_space<vmem>>, vector<1x64x64xf32>
    %29 = vector.shape_cast %28 : vector<1x64x64xf32> to vector<64x64xf32>
    %cst_28 = arith.constant dense<0.000000e+00> : vector<256x64xf32>
    %30 = tpu.matmul %27, %29, %cst_28 {dimension_numbers = #tpu.dot_dimension_numbers<[1], [0], [0], [1], [0, 0, 1, 1], [], []>} : vector<256x64xf32>, vector<64x64xf32>, vector<256x64xf32> -> vector<256x64xf32>
    %31 = arith.addf %24, %30 : vector<256x64xf32>
    %32 = vector.extract_strided_slice %25 {offsets = [1, 0, 0], sizes = [16, 16, 64], strides = [1, 1, 1]} : vector<18x16x64xf32> to vector<16x16x64xf32>
    %33 = vector.shape_cast %32 : vector<16x16x64xf32> to vector<256x64xf32>
    %c4 = arith.constant 4 : index
    %c0_29 = arith.constant 0 : index
    %c0_30 = arith.constant 0 : index
    %34 = vector.load %arg2[%c4, %c0_29, %c0_30] : memref<9x64x64xf32, #tpu.memory_space<vmem>>, vector<1x64x64xf32>
    %35 = vector.shape_cast %34 : vector<1x64x64xf32> to vector<64x64xf32>
    %cst_31 = arith.constant dense<0.000000e+00> : vector<256x64xf32>
    %36 = tpu.matmul %33, %35, %cst_31 {dimension_numbers = #tpu.dot_dimension_numbers<[1], [0], [0], [1], [0, 0, 1, 1], [], []>} : vector<256x64xf32>, vector<64x64xf32>, vector<256x64xf32> -> vector<256x64xf32>
    %37 = arith.addf %31, %36 : vector<256x64xf32>
    %38 = vector.extract_strided_slice %25 {offsets = [2, 0, 0], sizes = [16, 16, 64], strides = [1, 1, 1]} : vector<18x16x64xf32> to vector<16x16x64xf32>
    %39 = vector.shape_cast %38 : vector<16x16x64xf32> to vector<256x64xf32>
    %c7 = arith.constant 7 : index
    %c0_32 = arith.constant 0 : index
    %c0_33 = arith.constant 0 : index
    %40 = vector.load %arg2[%c7, %c0_32, %c0_33] : memref<9x64x64xf32, #tpu.memory_space<vmem>>, vector<1x64x64xf32>
    %41 = vector.shape_cast %40 : vector<1x64x64xf32> to vector<64x64xf32>
    %cst_34 = arith.constant dense<0.000000e+00> : vector<256x64xf32>
    %42 = tpu.matmul %39, %41, %cst_34 {dimension_numbers = #tpu.dot_dimension_numbers<[1], [0], [0], [1], [0, 0, 1, 1], [], []>} : vector<256x64xf32>, vector<64x64xf32>, vector<256x64xf32> -> vector<256x64xf32>
    %43 = arith.addf %37, %42 : vector<256x64xf32>
    %c0_35 = arith.constant 0 : index
    %c2 = arith.constant 2 : index
    %c0_36 = arith.constant 0 : index
    %44 = vector.load %arg6[%c0_35, %c2, %c0_36] : memref<18x18x64xf32, #tpu.memory_space<vmem>>, vector<18x16x64xf32>
    %45 = vector.extract_strided_slice %44 {offsets = [0, 0, 0], sizes = [16, 16, 64], strides = [1, 1, 1]} : vector<18x16x64xf32> to vector<16x16x64xf32>
    %46 = vector.shape_cast %45 : vector<16x16x64xf32> to vector<256x64xf32>
    %c2_37 = arith.constant 2 : index
    %c0_38 = arith.constant 0 : index
    %c0_39 = arith.constant 0 : index
    %47 = vector.load %arg2[%c2_37, %c0_38, %c0_39] : memref<9x64x64xf32, #tpu.memory_space<vmem>>, vector<1x64x64xf32>
    %48 = vector.shape_cast %47 : vector<1x64x64xf32> to vector<64x64xf32>
    %cst_40 = arith.constant dense<0.000000e+00> : vector<256x64xf32>
    %49 = tpu.matmul %46, %48, %cst_40 {dimension_numbers = #tpu.dot_dimension_numbers<[1], [0], [0], [1], [0, 0, 1, 1], [], []>} : vector<256x64xf32>, vector<64x64xf32>, vector<256x64xf32> -> vector<256x64xf32>
    %50 = arith.addf %43, %49 : vector<256x64xf32>
    %51 = vector.extract_strided_slice %44 {offsets = [1, 0, 0], sizes = [16, 16, 64], strides = [1, 1, 1]} : vector<18x16x64xf32> to vector<16x16x64xf32>
    %52 = vector.shape_cast %51 : vector<16x16x64xf32> to vector<256x64xf32>
    %c5 = arith.constant 5 : index
    %c0_41 = arith.constant 0 : index
    %c0_42 = arith.constant 0 : index
    %53 = vector.load %arg2[%c5, %c0_41, %c0_42] : memref<9x64x64xf32, #tpu.memory_space<vmem>>, vector<1x64x64xf32>
    %54 = vector.shape_cast %53 : vector<1x64x64xf32> to vector<64x64xf32>
    %cst_43 = arith.constant dense<0.000000e+00> : vector<256x64xf32>
    %55 = tpu.matmul %52, %54, %cst_43 {dimension_numbers = #tpu.dot_dimension_numbers<[1], [0], [0], [1], [0, 0, 1, 1], [], []>} : vector<256x64xf32>, vector<64x64xf32>, vector<256x64xf32> -> vector<256x64xf32>
    %56 = arith.addf %50, %55 : vector<256x64xf32>
    %57 = vector.extract_strided_slice %44 {offsets = [2, 0, 0], sizes = [16, 16, 64], strides = [1, 1, 1]} : vector<18x16x64xf32> to vector<16x16x64xf32>
    %58 = vector.shape_cast %57 : vector<16x16x64xf32> to vector<256x64xf32>
    %c8 = arith.constant 8 : index
    %c0_44 = arith.constant 0 : index
    %c0_45 = arith.constant 0 : index
    %59 = vector.load %arg2[%c8, %c0_44, %c0_45] : memref<9x64x64xf32, #tpu.memory_space<vmem>>, vector<1x64x64xf32>
    %60 = vector.shape_cast %59 : vector<1x64x64xf32> to vector<64x64xf32>
    %cst_46 = arith.constant dense<0.000000e+00> : vector<256x64xf32>
    %61 = tpu.matmul %58, %60, %cst_46 {dimension_numbers = #tpu.dot_dimension_numbers<[1], [0], [0], [1], [0, 0, 1, 1], [], []>} : vector<256x64xf32>, vector<64x64xf32>, vector<256x64xf32> -> vector<256x64xf32>
    %62 = arith.addf %56, %61 : vector<256x64xf32>
    %c0_47 = arith.constant 0 : index
    %c0_48 = arith.constant 0 : index
    %63 = vector.load %arg3[%c0_47, %c0_48] : memref<1x64xf32, #tpu.memory_space<vmem>>, vector<1x64xf32>
    %64 = vector.broadcast %63 : vector<1x64xf32> to vector<256x64xf32>
    %65 = arith.mulf %62, %64 : vector<256x64xf32>
    %c0_49 = arith.constant 0 : index
    %c0_50 = arith.constant 0 : index
    %66 = vector.load %arg4[%c0_49, %c0_50] : memref<1x64xf32, #tpu.memory_space<vmem>>, vector<1x64xf32>
    %67 = vector.broadcast %66 : vector<1x64xf32> to vector<256x64xf32>
    %68 = arith.addf %65, %67 : vector<256x64xf32>
    %cst_51 = arith.constant 0.000000e+00 : f32
    %69 = vector.broadcast %cst_51 : f32 to vector<256x64xf32>
    %70 = arith.maximumf %68, %69 : vector<256x64xf32>
    %71 = vector.shape_cast %70 : vector<256x64xf32> to vector<1x16x16x64xf32>
    %c0_52 = arith.constant 0 : index
    %c0_53 = arith.constant 0 : index
    %c0_54 = arith.constant 0 : index
    %c0_55 = arith.constant 0 : index
    %72 = vector.load %arg5[%c0_52, %c0_53, %c0_54, %c0_55] : memref<1x16x16x64xf32, #tpu.memory_space<vmem>>, vector<1x16x16x64xf32>
    tpu.vector_store %arg5[%c0_52, %c0_53, %c0_54, %c0_55], %71 {strides = array<i32>} : memref<1x16x16x64xf32, #tpu.memory_space<vmem>>, vector<1x16x16x64xf32>,
    return
  }
  func.func @transform_0(%arg0: i32) -> (i32, i32, i32, i32) {
    %c0_i32 = arith.constant 0 : i32
    %c0_i32_0 = arith.constant 0 : i32
    %c0_i32_1 = arith.constant 0 : i32
    %c0_i32_2 = arith.constant 0 : i32
    return %arg0, %c0_i32, %c0_i32_0, %c0_i32_1 : i32, i32, i32, i32
  }
  func.func @transform_1(%arg0: i32) -> (i32, i32, i32) {
    %c0_i32 = arith.constant 0 : i32
    %c0_i32_0 = arith.constant 0 : i32
    %c0_i32_1 = arith.constant 0 : i32
    %c0_i32_2 = arith.constant 0 : i32
    return %c0_i32, %c0_i32_0, %c0_i32_1 : i32, i32, i32
  }
  func.func @transform_2(%arg0: i32) -> (i32, i32) {
    %c0_i32 = arith.constant 0 : i32
    %c0_i32_0 = arith.constant 0 : i32
    %c0_i32_1 = arith.constant 0 : i32
    return %c0_i32, %c0_i32_0 : i32, i32
  }
  func.func @transform_3(%arg0: i32) -> (i32, i32) {
    %c0_i32 = arith.constant 0 : i32
    %c0_i32_0 = arith.constant 0 : i32
    %c0_i32_1 = arith.constant 0 : i32
    return %c0_i32, %c0_i32_0 : i32, i32
  }
  func.func @transform_4(%arg0: i32) -> (i32, i32, i32, i32) {
    %c0_i32 = arith.constant 0 : i32
    %c0_i32_0 = arith.constant 0 : i32
    %c0_i32_1 = arith.constant 0 : i32
    %c0_i32_2 = arith.constant 0 : i32
    return %arg0, %c0_i32, %c0_i32_0, %c0_i32_1 : i32, i32, i32, i32
  }
}

module attributes {stable_mosaic.version = 11 : i64} {
  func.func @_conv3_bn_se_residual_kernel(%arg0: i32, %arg1: memref<1x256x64xf32, #tpu.memory_space<vmem>>, %arg2: memref<1x256x128xf32, #tpu.memory_space<vmem>>, %arg3: memref<64x128xf32, #tpu.memory_space<vmem>>, %arg4: memref<1x128xf32, #tpu.memory_space<vmem>>, %arg5: memref<1x128xf32, #tpu.memory_space<vmem>>, %arg6: memref<128x8xf32, #tpu.memory_space<vmem>>, %arg7: memref<8x128xf32, #tpu.memory_space<vmem>>, %arg8: memref<1x256x128xf32, #tpu.memory_space<vmem>>) attributes {dimension_semantics = [#tpu.dimension_semantics<parallel>], iteration_bounds = array<i64: 2>, scalar_prefetch = 0 : i64, scratch_operands = 0 : i64, tpu.core_type = #tpu.core_type<tc>, window_params = [{transform_indices = @transform_0, window_bounds = array<i64: 1, 256, 64>}, {transform_indices = @transform_1, window_bounds = array<i64: 1, 256, 128>}, {pipeline_mode = #tpu.pipeline_mode<synchronous>, transform_indices = @transform_2, window_bounds = array<i64: 64, 128>}, {pipeline_mode = #tpu.pipeline_mode<synchronous>, transform_indices = @transform_3, window_bounds = array<i64: 1, 128>}, {pipeline_mode = #tpu.pipeline_mode<synchronous>, transform_indices = @transform_4, window_bounds = array<i64: 1, 128>}, {pipeline_mode = #tpu.pipeline_mode<synchronous>, transform_indices = @transform_5, window_bounds = array<i64: 128, 8>}, {pipeline_mode = #tpu.pipeline_mode<synchronous>, transform_indices = @transform_6, window_bounds = array<i64: 8, 128>}, {transform_indices = @transform_7, window_bounds = array<i64: 1, 256, 128>}]} {
    %c0 = arith.constant 0 : index
    %c0_0 = arith.constant 0 : index
    %c0_1 = arith.constant 0 : index
    %0 = vector.load %arg1[%c0, %c0_0, %c0_1] : memref<1x256x64xf32, #tpu.memory_space<vmem>>, vector<1x256x64xf32>
    %1 = vector.shape_cast %0 : vector<1x256x64xf32> to vector<256x64xf32>
    %c0_2 = arith.constant 0 : index
    %c0_3 = arith.constant 0 : index
    %2 = vector.load %arg3[%c0_2, %c0_3] : memref<64x128xf32, #tpu.memory_space<vmem>>, vector<64x128xf32>
    %cst = arith.constant dense<0.000000e+00> : vector<256x128xf32>
    %3 = tpu.matmul %1, %2, %cst {dimension_numbers = #tpu.dot_dimension_numbers<[1], [0], [0], [1], [0, 0, 1, 1], [], []>} : vector<256x64xf32>, vector<64x128xf32>, vector<256x128xf32> -> vector<256x128xf32>
    %c0_4 = arith.constant 0 : index
    %c0_5 = arith.constant 0 : index
    %4 = vector.load %arg4[%c0_4, %c0_5] : memref<1x128xf32, #tpu.memory_space<vmem>>, vector<1x128xf32>
    %5 = vector.broadcast %4 : vector<1x128xf32> to vector<256x128xf32>
    %6 = arith.mulf %3, %5 : vector<256x128xf32>
    %c0_6 = arith.constant 0 : index
    %c0_7 = arith.constant 0 : index
    %7 = vector.load %arg5[%c0_6, %c0_7] : memref<1x128xf32, #tpu.memory_space<vmem>>, vector<1x128xf32>
    %8 = vector.broadcast %7 : vector<1x128xf32> to vector<256x128xf32>
    %9 = arith.addf %6, %8 : vector<256x128xf32>
    %10 = vector.shape_cast %9 : vector<256x128xf32> to vector<1x256x128xf32>
    %cst_8 = arith.constant dense<0.000000e+00> : vector<1x128xf32>
    %11 = vector.multi_reduction <add>, %10, %cst_8 [1] : vector<1x256x128xf32> to vector<1x128xf32>
    %cst_9 = arith.constant 2.560000e+02 : f32
    %12 = vector.broadcast %cst_9 : f32 to vector<1x128xf32>
    %13 = arith.divf %11, %12 : vector<1x128xf32>
    %14 = vector.shape_cast %9 : vector<256x128xf32> to vector<1x256x128xf32>
    %c0_10 = arith.constant 0 : index
    %c0_11 = arith.constant 0 : index
    %15 = vector.load %arg6[%c0_10, %c0_11] : memref<128x8xf32, #tpu.memory_space<vmem>>, vector<128x8xf32>
    %cst_12 = arith.constant dense<0.000000e+00> : vector<1x8xf32>
    %16 = tpu.matmul %13, %15, %cst_12 {dimension_numbers = #tpu.dot_dimension_numbers<[1], [0], [0], [1], [0, 0, 1, 1], [], []>} : vector<1x128xf32>, vector<128x8xf32>, vector<1x8xf32> -> vector<1x8xf32>
    %cst_13 = arith.constant 0.000000e+00 : f32
    %17 = vector.broadcast %cst_13 : f32 to vector<1x8xf32>
    %18 = arith.maximumf %16, %17 : vector<1x8xf32>
    %c0_14 = arith.constant 0 : index
    %c0_15 = arith.constant 0 : index
    %19 = vector.load %arg7[%c0_14, %c0_15] : memref<8x128xf32, #tpu.memory_space<vmem>>, vector<8x128xf32>
    %cst_16 = arith.constant dense<0.000000e+00> : vector<1x128xf32>
    %20 = tpu.matmul %18, %19, %cst_16 {dimension_numbers = #tpu.dot_dimension_numbers<[1], [0], [0], [1], [0, 0, 1, 1], [], []>} : vector<1x8xf32>, vector<8x128xf32>, vector<1x128xf32> -> vector<1x128xf32>
    %21 = arith.negf %20 : vector<1x128xf32>
    %22 = math.exp %21 : vector<1x128xf32>
    %cst_17 = arith.constant 1.000000e+00 : f32
    %23 = vector.broadcast %cst_17 : f32 to vector<1x128xf32>
    %24 = arith.addf %23, %22 : vector<1x128xf32>
    %25 = arith.divf %23, %24 : vector<1x128xf32>
    %26 = vector.shape_cast %25 : vector<1x128xf32> to vector<1x1x128xf32>
    %27 = vector.broadcast %26 : vector<1x1x128xf32> to vector<1x256x128xf32>
    %28 = arith.mulf %14, %27 : vector<1x256x128xf32>
    %c0_18 = arith.constant 0 : index
    %c0_19 = arith.constant 0 : index
    %c0_20 = arith.constant 0 : index
    %29 = vector.load %arg2[%c0_18, %c0_19, %c0_20] : memref<1x256x128xf32, #tpu.memory_space<vmem>>, vector<1x256x128xf32>
    %30 = arith.addf %28, %29 : vector<1x256x128xf32>
    %cst_21 = arith.constant 0.000000e+00 : f32
    %31 = vector.broadcast %cst_21 : f32 to vector<1x256x128xf32>
    %32 = arith.maximumf %30, %31 : vector<1x256x128xf32>
    %c0_22 = arith.constant 0 : index
    %c0_23 = arith.constant 0 : index
    %c0_24 = arith.constant 0 : index
    %33 = vector.load %arg8[%c0_22, %c0_23, %c0_24] : memref<1x256x128xf32, #tpu.memory_space<vmem>>, vector<1x256x128xf32>
    tpu.vector_store %arg8[%c0_22, %c0_23, %c0_24], %32 {strides = array<i32>} : memref<1x256x128xf32, #tpu.memory_space<vmem>>, vector<1x256x128xf32>,
    return
  }
  func.func @transform_0(%arg0: i32) -> (i32, i32, i32) {
    %c0_i32 = arith.constant 0 : i32
    %c0_i32_0 = arith.constant 0 : i32
    %c0_i32_1 = arith.constant 0 : i32
    return %arg0, %c0_i32, %c0_i32_0 : i32, i32, i32
  }
  func.func @transform_1(%arg0: i32) -> (i32, i32, i32) {
    %c0_i32 = arith.constant 0 : i32
    %c0_i32_0 = arith.constant 0 : i32
    %c0_i32_1 = arith.constant 0 : i32
    return %arg0, %c0_i32, %c0_i32_0 : i32, i32, i32
  }
  func.func @transform_2(%arg0: i32) -> (i32, i32) {
    %c0_i32 = arith.constant 0 : i32
    %c0_i32_0 = arith.constant 0 : i32
    %c0_i32_1 = arith.constant 0 : i32
    return %c0_i32, %c0_i32_0 : i32, i32
  }
  func.func @transform_3(%arg0: i32) -> (i32, i32) {
    %c0_i32 = arith.constant 0 : i32
    %c0_i32_0 = arith.constant 0 : i32
    %c0_i32_1 = arith.constant 0 : i32
    return %c0_i32, %c0_i32_0 : i32, i32
  }
  func.func @transform_4(%arg0: i32) -> (i32, i32) {
    %c0_i32 = arith.constant 0 : i32
    %c0_i32_0 = arith.constant 0 : i32
    %c0_i32_1 = arith.constant 0 : i32
    return %c0_i32, %c0_i32_0 : i32, i32
  }
  func.func @transform_5(%arg0: i32) -> (i32, i32) {
    %c0_i32 = arith.constant 0 : i32
    %c0_i32_0 = arith.constant 0 : i32
    %c0_i32_1 = arith.constant 0 : i32
    return %c0_i32, %c0_i32_0 : i32, i32
  }
  func.func @transform_6(%arg0: i32) -> (i32, i32) {
    %c0_i32 = arith.constant 0 : i32
    %c0_i32_0 = arith.constant 0 : i32
    %c0_i32_1 = arith.constant 0 : i32
    return %c0_i32, %c0_i32_0 : i32, i32
  }
  func.func @transform_7(%arg0: i32) -> (i32, i32, i32) {
    %c0_i32 = arith.constant 0 : i32
    %c0_i32_0 = arith.constant 0 : i32
    %c0_i32_1 = arith.constant 0 : i32
    return %arg0, %c0_i32, %c0_i32_0 : i32, i32, i32
  }
}

</mosaic_0001>

<bundles_post_ra>
// kernel: se_bottleneck_forward.3
= control target key start
LH: loop header
LB: loop body
LE: loop exit
PB: predicated region body
PF: predicated region fallthrough
CT: control target
= control target key end

     0   :  { %9 = vsyncpa [#allocation3], 0  ;;  %s1334_s0 = inlined_call_operand.hbm [shape: f32[512,128], index: 0, kind: input, shape index: {}]   ;;  %s1335_s1 = inlined_call_operand.vmem [shape: f32[128,64], index: 1, kind: input, shape index: {}]   ;;  %s1336_s2 = inlined_call_operand.vmem [shape: f32[1,64], index: 2, kind: input, shape index: {}]   ;;  %s1337_s3 = inlined_call_operand.vmem [shape: f32[1,64], index: 3, kind: input, shape index: {}]   ;;  %s1338_s4 = inlined_call_operand.vmem [shape: f32[512,64], index: 4, kind: output, shape index: {}]  }
   0x1   :  { %11 = vsyncpa [#allocation3 + $0x1], 0  ;;  %s1012_s15 = smov 0   ;;  %s1014_s16 = smov 0  }
   0x2   :  { %s1016_s17 = smov 0   ;;  %s1018_s18 = smov 0  }
   0x3 LB: > { %s703_s19 = sadd.s32 4294967295, %s982_s18   ;;  %s1032_s20 = sadd.s32 1, %s982_s18   ;;  %s982_s18 = sphi %s1018_s18, %s1347_s18   ;;  %s978_s17 = sphi %s1016_s17, %s1346_s17   ;;  %s974_s16 = sphi %s1014_s16, %s1345_s16   ;;  %s970_s15 = sphi %s1012_s15, %s1344_s15  }
   0x4   : > { %s21_s21 = ssub.s32 %s982_s18, %s1032_s20  ;;  %s24_s22 = sadd.s32 1, %s978_s17 }
   0x5   : > { %p22_p0 = scmp.eq.s32.totalorder %s21_s21, 0  ;;  %p31_p1 = scmp.ne.s32.totalorder %s978_s17, %s974_s16 }
   0x6   : > { %p32_p2 = scmp.eq.s32.totalorder %s982_s18, 0  ;;  %p37_p3 = scmp.ne.s32.totalorder %s974_s16, %s970_s15 }
   0x7   : > { %s1042_s23 = scalar_select %p22_p0, %s978_s17, %s24_s22  }
   0x8   : > { %p33_p4 = por %p32_p2, %p31_p1  ;;  %p38_p5 = scmp.eq.s32.totalorder %s703_s19, 0 }
   0x9   : > { %p885_p6 = scmp.lt.s32.totalorder %s982_s18, 2  ;;  %s159_s25 = sand.u32 1, %s978_s17  }
   0xa   : > { %p1047_p7 = por %p38_p5, %p37_p3  ;;  %s707_s26 = sshll.u32 %s159_s25, 8 }
   0xb   : > { %s718_s27 = sshll.u32 %s982_s18, 12  ;;  %s163_s5 = scalar_lea.vmem [#allocation2], %s707_s26 }
   0xc   : > { %s1340_s24 = scalar_select %p1047_p7, 1, 0 }
   0xd   : > { %s1056_s30 = scalar_lea.hbm %s1334_s0, %s718_s27  ;;  %s170_s6 = sshll.u32 %s163_s5, 4  ;;  %s1058_s6 = int_to_ptr.vmem [resolvable:$true] %s170_s6 }
   0xe   : > { %p1060_p8 = pnand %p885_p6, %p33_p4  ;;  %s1065_s8 = scalar_lea.sflag [#allocation3], %s159_s25 }
   0xf   : > { %s920_s9 = scalar_lea.hbm %s1056_s30, 4096  ;;  %s925_s12 = scalar_lea.hbm %s1334_s0, 8192 }
  0x10   : > { %p921_p10 = scmp.ne.s32.totalorder %s1056_s30, %s920_s9  ;;  %p922_p11 = pneg %p1060_p8 }
  0x11   : > { %p926_p0 = scmp.lt.s32.totalorder %s1056_s30, %s1334_s0  ;;  %p927_p1 = scmp.lt.s32.totalorder %s925_s12, %s920_s9 }
  0x12   : > { %p923_p12 = pnand %p922_p11, %p921_p10 }
  0x13   : > { %p928_p2 = por %p927_p1, %p926_p0 }
  0x14   : > { %p924_p13 = pneg %p923_p12 }
  0x16   : > { %p929_p3 = pnand %p928_p2, %p924_p13 }
  0x18   : > { %932 = shalt.err (!%p929_p3)
}
  0x19   : > { %s933_s15 = scalar_lea.vmem %s1058_s6, 4096  ;;  %s984_s21 = smov [#allocation2]  }
  0x1a   : > { %p934_p4 = scmp.ne.s32.totalorder %s1058_s6, %s933_s15  ;;  %s938_s22 = sshll.u32 %s984_s21, 4  ;;  %s939_s22 = int_to_ptr.vmem [resolvable:$false] %s938_s22 }
  0x1b   : > { %s940_s25 = scalar_lea.vmem %s939_s22, 8192  ;;  %p941_p10 = scmp.lt.s32.totalorder %s1058_s6, %s939_s22 }
  0x1c   : > { %p936_p5 = pnand %p934_p4, %p922_p11  ;;  %p942_p12 = scmp.lt.s32.totalorder %s940_s25, %s933_s15 }
  0x1e   : > { %p937_p6 = pneg %p936_p5  ;;  %p943_p9 = por %p942_p12, %p941_p10 }
  0x20   : > { %p944_p7 = pnand %p943_p9, %p937_p6 }
  0x22   : > { %947 = shalt.err (!%p944_p7)
}
  0x23   : > { %s985_s26 = smov 128   ;;  %s986_s27 = smov 8  }
  0x24   : > { %884 = dma.hbm_to_vmem [thread:$0]  (!%p1060_p8), %s1056_s30, 4096, %s1058_s6, %s1065_s8, %s985_s26, %s985_s26, %s986_s27  }
  0x25   : > { %p178_p11 = scmp.lt.s32.totalorder %s982_s18, 3  ;;  %p1342_p13 = scmp.ge.s32.totalorder %s982_s18, 1 }
  0x27   : > { %p179_p0 = pnand %p1342_p13, %p178_p11 }
  0x28   : > { %s184_s28 = sand.u32 (!%p179_p0), 1, %s974_s16   ;;  %p1343_p7 = scmp.ne.s32.totalorder (!%p179_p0), %s1340_s24, 0 }
  0x29   : > { %182 = sbr.rel (%p179_p0) target bundleno = 311 (0x137), region = 36  ;;  %s711_s29 = sshll.u32 (!%p179_p0), %s184_s28, 8 }
  0x2a   : > { %s185_s5 = scalar_lea.sflag (!%p179_p0), [#allocation3], %s184_s28  ;;  %s1090_s9 = scalar_lea.vmem (!%p179_p0), [#allocation2], %s711_s29 }
  0x2e   : > { %965 = dma.done.wait (%p1343_p7), %s185_s5, 4096  }
  0x2f   : > { %967 = vsyncadd (%p1343_p7), %s185_s5, 4294963200  ;;  %v267_v0 = vld [vmem:[%s1335_s1 + $0x78] sm:$0xff]  ;;  %v266_v1 = vld [vmem:[%s1335_s1 + $0x70] sm:$0xff]  ;;  %s712_s25 = sshll.u32 %s703_s19, 5  ;;  %vm603_vm0 = vcmask 523264  }
  0x30   : > { %767 = vmatprep.subr.mxu0 %v267_v0  ;;  %847 = vmatprep.subr.mxu1 %v267_v0  ;;  %v265_v2 = vld [vmem:[%s1335_s1 + $0x68] sm:$0xff]  ;;  %v264_v3 = vld [vmem:[%s1335_s1 + $0x60] sm:$0xff]  ;;  %v263_v4 = vld [vmem:[%s1335_s1 + $0x58] sm:$0xff]  ;;  %p215_p8 = scmp.lt.s32.totalorder %s712_s25, 63 }
  0x31   : > { %768 = vmatpush3.msra.mxu0 %v267_v0  ;;  %863 = vmatpush3.msra.mxu1 %v267_v0  ;;  %v262_v5 = vld [vmem:[%s1335_s1 + $0x50] sm:$0xff]  ;;  %v261_v6 = vld [vmem:[%s1335_s1 + $0x48] sm:$0xff]  ;;  %v260_v7 = vld [vmem:[%s1335_s1 + $0x40] sm:$0xff] }
  0x32   : > { %769 = vmatprep.subr.mxu0 %v266_v1  ;;  %848 = vmatprep.subr.mxu1 %v266_v1  ;;  %v259_v8 = vld [vmem:[%s1335_s1 + $0x38] sm:$0xff]  ;;  %v258_v9 = vld [vmem:[%s1335_s1 + $0x30] sm:$0xff]  ;;  %v257_v10 = vld [vmem:[%s1335_s1 + $0x28] sm:$0xff]  ;;  %s1349_s25 = smov (!%p215_p8, %s712_s25), 63 }
  0x33   : > { %770 = vmatpush3.msra.mxu0 %v266_v1  ;;  %864 = vmatpush3.msra.mxu1 %v266_v1  ;;  %v256_v11 = vld [vmem:[%s1335_s1 + $0x20] sm:$0xff]  ;;  %v255_v12 = vld [vmem:[%s1335_s1 + $0x18] sm:$0xff]  ;;  %v254_v13 = vld [vmem:[%s1335_s1 + $0x10] sm:$0xff]  ;;  %s713_s5 = sshll.u32 %s1349_s25, 3 }
  0x34   : > { %771 = vmatprep.subr.mxu0 %v265_v2  ;;  %849 = vmatprep.subr.mxu1 %v265_v2  ;;  %v253_v14 = vld [vmem:[%s1335_s1 + $0x8] sm:$0xff]  ;;  %v252_v15 = vld [vmem:[%s1335_s1] sm:$0xff]  ;;  %v222_v20 = vld [vmem:[%s1090_s9 + $0x10] sm:$0xff] }
  0x35   : > { %772 = vmatpush3.msra.mxu0 %v265_v2  ;;  %865 = vmatpush3.msra.mxu1 %v265_v2  ;;  %v220_v16 = vld [vmem:[%s1090_s9] sm:$0xff]  ;;  %v221_v18 = vld [vmem:[%s1090_s9 + $0x8] sm:$0xff]  ;;  %v238_v21 = vld [vmem:[%s1090_s9 + $0x90] sm:$0xff] }
  0x36   : > { %773 = vmatprep.subr.mxu0 %v264_v3  ;;  %850 = vmatprep.subr.mxu1 %v264_v3  ;;  %v236_v17 = vld [vmem:[%s1090_s9 + $0x80] sm:$0xff]  ;;  %v237_v19 = vld [vmem:[%s1090_s9 + $0x88] sm:$0xff]  ;;  %v223_v22 = vld [vmem:[%s1090_s9 + $0x18] sm:$0xff] }
  0x37   : > { %774 = vmatpush3.msra.mxu0 %v264_v3  ;;  %866 = vmatpush3.msra.mxu1 %v264_v3  ;;  %v239_v23 = vld [vmem:[%s1090_s9 + $0x98] sm:$0xff]  ;;  %v224_v24 = vld [vmem:[%s1090_s9 + $0x20] sm:$0xff]  ;;  %v225_v26 = vld [vmem:[%s1090_s9 + $0x28] sm:$0xff] }
  0x38   : > { %775 = vmatprep.subr.mxu0 %v263_v4  ;;  %851 = vmatprep.subr.mxu1 %v263_v4  ;;  %v240_v25 = vld [vmem:[%s1090_s9 + $0xa0] sm:$0xff]  ;;  %v241_v27 = vld [vmem:[%s1090_s9 + $0xa8] sm:$0xff]  ;;  %v226_v28 = vld [vmem:[%s1090_s9 + $0x30] sm:$0xff] }
  0x39   : > { %776 = vmatpush3.msra.mxu0 %v263_v4  ;;  %867 = vmatpush3.msra.mxu1 %v263_v4  ;;  %v242_v29 = vld [vmem:[%s1090_s9 + $0xb0] sm:$0xff]  ;;  %v227_v30 = vld [vmem:[%s1090_s9 + $0x38] sm:$0xff]  ;;  %v228_v32 = vld [vmem:[%s1090_s9 + $0x40] sm:$0xff] }
  0x3a   : > { %777 = vmatprep.subr.mxu0 %v262_v5  ;;  %852 = vmatprep.subr.mxu1 %v262_v5  ;;  %v243_v31 = vld [vmem:[%s1090_s9 + $0xb8] sm:$0xff]  ;;  %v244_v33 = vld [vmem:[%s1090_s9 + $0xc0] sm:$0xff]  ;;  %v229_v34 = vld [vmem:[%s1090_s9 + $0x48] sm:$0xff] }
  0x3b   : > { %778 = vmatpush3.msra.mxu0 %v262_v5  ;;  %868 = vmatpush3.msra.mxu1 %v262_v5  ;;  %v245_v35 = vld [vmem:[%s1090_s9 + $0xc8] sm:$0xff]  ;;  %v230_v36 = vld [vmem:[%s1090_s9 + $0x50] sm:$0xff]  ;;  %v231_v38 = vld [vmem:[%s1090_s9 + $0x58] sm:$0xff] }
  0x3c   : > { %779 = vmatprep.subr.mxu0 %v261_v6  ;;  %853 = vmatprep.subr.mxu1 %v261_v6  ;;  %v246_v37 = vld [vmem:[%s1090_s9 + $0xd0] sm:$0xff]  ;;  %v247_v39 = vld [vmem:[%s1090_s9 + $0xd8] sm:$0xff]  ;;  %v232_v40 = vld [vmem:[%s1090_s9 + $0x60] sm:$0xff] }
  0x3d   : > { %780 = vmatpush3.msra.mxu0 %v261_v6  ;;  %869 = vmatpush3.msra.mxu1 %v261_v6  ;;  %v248_v41 = vld [vmem:[%s1090_s9 + $0xe0] sm:$0xff]  ;;  %v233_v42 = vld [vmem:[%s1090_s9 + $0x68] sm:$0xff]  ;;  %v234_v44 = vld [vmem:[%s1090_s9 + $0x70] sm:$0xff] }
  0x3e   : > { %781 = vmatprep.subr.mxu0 %v260_v7  ;;  %854 = vmatprep.subr.mxu1 %v260_v7  ;;  %v249_v43 = vld [vmem:[%s1090_s9 + $0xe8] sm:$0xff]  ;;  %v250_v45 = vld [vmem:[%s1090_s9 + $0xf0] sm:$0xff]  ;;  %v235_v46 = vld [vmem:[%s1090_s9 + $0x78] sm:$0xff] }
  0x3f   : > { %782 = vmatpush3.msra.mxu0 %v260_v7  ;;  %870 = vmatpush3.msra.mxu1 %v260_v7  ;;  %v251_v47 = vld [vmem:[%s1090_s9 + $0xf8] sm:$0xff]  ;;  %v1181_v48 = vld [vmem:[%s1336_s2] ss:$0 sm:$0xff]  ;;  %s1197_s9 = scalar_lea.vmem %s1338_s4, %s713_s5 }
  0x40   : > { %783 = vmatprep.subr.mxu0 %v259_v8  ;;  %855 = vmatprep.subr.mxu1 %v259_v8  ;;  %v1186_v50 = vld [vmem:[%s1337_s3] ss:$0 sm:$0xff] }
  0x41   : > { %784 = vmatpush3.msra.mxu0 %v259_v8  ;;  %871 = vmatpush3.msra.mxu1 %v259_v8 }
  0x42   : > { %785 = vmatprep.subr.mxu0 %v258_v9  ;;  %856 = vmatprep.subr.mxu1 %v258_v9 }
  0x43   : > { %786 = vmatpush3.msra.mxu0 %v258_v9  ;;  %872 = vmatpush3.msra.mxu1 %v258_v9 }
  0x44   : > { %787 = vmatprep.subr.mxu0 %v257_v10  ;;  %857 = vmatprep.subr.mxu1 %v257_v10 }
  0x45   : > { %788 = vmatpush3.msra.mxu0 %v257_v10  ;;  %873 = vmatpush3.msra.mxu1 %v257_v10 }
  0x46   : > { %789 = vmatprep.subr.mxu0 %v256_v11  ;;  %858 = vmatprep.subr.mxu1 %v256_v11 }
  0x47   : > { %790 = vmatpush3.msra.mxu0 %v256_v11  ;;  %874 = vmatpush3.msra.mxu1 %v256_v11 }
  0x48   : > { %791 = vmatprep.subr.mxu0 %v255_v12  ;;  %859 = vmatprep.subr.mxu1 %v255_v12 }
  0x49   : > { %792 = vmatpush3.msra.mxu0 %v255_v12  ;;  %875 = vmatpush3.msra.mxu1 %v255_v12 }
  0x4a   : > { %793 = vmatprep.subr.mxu0 %v254_v13  ;;  %860 = vmatprep.subr.mxu1 %v254_v13 }
  0x4b   : > { %794 = vmatpush3.msra.mxu0 %v254_v13  ;;  %876 = vmatpush3.msra.mxu1 %v254_v13 }
  0x4c   : > { %795 = vmatprep.subr.mxu0 %v253_v14  ;;  %861 = vmatprep.subr.mxu1 %v253_v14 }
  0x4d   : > { %796 = vmatpush3.msra.mxu0 %v253_v14  ;;  %877 = vmatpush3.msra.mxu1 %v253_v14 }
  0x4e   : > { %797 = vmatprep.subr.mxu0 %v252_v15  ;;  %862 = vmatprep.subr.mxu1 %v252_v15 }
  0x4f   : > { %798 = vmatpush3.msra.mxu0 %v252_v15  ;;  %878 = vmatpush3.msra.mxu1 %v252_v15 }
  0x50   : > { %799 = vmatprep.mubr.f32.mxu0 %v220_v16  ;;  %823 = vmatprep.mubr.f32.mxu1 %v236_v17 }
  0x51   : > { %800 = vmatmul.mubr.f32.vlgmr.msra.gmra.mxu0 %v221_v18  ;;  %824 = vmatmul.mubr.f32.vlgmr.msra.gmra.mxu1 %v237_v19 }
  0x52   : > { %802 = vmatprep.mubr.f32.mxu0 %v222_v20  ;;  %826 = vmatprep.mubr.f32.mxu1 %v238_v21 }
  0x55   : > { %803 = vmatmul.mubr.f32.gmra.mxu0 %v223_v22  ;;  %827 = vmatmul.mubr.f32.gmra.mxu1 %v239_v23 }
  0x56   : > { %805 = vmatprep.mubr.f32.mxu0 %v224_v24  ;;  %829 = vmatprep.mubr.f32.mxu1 %v240_v25 }
  0x59   : > { %806 = vmatmul.mubr.f32.gmra.mxu0 %v225_v26  ;;  %830 = vmatmul.mubr.f32.gmra.mxu1 %v241_v27 }
  0x5a   : > { %808 = vmatprep.mubr.f32.mxu0 %v226_v28  ;;  %832 = vmatprep.mubr.f32.mxu1 %v242_v29 }
  0x5d   : > { %809 = vmatmul.mubr.f32.gmra.mxu0 %v227_v30  ;;  %833 = vmatmul.mubr.f32.gmra.mxu1 %v243_v31 }
  0x5e   : > { %811 = vmatprep.mubr.f32.mxu0 %v228_v32  ;;  %835 = vmatprep.mubr.f32.mxu1 %v244_v33 }
  0x61   : > { %812 = vmatmul.mubr.f32.gmra.mxu0 %v229_v34  ;;  %836 = vmatmul.mubr.f32.gmra.mxu1 %v245_v35 }
  0x62   : > { %814 = vmatprep.mubr.f32.mxu0 %v230_v36  ;;  %838 = vmatprep.mubr.f32.mxu1 %v246_v37 }
  0x65   : > { %815 = vmatmul.mubr.f32.gmra.mxu0 %v231_v38  ;;  %839 = vmatmul.mubr.f32.gmra.mxu1 %v247_v39 }
  0x66   : > { %817 = vmatprep.mubr.f32.mxu0 %v232_v40  ;;  %841 = vmatprep.mubr.f32.mxu1 %v248_v41 }
  0x69   : > { %818 = vmatmul.mubr.f32.gmra.mxu0 %v233_v42  ;;  %842 = vmatmul.mubr.f32.gmra.mxu1 %v249_v43 }
  0x6a   : > { %820 = vmatprep.mubr.f32.mxu0 %v234_v44  ;;  %844 = vmatprep.mubr.f32.mxu1 %v250_v45 }
  0x6d   : > { %821 = vmatmul.mubr.f32.gmra.mxu0 %v235_v46  ;;  %845 = vmatmul.mubr.f32.gmra.mxu1 %v251_v47 }
 0x111   : > { %v801_v49 = vpop.f32.mrf.mxu0  ;;  %v825_v51 = vpop.f32.mrf.mxu1 }
 0x112   : > { %v501_v52 = vmul.f32 %v801_v49, %v1181_v48  ;;  %v517_v53 = vmul.f32 %v825_v51, %v1181_v48 }
 0x113   : > { %v334_v54 = vpop.f32.mrf.mxu0  ;;  %v414_v55 = vpop.f32.mrf.mxu1 }
 0x114   : > { %v540_v56 = vadd.f32 %v1186_v50, %v501_v52  ;;  %v556_v57 = vadd.f32 %v1186_v50, %v517_v53  ;;  %v500_v58 = vmul.f32 %v1181_v48, %v334_v54  ;;  %v516_v59 = vmul.f32 %v1181_v48, %v414_v55 }
 0x115   : > { %v804_v60 = vpop.f32.mrf.mxu0  ;;  %v828_v61 = vpop.f32.mrf.mxu1 }
 0x116   : > { %v572_v62 = vmax.f32 %v540_v56, 0.0  ;;  %v588_v63 = vmax.f32 %v556_v57, 0.0  ;;  %v539_v0 = vadd.f32 %v1186_v50, %v500_v58  ;;  %v555_v1 = vadd.f32 %v1186_v50, %v516_v59 }
 0x117   : > { %v503_v2 = vmul.f32 %v804_v60, %v1181_v48  ;;  %v519_v3 = vmul.f32 %v828_v61, %v1181_v48  ;;  %v344_v4 = vpop.f32.mrf.mxu0  ;;  %v424_v5 = vpop.f32.mrf.mxu1 }
 0x118   : > { %605 = vst.msk [vmem:[%s1197_s9 + $0x8] sm:$0xff] %vm603_vm0, %v572_v62  ;;  %621 = vst.msk [vmem:[%s1197_s9 + $0x88] sm:$0xff] %vm603_vm0, %v588_v63  ;;  %v571_v6 = vmax.f32 %v539_v0, 0.0  ;;  %v587_v7 = vmax.f32 %v555_v1, 0.0  ;;  %v502_v8 = vmul.f32 %v1181_v48, %v344_v4  ;;  %v518_v9 = vmul.f32 %v1181_v48, %v424_v5 }
 0x119   : > { %v542_v10 = vadd.f32 %v1186_v50, %v503_v2  ;;  %v558_v11 = vadd.f32 %v1186_v50, %v519_v3  ;;  %v807_v12 = vpop.f32.mrf.mxu0  ;;  %v831_v13 = vpop.f32.mrf.mxu1 }
 0x11a   : > { %604 = vst.msk [vmem:[%s1197_s9] sm:$0xff] %vm603_vm0, %v571_v6  ;;  %620 = vst.msk [vmem:[%s1197_s9 + $0x80] sm:$0xff] %vm603_vm0, %v587_v7  ;;  %v541_v14 = vadd.f32 %v1186_v50, %v502_v8  ;;  %v557_v15 = vadd.f32 %v1186_v50, %v518_v9  ;;  %v505_v16 = vmul.f32 %v807_v12, %v1181_v48 }
 0x11b   : > { %v521_v17 = vmul.f32 %v831_v13, %v1181_v48  ;;  %v574_v18 = vmax.f32 %v542_v10, 0.0  ;;  %v590_v19 = vmax.f32 %v558_v11, 0.0  ;;  %v354_v20 = vpop.f32.mrf.mxu0  ;;  %v434_v21 = vpop.f32.mrf.mxu1 }
 0x11c   : > { %v573_v22 = vmax.f32 %v541_v14, 0.0  ;;  %v589_v23 = vmax.f32 %v557_v15, 0.0  ;;  %v544_v24 = vadd.f32 %v1186_v50, %v505_v16  ;;  %v504_v26 = vmul.f32 %v1181_v48, %v354_v20 }
 0x11d   : > { %v560_v25 = vadd.f32 %v1186_v50, %v521_v17  ;;  %607 = vst.msk [vmem:[%s1197_s9 + $0x18] sm:$0xff] %vm603_vm0, %v574_v18  ;;  %623 = vst.msk [vmem:[%s1197_s9 + $0x98] sm:$0xff] %vm603_vm0, %v590_v19  ;;  %v520_v27 = vmul.f32 %v1181_v48, %v434_v21  ;;  %v810_v28 = vpop.f32.mrf.mxu0  ;;  %v834_v29 = vpop.f32.mrf.mxu1 }
 0x11e   : > { %606 = vst.msk [vmem:[%s1197_s9 + $0x10] sm:$0xff] %vm603_vm0, %v573_v22  ;;  %622 = vst.msk [vmem:[%s1197_s9 + $0x90] sm:$0xff] %vm603_vm0, %v589_v23  ;;  %v576_v30 = vmax.f32 %v544_v24, 0.0  ;;  %v507_v32 = vmul.f32 %v810_v28, %v1181_v48  ;;  %v523_v33 = vmul.f32 %v834_v29, %v1181_v48  ;;  %v543_v34 = vadd.f32 %v1186_v50, %v504_v26 }
 0x11f   : > { %v592_v31 = vmax.f32 %v560_v25, 0.0  ;;  %v559_v35 = vadd.f32 %v1186_v50, %v520_v27  ;;  %v364_v36 = vpop.f32.mrf.mxu0  ;;  %v444_v37 = vpop.f32.mrf.mxu1 }
 0x120   : > { %609 = vst.msk [vmem:[%s1197_s9 + $0x28] sm:$0xff] %vm603_vm0, %v576_v30  ;;  %v546_v38 = vadd.f32 %v1186_v50, %v507_v32  ;;  %v562_v39 = vadd.f32 %v1186_v50, %v523_v33  ;;  %v506_v40 = vmul.f32 %v1181_v48, %v364_v36  ;;  %v522_v41 = vmul.f32 %v1181_v48, %v444_v37 }
 0x121   : > { %625 = vst.msk [vmem:[%s1197_s9 + $0xa8] sm:$0xff] %vm603_vm0, %v592_v31  ;;  %v575_v42 = vmax.f32 %v543_v34, 0.0  ;;  %v591_v43 = vmax.f32 %v559_v35, 0.0  ;;  %v813_v44 = vpop.f32.mrf.mxu0  ;;  %v837_v45 = vpop.f32.mrf.mxu1 }
 0x122   : > { %v578_v46 = vmax.f32 %v546_v38, 0.0  ;;  %v594_v47 = vmax.f32 %v562_v39, 0.0  ;;  %v545_v49 = vadd.f32 %v1186_v50, %v506_v40  ;;  %v561_v51 = vadd.f32 %v1186_v50, %v522_v41 }
 0x123   : > { %608 = vst.msk [vmem:[%s1197_s9 + $0x20] sm:$0xff] %vm603_vm0, %v575_v42  ;;  %624 = vst.msk [vmem:[%s1197_s9 + $0xa0] sm:$0xff] %vm603_vm0, %v591_v43  ;;  %v509_v52 = vmul.f32 %v813_v44, %v1181_v48  ;;  %v525_v53 = vmul.f32 %v837_v45, %v1181_v48  ;;  %v374_v54 = vpop.f32.mrf.mxu0  ;;  %v454_v55 = vpop.f32.mrf.mxu1 }
 0x124   : > { %611 = vst.msk [vmem:[%s1197_s9 + $0x38] sm:$0xff] %vm603_vm0, %v578_v46  ;;  %627 = vst.msk [vmem:[%s1197_s9 + $0xb8] sm:$0xff] %vm603_vm0, %v594_v47  ;;  %v577_v56 = vmax.f32 %v545_v49, 0.0  ;;  %v593_v57 = vmax.f32 %v561_v51, 0.0  ;;  %v508_v58 = vmul.f32 %v1181_v48, %v374_v54  ;;  %v524_v59 = vmul.f32 %v1181_v48, %v454_v55 }
 0x125   : > { %v548_v60 = vadd.f32 %v1186_v50, %v509_v52  ;;  %v564_v61 = vadd.f32 %v1186_v50, %v525_v53  ;;  %v816_v62 = vpop.f32.mrf.mxu0  ;;  %v840_v63 = vpop.f32.mrf.mxu1 }
 0x126   : > { %610 = vst.msk [vmem:[%s1197_s9 + $0x30] sm:$0xff] %vm603_vm0, %v577_v56  ;;  %626 = vst.msk [vmem:[%s1197_s9 + $0xb0] sm:$0xff] %vm603_vm0, %v593_v57  ;;  %v547_v0 = vadd.f32 %v1186_v50, %v508_v58  ;;  %v563_v1 = vadd.f32 %v1186_v50, %v524_v59  ;;  %v511_v2 = vmul.f32 %v816_v62, %v1181_v48 }
 0x127   : > { %v527_v3 = vmul.f32 %v840_v63, %v1181_v48  ;;  %v580_v4 = vmax.f32 %v548_v60, 0.0  ;;  %v596_v5 = vmax.f32 %v564_v61, 0.0  ;;  %v384_v6 = vpop.f32.mrf.mxu0  ;;  %v464_v7 = vpop.f32.mrf.mxu1 }
 0x128   : > { %v579_v8 = vmax.f32 %v547_v0, 0.0  ;;  %v595_v9 = vmax.f32 %v563_v1, 0.0  ;;  %v550_v10 = vadd.f32 %v1186_v50, %v511_v2  ;;  %v510_v12 = vmul.f32 %v1181_v48, %v384_v6 }
 0x129   : > { %v566_v11 = vadd.f32 %v1186_v50, %v527_v3  ;;  %613 = vst.msk [vmem:[%s1197_s9 + $0x48] sm:$0xff] %vm603_vm0, %v580_v4  ;;  %629 = vst.msk [vmem:[%s1197_s9 + $0xc8] sm:$0xff] %vm603_vm0, %v596_v5  ;;  %v526_v13 = vmul.f32 %v1181_v48, %v464_v7  ;;  %v819_v14 = vpop.f32.mrf.mxu0  ;;  %v843_v15 = vpop.f32.mrf.mxu1 }
 0x12a   : > { %612 = vst.msk [vmem:[%s1197_s9 + $0x40] sm:$0xff] %vm603_vm0, %v579_v8  ;;  %628 = vst.msk [vmem:[%s1197_s9 + $0xc0] sm:$0xff] %vm603_vm0, %v595_v9  ;;  %v582_v16 = vmax.f32 %v550_v10, 0.0  ;;  %v513_v18 = vmul.f32 %v819_v14, %v1181_v48  ;;  %v529_v19 = vmul.f32 %v843_v15, %v1181_v48  ;;  %v549_v20 = vadd.f32 %v1186_v50, %v510_v12 }
 0x12b   : > { %v598_v17 = vmax.f32 %v566_v11, 0.0  ;;  %v565_v21 = vadd.f32 %v1186_v50, %v526_v13  ;;  %v394_v22 = vpop.f32.mrf.mxu0  ;;  %v474_v23 = vpop.f32.mrf.mxu1 }
 0x12c   : > { %615 = vst.msk [vmem:[%s1197_s9 + $0x58] sm:$0xff] %vm603_vm0, %v582_v16  ;;  %v552_v24 = vadd.f32 %v1186_v50, %v513_v18  ;;  %v568_v25 = vadd.f32 %v1186_v50, %v529_v19  ;;  %v512_v26 = vmul.f32 %v1181_v48, %v394_v22  ;;  %v528_v27 = vmul.f32 %v1181_v48, %v474_v23 }
 0x12d   : > { %631 = vst.msk [vmem:[%s1197_s9 + $0xd8] sm:$0xff] %vm603_vm0, %v598_v17  ;;  %v581_v28 = vmax.f32 %v549_v20, 0.0  ;;  %v597_v29 = vmax.f32 %v565_v21, 0.0  ;;  %v822_v30 = vpop.f32.mrf.mxu0  ;;  %v846_v31 = vpop.f32.mrf.mxu1 }
 0x12e   : > { %v584_v32 = vmax.f32 %v552_v24, 0.0  ;;  %v600_v33 = vmax.f32 %v568_v25, 0.0  ;;  %v551_v34 = vadd.f32 %v1186_v50, %v512_v26  ;;  %v567_v35 = vadd.f32 %v1186_v50, %v528_v27 }
 0x12f   : > { %614 = vst.msk [vmem:[%s1197_s9 + $0x50] sm:$0xff] %vm603_vm0, %v581_v28  ;;  %630 = vst.msk [vmem:[%s1197_s9 + $0xd0] sm:$0xff] %vm603_vm0, %v597_v29  ;;  %v515_v36 = vmul.f32 %v822_v30, %v1181_v48  ;;  %v531_v37 = vmul.f32 %v846_v31, %v1181_v48  ;;  %v404_v38 = vpop.f32.mrf.mxu0  ;;  %v484_v39 = vpop.f32.mrf.mxu1 }
 0x130   : > { %617 = vst.msk [vmem:[%s1197_s9 + $0x68] sm:$0xff] %vm603_vm0, %v584_v32  ;;  %633 = vst.msk [vmem:[%s1197_s9 + $0xe8] sm:$0xff] %vm603_vm0, %v600_v33  ;;  %v583_v40 = vmax.f32 %v551_v34, 0.0  ;;  %v599_v41 = vmax.f32 %v567_v35, 0.0  ;;  %v514_v42 = vmul.f32 %v1181_v48, %v404_v38  ;;  %v530_v43 = vmul.f32 %v1181_v48, %v484_v39 }
 0x131   : > { %v554_v44 = vadd.f32 %v1186_v50, %v515_v36  ;;  %v570_v45 = vadd.f32 %v1186_v50, %v531_v37 }
 0x132   : > { %616 = vst.msk [vmem:[%s1197_s9 + $0x60] sm:$0xff] %vm603_vm0, %v583_v40  ;;  %632 = vst.msk [vmem:[%s1197_s9 + $0xe0] sm:$0xff] %vm603_vm0, %v599_v41  ;;  %v553_v46 = vadd.f32 %v1186_v50, %v514_v42  ;;  %v569_v47 = vadd.f32 %v1186_v50, %v530_v43 }
 0x133   : > { %v586_v49 = vmax.f32 %v554_v44, 0.0  ;;  %v602_v51 = vmax.f32 %v570_v45, 0.0 }
 0x134   : > { %v585_v52 = vmax.f32 %v553_v46, 0.0  ;;  %v601_v53 = vmax.f32 %v569_v47, 0.0 }
 0x135   : > { %619 = vst.msk [vmem:[%s1197_s9 + $0x78] sm:$0xff] %vm603_vm0, %v586_v49  ;;  %635 = vst.msk [vmem:[%s1197_s9 + $0xf8] sm:$0xff] %vm603_vm0, %v602_v51 }
 0x136   : > { %618 = vst.msk [vmem:[%s1197_s9 + $0x70] sm:$0xff] %vm603_vm0, %v585_v52  ;;  %634 = vst.msk [vmem:[%s1197_s9 + $0xf0] sm:$0xff] %vm603_vm0, %v601_v53 }
 0x137 PF: > { %p14_p9 = scmp.ge.s32.totalorder %s1032_s20, 4   ;;  %s1344_s15 = smov %s974_s16 }
 0x138   : > { %s1345_s16 = smov %s978_s17  ;;  %s1346_s17 = smov %s1042_s23 }
 0x139   : > { %s1347_s18 = smov %s1032_s20  ;;  %16 = sbr.rel (!%p14_p9) target bundleno = 3 (0x3), region = 76 }
 0x13e   :  { %658 = vsyncpa [#allocation3], 1 }
 0x13f   :  { %660 = vsyncpa [#allocation3 + $0x1], 1 }

// kernel: se_bottleneck_forward.5
= control target key start
LH: loop header
LB: loop body
LE: loop exit
PB: predicated region body
PF: predicated region fallthrough
CT: control target
= control target key end

     0   :  { %12 = vsyncpa [#allocation3], 0  ;;  %s2178_s0 = inlined_call_operand.vmem [shape: f32[2,256,64], index: 0, kind: input, shape index: {}]   ;;  %s2179_s1 = inlined_call_operand.vmem [shape: f32[2,256,128], index: 1, kind: input, shape index: {}]   ;;  %s2180_s2 = inlined_call_operand.vmem [shape: f32[64,128], index: 2, kind: input, shape index: {}]   ;;  %s2181_s3 = inlined_call_operand.vmem [shape: f32[1,128], index: 3, kind: input, shape index: {}]   ;;  %s2182_s4 = inlined_call_operand.vmem [shape: f32[1,128], index: 4, kind: input, shape index: {}]   ;;  %s2183_s5 = inlined_call_operand.vmem [shape: f32[128,8], index: 5, kind: input, shape index: {}]   ;;  %s2184_s6 = inlined_call_operand.vmem [shape: f32[8,128], index: 6, kind: input, shape index: {}]   ;;  %s2185_s7 = inlined_call_operand.hbm [shape: f32[2,256,128], index: 7, kind: output, shape index: {}]  }
   0x1   :  { %14 = vsyncpa [#allocation3 + $0x1], 0  ;;  %s1566_s24 = smov 0   ;;  %s1568_s25 = smov 0  }
   0x2   :  { %s1570_s26 = smov 0   ;;  %s1572_s27 = smov 0  }
   0x3 LB: > { %s1587_s28 = sadd.s32 4294967295, %s1519_s27   ;;  %s1196_s29 = sadd.s32 4294967294, %s1519_s27   ;;  %s1519_s27 = sphi %s1572_s27, %s2191_s27   ;;  %s1515_s26 = sphi %s1570_s26, %s2190_s26   ;;  %s1511_s25 = sphi %s1568_s25, %s2189_s25   ;;  %s1507_s24 = sphi %s1566_s24, %s2188_s24  }
   0x4   : > { %s1591_s30 = sadd.s32 1, %s1519_s27   ;;  %s184_s8 = sadd.s32 1, %s1515_s26 }
   0x5   : > { %s181_s9 = ssub.s32 %s1519_s27, %s1591_s30  ;;  %p194_p0 = scmp.ne.s32.totalorder %s1515_s26, %s1511_s25 }
   0x6   : > { %p182_p1 = scmp.eq.s32.totalorder %s181_s9, 0  ;;  %p195_p2 = scmp.eq.s32.totalorder %s1587_s28, 1 }
   0x7   : > { %p200_p3 = scmp.ne.s32.totalorder %s1511_s25, %s1507_s24  ;;  %p201_p4 = scmp.eq.s32.totalorder %s1196_s29, 1 }
   0x8   : > { %s1602_s10 = scalar_select %p182_p1, %s1515_s26, %s184_s8  }
   0x9   : > { %p1604_p5 = por %p195_p2, %p194_p0  ;;  %p1608_p6 = por %p201_p4, %p200_p3 }
   0xa   : > { %p1199_p7 = scmp.ge.s32.totalorder %s1519_s27, 1  ;;  %p250_p8 = scmp.lt.s32.totalorder %s1519_s27, 3 }
   0xc   : > { %p251_p9 = pnand %p1199_p7, %p250_p8 }
   0xd   : > { %p287_p10 = scmp.lt.s32.totalorder (!%p251_p9), %s1587_s28, 1  ;;  %s1248_s14 = sshll.u32 (!%p251_p9), %s1587_s28, 12 }
   0xe   : > { %254 = sbr.rel (%p251_p9) target bundleno = 782 (0x30e), region = 48  ;;  %s2116_s17 = scalar_lea.hbm (!%p251_p9), %s2185_s7, %s1248_s14 }
   0xf   : > { %s1523_s21 = smov (!%p251_p9), [#allocation2]  }
  0x10   : > { %s1463_s23 = sshll.u32 (!%p251_p9), %s1523_s21, 4  ;;  %s1464_s23 = int_to_ptr.vmem [resolvable:$false] %s1463_s23 }
  0x11   : > { %s1465_s29 = scalar_lea.vmem (!%p251_p9), %s1464_s23, 8192 }
  0x13   : > { %v336_v0 = vld [vmem:[%s2180_s2 + $0x38] sm:$0xff]  ;;  %v335_v1 = vld [vmem:[%s2180_s2 + $0x30] sm:$0xff]  ;;  %v334_v2 = vld [vmem:[%s2180_s2 + $0x28] sm:$0xff]  ;;  %s1625_s19 = scalar_select %p287_p10, %s1587_s28, 1  ;;  %vm337_vm0 = vcmask 523264   ;;  %v1521_v40 = vmov 0.0  }
  0x14   : > { %1308 = vmatprep.subr.mxu0 %v336_v0  ;;  %v333_v3 = vld [vmem:[%s2180_s2 + $0x20] sm:$0xff]  ;;  %v332_v4 = vld [vmem:[%s2180_s2 + $0x18] sm:$0xff]  ;;  %v331_v6 = vld [vmem:[%s2180_s2 + $0x10] sm:$0xff]  ;;  %1372 = vmatprep.subr.mxu1 %v1521_v40  ;;  %vm1522_vm1 = vmmov 0   ;;  %vm864_vm2 = vcmask 64512  }
  0x15   : > { %1309 = vmatpush3.msra.mxu0 %v336_v0  ;;  %s1246_s22 = sshll.u32 %s1625_s19, 8  ;;  %v330_v7 = vld [vmem:[%s2180_s2 + $0x8] sm:$0xff]  ;;  %v329_v8 = vld [vmem:[%s2180_s2] sm:$0xff]  ;;  %v791_v41 = vld [vmem:[%s2183_s5 + $0x78] sm:$0xff]  ;;  %1404 = vmatprep.mubr.msk.f32.mxu1 %vm1522_vm1, %v1521_v40  ;;  %s284_s19 = sand.u32 1, %s1511_s25  }
  0x16   : > { %1310 = vmatprep.subr.mxu0 %v335_v1  ;;  %s1636_s8 = scalar_lea.vmem %s2178_s0, %s1246_s22  ;;  %1373 = vmatpush3.msra.mxu1 %v791_v41  ;;  %v790_v42 = vld [vmem:[%s2183_s5 + $0x70] sm:$0xff]  ;;  %v789_v43 = vld [vmem:[%s2183_s5 + $0x68] sm:$0xff]  ;;  %v788_v44 = vld [vmem:[%s2183_s5 + $0x60] sm:$0xff]  ;;  %s2138_s18 = scalar_lea.sflag [#allocation3], %s284_s19 }
  0x17   : > { %1311 = vmatpush3.msra.mxu0 %v335_v1  ;;  %v297_v5 = vld [vmem:[%s1636_s8] sm:$0xff]  ;;  %v298_v9 = vld [vmem:[%s1636_s8 + $0x8] sm:$0xff]  ;;  %v299_v10 = vld [vmem:[%s1636_s8 + $0x10] sm:$0xff]  ;;  %1374 = vmatprep.subr.mxu1 %v1521_v40 }
  0x18   : > { %1312 = vmatprep.subr.mxu0 %v334_v2  ;;  %1324 = vmatprep.mubr.msk.f32.mxu0 %vm337_vm0, %v297_v5  ;;  %v300_v11 = vld [vmem:[%s1636_s8 + $0x18] sm:$0xff]  ;;  %v301_v12 = vld [vmem:[%s1636_s8 + $0x20] sm:$0xff]  ;;  %v302_v13 = vld [vmem:[%s1636_s8 + $0x28] sm:$0xff] }
  0x19   : > { %1313 = vmatpush3.msra.mxu0 %v334_v2  ;;  %v303_v14 = vld [vmem:[%s1636_s8 + $0x30] sm:$0xff]  ;;  %v304_v15 = vld [vmem:[%s1636_s8 + $0x38] sm:$0xff]  ;;  %v305_v16 = vld [vmem:[%s1636_s8 + $0x40] sm:$0xff]  ;;  %1375 = vmatpush3.msra.mxu1 %v790_v42 }
  0x1a   : > { %1314 = vmatprep.subr.mxu0 %v333_v3  ;;  %v306_v17 = vld [vmem:[%s1636_s8 + $0x48] sm:$0xff]  ;;  %v307_v18 = vld [vmem:[%s1636_s8 + $0x50] sm:$0xff]  ;;  %v308_v19 = vld [vmem:[%s1636_s8 + $0x58] sm:$0xff]  ;;  %1376 = vmatprep.subr.mxu1 %v1521_v40 }
  0x1b   : > { %1315 = vmatpush3.msra.mxu0 %v333_v3  ;;  %v309_v20 = vld [vmem:[%s1636_s8 + $0x60] sm:$0xff]  ;;  %v310_v21 = vld [vmem:[%s1636_s8 + $0x68] sm:$0xff]  ;;  %v311_v22 = vld [vmem:[%s1636_s8 + $0x70] sm:$0xff]  ;;  %1377 = vmatpush3.msra.mxu1 %v789_v43 }
  0x1c   : > { %1316 = vmatprep.subr.mxu0 %v332_v4  ;;  %v312_v23 = vld [vmem:[%s1636_s8 + $0x78] sm:$0xff]  ;;  %v313_v24 = vld [vmem:[%s1636_s8 + $0x80] sm:$0xff]  ;;  %v314_v25 = vld [vmem:[%s1636_s8 + $0x88] sm:$0xff]  ;;  %1378 = vmatprep.subr.mxu1 %v1521_v40 }
  0x1d   : > { %1317 = vmatpush3.msra.mxu0 %v332_v4  ;;  %v315_v26 = vld [vmem:[%s1636_s8 + $0x90] sm:$0xff]  ;;  %v316_v27 = vld [vmem:[%s1636_s8 + $0x98] sm:$0xff]  ;;  %v317_v28 = vld [vmem:[%s1636_s8 + $0xa0] sm:$0xff]  ;;  %1379 = vmatpush3.msra.mxu1 %v788_v44 }
  0x1e   : > { %1318 = vmatprep.subr.mxu0 %v331_v6  ;;  %v318_v29 = vld [vmem:[%s1636_s8 + $0xa8] sm:$0xff]  ;;  %v319_v30 = vld [vmem:[%s1636_s8 + $0xb0] sm:$0xff]  ;;  %v320_v31 = vld [vmem:[%s1636_s8 + $0xb8] sm:$0xff]  ;;  %1380 = vmatprep.subr.mxu1 %v1521_v40 }
  0x1f   : > { %1319 = vmatpush3.msra.mxu0 %v331_v6  ;;  %v321_v32 = vld [vmem:[%s1636_s8 + $0xc0] sm:$0xff]  ;;  %v322_v33 = vld [vmem:[%s1636_s8 + $0xc8] sm:$0xff]  ;;  %v323_v34 = vld [vmem:[%s1636_s8 + $0xd0] sm:$0xff] }
  0x20   : > { %1320 = vmatprep.subr.mxu0 %v330_v7  ;;  %v324_v35 = vld [vmem:[%s1636_s8 + $0xd8] sm:$0xff]  ;;  %v325_v36 = vld [vmem:[%s1636_s8 + $0xe0] sm:$0xff]  ;;  %v326_v37 = vld [vmem:[%s1636_s8 + $0xe8] sm:$0xff] }
  0x21   : > { %1321 = vmatpush3.msra.mxu0 %v330_v7  ;;  %v327_v38 = vld [vmem:[%s1636_s8 + $0xf0] sm:$0xff]  ;;  %v328_v39 = vld [vmem:[%s1636_s8 + $0xf8] sm:$0xff]  ;;  %v785_v47 = vld [vmem:[%s2183_s5 + $0x48] sm:$0xff]  ;;  %s1961_s8 = scalar_lea.vmem %s2179_s1, %s1246_s22  ;;  %s2035_s22 = sshll.u32 %s284_s19, 8 }
  0x22   : > { %1322 = vmatprep.subr.mxu0 %v329_v8  ;;  %v787_v45 = vld [vmem:[%s2183_s5 + $0x58] sm:$0xff]  ;;  %v786_v46 = vld [vmem:[%s2183_s5 + $0x50] sm:$0xff]  ;;  %v784_v48 = vld [vmem:[%s2183_s5 + $0x40] sm:$0xff]  ;;  %s2073_s13 = scalar_lea.vmem [#allocation2], %s2035_s22 }
  0x23   : > { %1323 = vmatpush3.msra.mxu0 %v329_v8  ;;  %1381 = vmatpush3.msra.mxu1 %v787_v45  ;;  %v783_v49 = vld [vmem:[%s2183_s5 + $0x38] sm:$0xff]  ;;  %v782_v50 = vld [vmem:[%s2183_s5 + $0x30] sm:$0xff]  ;;  %v781_v51 = vld [vmem:[%s2183_s5 + $0x28] sm:$0xff]  ;;  %s1122_s15 = sshll.u32 %s2073_s13, 4  ;;  %s2118_s15 = int_to_ptr.vmem [resolvable:$true] %s1122_s15 }
  0x24   : > { %1325 = vmatmul.mubr.msk.f32.vlgmr.msra.gmra.mxu0 %vm337_vm0, %v298_v9  ;;  %1382 = vmatprep.subr.mxu1 %v1521_v40  ;;  %v780_v52 = vld [vmem:[%s2183_s5 + $0x20] sm:$0xff]  ;;  %v779_v53 = vld [vmem:[%s2183_s5 + $0x18] sm:$0xff]  ;;  %v778_v54 = vld [vmem:[%s2183_s5 + $0x10] sm:$0xff]  ;;  %s1459_s20 = scalar_lea.vmem %s2118_s15, 4096  ;;  %p1466_p0 = scmp.lt.s32.totalorder %s2118_s15, %s1464_s23 }
  0x25   : > { %1327 = vmatprep.mubr.msk.f32.mxu0 %vm337_vm0, %v299_v10  ;;  %1383 = vmatpush3.msra.mxu1 %v786_v46  ;;  %v777_v55 = vld [vmem:[%s2183_s5 + $0x8] sm:$0xff]  ;;  %v776_v56 = vld [vmem:[%s2183_s5] sm:$0xff]  ;;  %p1460_p11 = scmp.ne.s32.totalorder %s2118_s15, %s1459_s20  ;;  %p1467_p1 = scmp.lt.s32.totalorder %s1465_s29, %s1459_s20 }
  0x26   : > { %1384 = vmatprep.subr.mxu1 %v1521_v40  ;;  %v1784_v58 = vld [vmem:[%s2181_s3] ss:$0 sm:$0xff] }
  0x27   : > { %1385 = vmatpush3.msra.mxu1 %v785_v47  ;;  %v1791_v62 = vld [vmem:[%s2182_s4] ss:$0 sm:$0xff]  ;;  %p1461_p12 = pnand %p1460_p11, %p1604_p5  ;;  %p1468_p2 = por %p1467_p1, %p1466_p0 }
  0x28   : > { %1328 = vmatmul.mubr.msk.f32.gmra.mxu0 %vm337_vm0, %v300_v11  ;;  %1386 = vmatprep.subr.mxu1 %v1521_v40 }
  0x29   : > { %1330 = vmatprep.mubr.msk.f32.mxu0 %vm337_vm0, %v301_v12  ;;  %1387 = vmatpush3.msra.mxu1 %v784_v48  ;;  %p1462_p13 = pneg %p1461_p12 }
  0x2a   : > { %1388 = vmatprep.subr.mxu1 %v1521_v40 }
  0x2b   : > { %1389 = vmatpush3.msra.mxu1 %v783_v49  ;;  %p1469_p3 = pnand %p1468_p2, %p1462_p13 }
  0x2c   : > { %1331 = vmatmul.mubr.msk.f32.gmra.mxu0 %vm337_vm0, %v302_v13  ;;  %1390 = vmatprep.subr.mxu1 %v1521_v40 }
  0x2d   : > { %1333 = vmatprep.mubr.msk.f32.mxu0 %vm337_vm0, %v303_v14  ;;  %1391 = vmatpush3.msra.mxu1 %v782_v50 }
  0x2e   : > { %1392 = vmatprep.subr.mxu1 %v1521_v40 }
  0x2f   : > { %1393 = vmatpush3.msra.mxu1 %v781_v51 }
  0x30   : > { %1334 = vmatmul.mubr.msk.f32.gmra.mxu0 %vm337_vm0, %v304_v15  ;;  %1394 = vmatprep.subr.mxu1 %v1521_v40 }
  0x31   : > { %1336 = vmatprep.mubr.msk.f32.mxu0 %vm337_vm0, %v305_v16  ;;  %1395 = vmatpush3.msra.mxu1 %v780_v52 }
  0x32   : > { %1396 = vmatprep.subr.mxu1 %v1521_v40 }
  0x33   : > { %1397 = vmatpush3.msra.mxu1 %v779_v53 }
  0x34   : > { %1337 = vmatmul.mubr.msk.f32.gmra.mxu0 %vm337_vm0, %v306_v17  ;;  %1398 = vmatprep.subr.mxu1 %v1521_v40 }
  0x35   : > { %1339 = vmatprep.mubr.msk.f32.mxu0 %vm337_vm0, %v307_v18  ;;  %1399 = vmatpush3.msra.mxu1 %v778_v54 }
  0x36   : > { %1400 = vmatprep.subr.mxu1 %v1521_v40 }
  0x37   : > { %1401 = vmatpush3.msra.mxu1 %v777_v55 }
  0x38   : > { %1340 = vmatmul.mubr.msk.f32.gmra.mxu0 %vm337_vm0, %v308_v19  ;;  %1402 = vmatprep.subr.mxu1 %v1521_v40 }
  0x39   : > { %1342 = vmatprep.mubr.msk.f32.mxu0 %vm337_vm0, %v309_v20  ;;  %1403 = vmatpush3.msra.mxu1 %v776_v56 }
  0x3a   : > { %1407 = vmatprep.subr.mxu1 %v1521_v40 }
  0x3c   : > { %1343 = vmatmul.mubr.msk.f32.gmra.mxu0 %vm337_vm0, %v310_v21 }
  0x3d   : > { %1345 = vmatprep.mubr.msk.f32.mxu0 %vm337_vm0, %v311_v22 }
  0x40   : > { %1346 = vmatmul.mubr.msk.f32.gmra.mxu0 %vm337_vm0, %v312_v23 }
  0x41   : > { %1348 = vmatprep.mubr.msk.f32.mxu0 %vm337_vm0, %v313_v24 }
  0x44   : > { %1349 = vmatmul.mubr.msk.f32.gmra.mxu0 %vm337_vm0, %v314_v25 }
  0x45   : > { %1351 = vmatprep.mubr.msk.f32.mxu0 %vm337_vm0, %v315_v26 }
  0x48   : > { %1352 = vmatmul.mubr.msk.f32.gmra.mxu0 %vm337_vm0, %v316_v27 }
  0x49   : > { %1354 = vmatprep.mubr.msk.f32.mxu0 %vm337_vm0, %v317_v28 }
  0x4c   : > { %1355 = vmatmul.mubr.msk.f32.gmra.mxu0 %vm337_vm0, %v318_v29 }
  0x4d   : > { %1357 = vmatprep.mubr.msk.f32.mxu0 %vm337_vm0, %v319_v30 }
  0x50   : > { %1358 = vmatmul.mubr.msk.f32.gmra.mxu0 %vm337_vm0, %v320_v31 }
  0x51   : > { %1360 = vmatprep.mubr.msk.f32.mxu0 %vm337_vm0, %v321_v32 }
  0x54   : > { %1361 = vmatmul.mubr.msk.f32.gmra.mxu0 %vm337_vm0, %v322_v33 }
  0x55   : > { %1363 = vmatprep.mubr.msk.f32.mxu0 %vm337_vm0, %v323_v34 }
  0x58   : > { %1364 = vmatmul.mubr.msk.f32.gmra.mxu0 %vm337_vm0, %v324_v35 }
  0x59   : > { %1366 = vmatprep.mubr.msk.f32.mxu0 %vm337_vm0, %v325_v36 }
  0x5c   : > { %1367 = vmatmul.mubr.msk.f32.gmra.mxu0 %vm337_vm0, %v326_v37 }
  0x5d   : > { %1369 = vmatprep.mubr.msk.f32.mxu0 %vm337_vm0, %v327_v38 }
  0x60   : > { %1370 = vmatmul.mubr.msk.f32.gmra.mxu0 %vm337_vm0, %v328_v39 }
  0xe4   : > { %v1326_v57 = vpop.f32.mrf.mxu0 }
  0xe5   : > { %v667_v60 = vmul.f32 %v1326_v57, %v1784_v58 }
  0xe6   : > { %v500_v59 = vpop.f32.mrf.mxu0 }
  0xe7   : > { %v666_v61 = vmul.f32 %v1784_v58, %v500_v59  ;;  %v1797_v2 = vadd.f32 %v1791_v62, %v667_v60 }
  0xe8   : > { %v1329_v63 = vpop.f32.mrf.mxu0 }
  0xe9   : > { %v1794_v0 = vadd.f32 %v1791_v62, %v666_v61  ;;  %v669_v3 = vmul.f32 %v1329_v63, %v1784_v58 }
  0xea   : > { %v510_v1 = vpop.f32.mrf.mxu0 }
  0xeb   : > { %v668_v4 = vmul.f32 %v1784_v58, %v510_v1  ;;  %v737_v6 = vadd.f32 %v1797_v2, %v1794_v0  ;;  %v1807_v9 = vadd.f32 %v1791_v62, %v669_v3 }
  0xec   : > { %v1332_v5 = vpop.f32.mrf.mxu0 }
  0xed   : > { %v1804_v7 = vadd.f32 %v1791_v62, %v668_v4  ;;  %v671_v11 = vmul.f32 %v1332_v5, %v1784_v58 }
  0xee   : > { %v520_v8 = vpop.f32.mrf.mxu0 }
  0xef   : > { %v738_v10 = vadd.f32 %v737_v6, %v1804_v7  ;;  %v670_v12 = vmul.f32 %v1784_v58, %v520_v8  ;;  %v1817_v17 = vadd.f32 %v1791_v62, %v671_v11 }
  0xf0   : > { %v1335_v13 = vpop.f32.mrf.mxu0 }
  0xf1   : > { %v1813_v14 = vadd.f32 %v1791_v62, %v670_v12  ;;  %v739_v15 = vadd.f32 %v738_v10, %v1807_v9  ;;  %v673_v19 = vmul.f32 %v1335_v13, %v1784_v58 }
  0xf2   : > { %v530_v16 = vpop.f32.mrf.mxu0 }
  0xf3   : > { %v740_v18 = vadd.f32 %v739_v15, %v1813_v14  ;;  %v672_v20 = vmul.f32 %v1784_v58, %v530_v16  ;;  %v1827_v25 = vadd.f32 %v1791_v62, %v673_v19 }
  0xf4   : > { %v1338_v21 = vpop.f32.mrf.mxu0 }
  0xf5   : > { %v1823_v22 = vadd.f32 %v1791_v62, %v672_v20  ;;  %v741_v23 = vadd.f32 %v740_v18, %v1817_v17  ;;  %v675_v27 = vmul.f32 %v1338_v21, %v1784_v58 }
  0xf6   : > { %v540_v24 = vpop.f32.mrf.mxu0 }
  0xf7   : > { %v742_v26 = vadd.f32 %v741_v23, %v1823_v22  ;;  %v674_v28 = vmul.f32 %v1784_v58, %v540_v24  ;;  %v1837_v33 = vadd.f32 %v1791_v62, %v675_v27 }
  0xf8   : > { %v1341_v29 = vpop.f32.mrf.mxu0 }
  0xf9   : > { %v1833_v30 = vadd.f32 %v1791_v62, %v674_v28  ;;  %v743_v31 = vadd.f32 %v742_v26, %v1827_v25  ;;  %v677_v35 = vmul.f32 %v1341_v29, %v1784_v58 }
  0xfa   : > { %v550_v32 = vpop.f32.mrf.mxu0 }
  0xfb   : > { %v744_v34 = vadd.f32 %v743_v31, %v1833_v30  ;;  %v676_v36 = vmul.f32 %v1784_v58, %v550_v32  ;;  %v1847_v42 = vadd.f32 %v1791_v62, %v677_v35 }
  0xfc   : > { %v1344_v37 = vpop.f32.mrf.mxu0 }
  0xfd   : > { %v1843_v38 = vadd.f32 %v1791_v62, %v676_v36  ;;  %v745_v39 = vadd.f32 %v744_v34, %v1837_v33  ;;  %v679_v44 = vmul.f32 %v1344_v37, %v1784_v58 }
  0xfe   : > { %v560_v41 = vpop.f32.mrf.mxu0 }
  0xff   : > { %v746_v43 = vadd.f32 %v745_v39, %v1843_v38  ;;  %v678_v45 = vmul.f32 %v1784_v58, %v560_v41  ;;  %v1857_v50 = vadd.f32 %v1791_v62, %v679_v44 }
 0x100   : > { %v1347_v46 = vpop.f32.mrf.mxu0 }
 0x101   : > { %v1853_v47 = vadd.f32 %v1791_v62, %v678_v45  ;;  %v747_v48 = vadd.f32 %v746_v43, %v1847_v42  ;;  %v681_v52 = vmul.f32 %v1347_v46, %v1784_v58 }
 0x102   : > { %v570_v49 = vpop.f32.mrf.mxu0 }
 0x103   : > { %v748_v51 = vadd.f32 %v747_v48, %v1853_v47  ;;  %v680_v53 = vmul.f32 %v1784_v58, %v570_v49  ;;  %v1867_v59 = vadd.f32 %v1791_v62, %v681_v52 }
 0x104   : > { %v1350_v54 = vpop.f32.mrf.mxu0 }
 0x105   : > { %v1863_v55 = vadd.f32 %v1791_v62, %v680_v53  ;;  %v749_v56 = vadd.f32 %v748_v51, %v1857_v50  ;;  %v683_v61 = vmul.f32 %v1350_v54, %v1784_v58 }
 0x106   : > { %v580_v57 = vpop.f32.mrf.mxu0 }
 0x107   : > { %v750_v60 = vadd.f32 %v749_v56, %v1863_v55  ;;  %v682_v63 = vmul.f32 %v1784_v58, %v580_v57  ;;  %v1877_v6 = vadd.f32 %v1791_v62, %v683_v61 }
 0x108   : > { %v1353_v1 = vpop.f32.mrf.mxu0 }
 0x109   : > { %v1873_v3 = vadd.f32 %v1791_v62, %v682_v63  ;;  %v751_v4 = vadd.f32 %v750_v60, %v1867_v59  ;;  %v685_v10 = vmul.f32 %v1353_v1, %v1784_v58 }
 0x10a   : > { %v590_v5 = vpop.f32.mrf.mxu0 }
 0x10b   : > { %v752_v8 = vadd.f32 %v751_v4, %v1873_v3  ;;  %v684_v11 = vmul.f32 %v1784_v58, %v590_v5  ;;  %v1887_v18 = vadd.f32 %v1791_v62, %v685_v10 }
 0x10c   : > { %v1356_v12 = vpop.f32.mrf.mxu0 }
 0x10d   : > { %v1883_v13 = vadd.f32 %v1791_v62, %v684_v11  ;;  %v753_v15 = vadd.f32 %v752_v8, %v1877_v6  ;;  %v687_v20 = vmul.f32 %v1356_v12, %v1784_v58 }
 0x10e   : > { %v600_v16 = vpop.f32.mrf.mxu0 }
 0x10f   : > { %v754_v19 = vadd.f32 %v753_v15, %v1883_v13  ;;  %v686_v21 = vmul.f32 %v1784_v58, %v600_v16  ;;  %v1897_v28 = vadd.f32 %v1791_v62, %v687_v20 }
 0x110   : > { %v1359_v23 = vpop.f32.mrf.mxu0 }
 0x111   : > { %v1893_v24 = vadd.f32 %v1791_v62, %v686_v21  ;;  %v755_v26 = vadd.f32 %v754_v19, %v1887_v18  ;;  %v689_v31 = vmul.f32 %v1359_v23, %v1784_v58 }
 0x112   : > { %v610_v27 = vpop.f32.mrf.mxu0 }
 0x113   : > { %v756_v29 = vadd.f32 %v755_v26, %v1893_v24  ;;  %v688_v32 = vmul.f32 %v1784_v58, %v610_v27  ;;  %v1907_v39 = vadd.f32 %v1791_v62, %v689_v31 }
 0x114   : > { %v1362_v34 = vpop.f32.mrf.mxu0 }
 0x115   : > { %v1903_v35 = vadd.f32 %v1791_v62, %v688_v32  ;;  %v757_v36 = vadd.f32 %v756_v29, %v1897_v28  ;;  %v691_v43 = vmul.f32 %v1362_v34, %v1784_v58 }
 0x116   : > { %v620_v37 = vpop.f32.mrf.mxu0 }
 0x117   : > { %v758_v41 = vadd.f32 %v757_v36, %v1903_v35  ;;  %v690_v44 = vmul.f32 %v1784_v58, %v620_v37  ;;  %v1917_v51 = vadd.f32 %v1791_v62, %v691_v43 }
 0x118   : > { %v1365_v45 = vpop.f32.mrf.mxu0 }
 0x119   : > { %v1913_v46 = vadd.f32 %v1791_v62, %v690_v44  ;;  %v759_v48 = vadd.f32 %v758_v41, %v1907_v39  ;;  %v693_v53 = vmul.f32 %v1365_v45, %v1784_v58 }
 0x11a   : > { %v630_v49 = vpop.f32.mrf.mxu0 }
 0x11b   : > { %v760_v52 = vadd.f32 %v759_v48, %v1913_v46  ;;  %v692_v54 = vmul.f32 %v1784_v58, %v630_v49  ;;  %v1927_v63 = vadd.f32 %v1791_v62, %v693_v53 }
 0x11c   : > { %v1368_v56 = vpop.f32.mrf.mxu0 }
 0x11d   : > { %v1923_v57 = vadd.f32 %v1791_v62, %v692_v54  ;;  %v761_v60 = vadd.f32 %v760_v52, %v1917_v51  ;;  %v695_v4 = vmul.f32 %v1368_v56, %v1784_v58  ;;  %v944_v56 = vlaneseq }
 0x11e   : > { %v640_v61 = vpop.f32.mrf.mxu0 }
 0x11f   : > { %v762_v1 = vadd.f32 %v761_v60, %v1923_v57  ;;  %v694_v5 = vmul.f32 %v1784_v58, %v640_v61  ;;  %v1937_v15 = vadd.f32 %v1791_v62, %v695_v4  ;;  %v945_v60 = vshrl.u32 %v944_v56, 7 }
 0x120   : > { %v1371_v8 = vpop.f32.mrf.mxu0 }
 0x121   : > { %v1933_v10 = vadd.f32 %v1791_v62, %v694_v5  ;;  %v763_v11 = vadd.f32 %v762_v1, %v1927_v63  ;;  %v697_v19 = vmul.f32 %v1371_v8, %v1784_v58  ;;  %v946_v61 = vsub.s32 0, %v945_v60  ;;  %v1003_v60 = vld [vmem:[%s1961_s8 + $0xb8] sm:$0xff] }
 0x122   : > { %v650_v12 = vpop.f32.mrf.mxu0 }
 0x123   : > { %v764_v16 = vadd.f32 %v763_v11, %v1933_v10  ;;  %v696_v20 = vmul.f32 %v1784_v58, %v650_v12  ;;  %v1947_v26 = vadd.f32 %v1791_v62, %v697_v19  ;;  %v863_v58 = vld [vmem:[%s2184_s6] sm:$0xff] }
 0x125   : > { %v1943_v21 = vadd.f32 %v1791_v62, %v696_v20  ;;  %v765_v23 = vadd.f32 %v764_v16, %v1937_v15 }
 0x127   : > { %v766_v27 = vadd.f32 %v765_v23, %v1943_v21  ;;  %v981_v23 = vld [vmem:[%s1961_s8 + $0x8] sm:$0xff] }
 0x129   : > { %v767_v29 = vadd.f32 %v766_v27, %v1947_v26  ;;  %v982_v27 = vld [vmem:[%s1961_s8 + $0x10] sm:$0xff] }
 0x12b   : > { %v768_v31 = vrot.slane %v767_v29, 4 }
 0x12d   : > { %v769_v32 = vadd.f32 %v768_v31, %v767_v29  ;;  %v986_v31 = vld [vmem:[%s1961_s8 + $0x30] sm:$0xff] }
 0x12f   : > { %v770_v34 = vrot.slane %v769_v32, 2 }
 0x131   : > { %v771_v36 = vadd.f32 %v770_v34, %v769_v32 }
 0x133   : > { %v772_v37 = vrot.slane %v771_v36, 1 }
 0x135   : > { %v773_v41 = vadd.f32 %v772_v37, %v771_v36 }
 0x137   : > { %v775_v43 = vmul.f32 0.00390625, %v773_v41 }
 0x139   : > { %1405 = vmatmul.mubr.f32.vlgmr.msra.gmra.mxu1 %v775_v43 }
 0x13a   : > { %1408 = vmatpush3.msra.mxu1 %v863_v58  ;;  %1409 = vmatprep.mubr.msk.f32.mxu1 %vm1522_vm1, %v1521_v40  ;;  %v992_v58 = vld [vmem:[%s1961_s8 + $0x60] sm:$0xff] }
 0x1f9   : > { %v858_v62 = vpop.f32.mrf.mxu1 }
 0x1fa   : > { %v862_v44 = vmax.f32 %v858_v62, 0.0 }
 0x1fb   : > { %v1406_v45 = vpop.f32.mrf.mxu1 }
 0x1fc   : > { %1410 = vmatmul.mubr.msk.f32.vlgmr.msra.gmra.mxu1 %vm864_vm2, %v862_v44 }
 0x2bc   : > { %v934_v48 = vpop.f32.mrf.mxu1 }
 0x2bd   : > { %v1240_v49 = vmul.f32 -1.442695, %v934_v48 }
 0x2be   : > { %v1411_v52 = vpop.f32.mrf.mxu1 }
 0x2bf   : > { %1455 = vpow2.f32 %v1240_v49 }
 0x2cc   : > { %v1456_v53 = vpop.eup %1455 }
 0x2cd   : > { %v941_v54 = vadd.f32 1.0, %v1456_v53 }
 0x2cf   : > { %1457 = vrcp.f32 %v941_v54 }
 0x2dc   : > { %v1458_v1 = vpop.eup %1457 }
 0x2dd   : > { %v947_v4 = vrot.slane %v1458_v1, %v946_v61 }
 0x2df   : > { %v948_v40 = vmul.f32 %v947_v4, %v1794_v0  ;;  %v949_v5 = vmul.f32 %v947_v4, %v1797_v2  ;;  %v950_v8 = vmul.f32 %v947_v4, %v1804_v7  ;;  %v951_v11 = vmul.f32 %v947_v4, %v1807_v9 }
 0x2e0   : > { %v952_v12 = vmul.f32 %v947_v4, %v1813_v14  ;;  %v953_v16 = vmul.f32 %v947_v4, %v1817_v17  ;;  %v954_v19 = vmul.f32 %v947_v4, %v1823_v22  ;;  %v955_v20 = vmul.f32 %v947_v4, %v1827_v25  ;;  %v980_v14 = vld [vmem:[%s1961_s8] sm:$0xff]  ;;  %v983_v17 = vld [vmem:[%s1961_s8 + $0x18] sm:$0xff] }
 0x2e1   : > { %v956_v0 = vmul.f32 %v947_v4, %v1833_v30  ;;  %v957_v2 = vmul.f32 %v947_v4, %v1837_v33  ;;  %v958_v7 = vmul.f32 %v947_v4, %v1843_v38  ;;  %v959_v9 = vmul.f32 %v947_v4, %v1847_v42  ;;  %v985_v33 = vld [vmem:[%s1961_s8 + $0x28] sm:$0xff]  ;;  %v984_v38 = vld [vmem:[%s1961_s8 + $0x20] sm:$0xff]  ;;  %v987_v42 = vld [vmem:[%s1961_s8 + $0x38] sm:$0xff] }
 0x2e2   : > { %v960_v22 = vmul.f32 %v947_v4, %v1853_v47  ;;  %v961_v25 = vmul.f32 %v947_v4, %v1857_v50  ;;  %v962_v29 = vmul.f32 %v947_v4, %v1863_v55  ;;  %v963_v30 = vmul.f32 %v947_v4, %v1867_v59  ;;  %v989_v50 = vld [vmem:[%s1961_s8 + $0x48] sm:$0xff]  ;;  %v988_v55 = vld [vmem:[%s1961_s8 + $0x40] sm:$0xff]  ;;  %v991_v59 = vld [vmem:[%s1961_s8 + $0x58] sm:$0xff] }
 0x2e3   : > { %v964_v32 = vmul.f32 %v947_v4, %v1873_v3  ;;  %v965_v34 = vmul.f32 %v947_v4, %v1877_v6  ;;  %v966_v36 = vmul.f32 %v947_v4, %v1883_v13  ;;  %v967_v47 = vmul.f32 %v947_v4, %v1887_v18  ;;  %v990_v6 = vld [vmem:[%s1961_s8 + $0x50] sm:$0xff]  ;;  %v993_v13 = vld [vmem:[%s1961_s8 + $0x68] sm:$0xff] }
 0x2e4   : > { %v968_v37 = vmul.f32 %v947_v4, %v1893_v24  ;;  %v969_v41 = vmul.f32 %v947_v4, %v1897_v28  ;;  %v970_v43 = vmul.f32 %v947_v4, %v1903_v35  ;;  %v971_v3 = vmul.f32 %v947_v4, %v1907_v39  ;;  %v995_v28 = vld [vmem:[%s1961_s8 + $0x78] sm:$0xff]  ;;  %v994_v35 = vld [vmem:[%s1961_s8 + $0x70] sm:$0xff]  ;;  %v997_v39 = vld [vmem:[%s1961_s8 + $0x88] sm:$0xff] }
 0x2e5   : > { %v972_v18 = vmul.f32 %v947_v4, %v1913_v46  ;;  %v973_v62 = vmul.f32 %v947_v4, %v1917_v51  ;;  %v974_v44 = vmul.f32 %v947_v4, %v1923_v57  ;;  %v975_v24 = vmul.f32 %v947_v4, %v1927_v63  ;;  %v996_v51 = vld [vmem:[%s1961_s8 + $0x80] sm:$0xff]  ;;  %v999_v57 = vld [vmem:[%s1961_s8 + $0x98] sm:$0xff]  ;;  %v998_v63 = vld [vmem:[%s1961_s8 + $0x90] sm:$0xff] }
 0x2e6   : > { %v976_v45 = vmul.f32 %v947_v4, %v1933_v10  ;;  %v977_v48 = vmul.f32 %v947_v4, %v1937_v15  ;;  %v978_v49 = vmul.f32 %v947_v4, %v1943_v21  ;;  %v979_v46 = vmul.f32 %v947_v4, %v1947_v26  ;;  %v1001_v10 = vld [vmem:[%s1961_s8 + $0xa8] sm:$0xff]  ;;  %v1000_v15 = vld [vmem:[%s1961_s8 + $0xa0] sm:$0xff]  ;;  %v1002_v4 = vld [vmem:[%s1961_s8 + $0xb0] sm:$0xff] }
 0x2e7   : > { %v1012_v52 = vadd.f32 %v980_v14, %v948_v40  ;;  %v1013_v53 = vadd.f32 %v981_v23, %v949_v5  ;;  %v1014_v54 = vadd.f32 %v982_v27, %v950_v8  ;;  %v1015_v56 = vadd.f32 %v983_v17, %v951_v11  ;;  %v1005_v14 = vld [vmem:[%s1961_s8 + $0xc8] sm:$0xff]  ;;  %v1004_v40 = vld [vmem:[%s1961_s8 + $0xc0] sm:$0xff]  ;;  %v1007_v17 = vld [vmem:[%s1961_s8 + $0xd8] sm:$0xff] }
 0x2e8   : > { %v1016_v21 = vadd.f32 %v984_v38, %v952_v12  ;;  %v1017_v61 = vadd.f32 %v985_v33, %v953_v16  ;;  %v1018_v26 = vadd.f32 %v986_v31, %v954_v19  ;;  %v1019_v1 = vadd.f32 %v987_v42, %v955_v20  ;;  %v1006_v27 = vld [vmem:[%s1961_s8 + $0xd0] sm:$0xff]  ;;  %v1009_v12 = vld [vmem:[%s1961_s8 + $0xe8] sm:$0xff]  ;;  %v1008_v33 = vld [vmem:[%s1961_s8 + $0xe0] sm:$0xff] }
 0x2e9   : > { %v1020_v5 = vadd.f32 %v988_v55, %v956_v0  ;;  %v1021_v8 = vadd.f32 %v989_v50, %v957_v2  ;;  %v1022_v11 = vadd.f32 %v990_v6, %v958_v7  ;;  %v1023_v23 = vadd.f32 %v991_v59, %v959_v9  ;;  %v1011_v42 = vld [vmem:[%s1961_s8 + $0xf8] sm:$0xff]  ;;  %v1010_v0 = vld [vmem:[%s1961_s8 + $0xf0] sm:$0xff] }
 0x2ea   : > { %v2025_v38 = vadd.f32 %v992_v58, %v960_v22  ;;  %v2027_v16 = vadd.f32 %v993_v13, %v961_v25  ;;  %v2029_v19 = vadd.f32 %v994_v35, %v962_v29  ;;  %v2031_v20 = vadd.f32 %v995_v28, %v963_v30 }
 0x2eb   : > { %v2040_v2 = vadd.f32 %v996_v51, %v964_v32  ;;  %v2042_v7 = vadd.f32 %v997_v39, %v965_v34  ;;  %v2044_v9 = vadd.f32 %v998_v63, %v966_v36  ;;  %v2046_v22 = vadd.f32 %v999_v57, %v967_v47 }
 0x2ec   : > { %v2048_v25 = vadd.f32 %v1000_v15, %v968_v37  ;;  %v2050_v29 = vadd.f32 %v1001_v10, %v969_v41  ;;  %v2052_v30 = vadd.f32 %v1002_v4, %v970_v43  ;;  %v2054_v31 = vadd.f32 %v1003_v60, %v971_v3 }
 0x2ed   : > { %v2056_v50 = vadd.f32 %v1004_v40, %v972_v18  ;;  %v2058_v55 = vadd.f32 %v1005_v14, %v973_v62  ;;  %v2060_v32 = vadd.f32 %v1006_v27, %v974_v44  ;;  %v2062_v34 = vadd.f32 %v1007_v17, %v975_v24 }
 0x2ee   : > { %v2064_v36 = vadd.f32 %v1008_v33, %v976_v45  ;;  %v2066_v47 = vadd.f32 %v1009_v12, %v977_v48  ;;  %v2068_v59 = vadd.f32 %v1010_v0, %v978_v49  ;;  %v2070_v37 = vadd.f32 %v1011_v42, %v979_v46 }
 0x2ef   : > { %v1044_v41 = vmax.f32 %v1012_v52, 0.0  ;;  %v1045_v43 = vmax.f32 %v1013_v53, 0.0  ;;  %v1046_v3 = vmax.f32 %v1014_v54, 0.0  ;;  %v1047_v6 = vmax.f32 %v1015_v56, 0.0 }
 0x2f0   : > { %v1048_v13 = vmax.f32 %v1016_v21, 0.0  ;;  %v1049_v58 = vmax.f32 %v1017_v61, 0.0  ;;  %v1050_v18 = vmax.f32 %v1018_v26, 0.0  ;;  %v1051_v62 = vmax.f32 %v1019_v1, 0.0 }
 0x2f1   : > { %v1052_v44 = vmax.f32 %v1020_v5, 0.0  ;;  %v1053_v24 = vmax.f32 %v1021_v8, 0.0  ;;  %v1054_v28 = vmax.f32 %v1022_v11, 0.0  ;;  %v1055_v35 = vmax.f32 %v1023_v23, 0.0  ;;  %1076 = vst [vmem:[%s2073_s13] sm:$0xff] %v1044_v41  ;;  %1077 = vst [vmem:[%s2073_s13 + $0x8] sm:$0xff] %v1045_v43 }
 0x2f2   : > { %1078 = vst [vmem:[%s2073_s13 + $0x10] sm:$0xff] %v1046_v3  ;;  %1079 = vst [vmem:[%s2073_s13 + $0x18] sm:$0xff] %v1047_v6  ;;  %v1056_v39 = vmax.f32 %v2025_v38, 0.0  ;;  %v1057_v45 = vmax.f32 %v2027_v16, 0.0  ;;  %v1058_v48 = vmax.f32 %v2029_v19, 0.0  ;;  %v1059_v49 = vmax.f32 %v2031_v20, 0.0 }
 0x2f3   : > { %1080 = vst [vmem:[%s2073_s13 + $0x20] sm:$0xff] %v1048_v13  ;;  %1081 = vst [vmem:[%s2073_s13 + $0x28] sm:$0xff] %v1049_v58  ;;  %v1060_v46 = vmax.f32 %v2040_v2, 0.0  ;;  %v1061_v51 = vmax.f32 %v2042_v7, 0.0  ;;  %v1062_v57 = vmax.f32 %v2044_v9, 0.0  ;;  %v1063_v63 = vmax.f32 %v2046_v22, 0.0 }
 0x2f4   : > { %1082 = vst [vmem:[%s2073_s13 + $0x30] sm:$0xff] %v1050_v18  ;;  %1083 = vst [vmem:[%s2073_s13 + $0x38] sm:$0xff] %v1051_v62  ;;  %v1064_v52 = vmax.f32 %v2048_v25, 0.0  ;;  %v1065_v53 = vmax.f32 %v2050_v29, 0.0  ;;  %v1066_v54 = vmax.f32 %v2052_v30, 0.0  ;;  %v1067_v56 = vmax.f32 %v2054_v31, 0.0 }
 0x2f5   : > { %1084 = vst [vmem:[%s2073_s13 + $0x40] sm:$0xff] %v1052_v44  ;;  %1085 = vst [vmem:[%s2073_s13 + $0x48] sm:$0xff] %v1053_v24  ;;  %v1068_v10 = vmax.f32 %v2056_v50, 0.0  ;;  %v1069_v15 = vmax.f32 %v2058_v55, 0.0  ;;  %v1070_v60 = vmax.f32 %v2060_v32, 0.0  ;;  %v1071_v21 = vmax.f32 %v2062_v34, 0.0 }
 0x2f6   : > { %1086 = vst [vmem:[%s2073_s13 + $0x50] sm:$0xff] %v1054_v28  ;;  %1087 = vst [vmem:[%s2073_s13 + $0x58] sm:$0xff] %v1055_v35  ;;  %v1072_v61 = vmax.f32 %v2064_v36, 0.0  ;;  %v1073_v26 = vmax.f32 %v2066_v47, 0.0  ;;  %v1074_v1 = vmax.f32 %v2068_v59, 0.0  ;;  %v1075_v4 = vmax.f32 %v2070_v37, 0.0 }
 0x2f7   : > { %1088 = vst [vmem:[%s2073_s13 + $0x60] sm:$0xff] %v1056_v39  ;;  %1089 = vst [vmem:[%s2073_s13 + $0x68] sm:$0xff] %v1057_v45 }
 0x2f8   : > { %1090 = vst [vmem:[%s2073_s13 + $0x70] sm:$0xff] %v1058_v48  ;;  %1091 = vst [vmem:[%s2073_s13 + $0x78] sm:$0xff] %v1059_v49 }
 0x2f9   : > { %1092 = vst [vmem:[%s2073_s13 + $0x80] sm:$0xff] %v1060_v46  ;;  %1093 = vst [vmem:[%s2073_s13 + $0x88] sm:$0xff] %v1061_v51 }
 0x2fa   : > { %1094 = vst [vmem:[%s2073_s13 + $0x90] sm:$0xff] %v1062_v57  ;;  %1095 = vst [vmem:[%s2073_s13 + $0x98] sm:$0xff] %v1063_v63 }
 0x2fb   : > { %1096 = vst [vmem:[%s2073_s13 + $0xa0] sm:$0xff] %v1064_v52  ;;  %1097 = vst [vmem:[%s2073_s13 + $0xa8] sm:$0xff] %v1065_v53 }
 0x2fc   : > { %1098 = vst [vmem:[%s2073_s13 + $0xb0] sm:$0xff] %v1066_v54  ;;  %1099 = vst [vmem:[%s2073_s13 + $0xb8] sm:$0xff] %v1067_v56 }
 0x2fd   : > { %1100 = vst [vmem:[%s2073_s13 + $0xc0] sm:$0xff] %v1068_v10  ;;  %1101 = vst [vmem:[%s2073_s13 + $0xc8] sm:$0xff] %v1069_v15 }
 0x2fe   : > { %1102 = vst [vmem:[%s2073_s13 + $0xd0] sm:$0xff] %v1070_v60  ;;  %1103 = vst [vmem:[%s2073_s13 + $0xd8] sm:$0xff] %v1071_v21 }
 0x2ff   : > { %1104 = vst [vmem:[%s2073_s13 + $0xe0] sm:$0xff] %v1072_v61  ;;  %1105 = vst [vmem:[%s2073_s13 + $0xe8] sm:$0xff] %v1073_v26 }
 0x300   : > { %1106 = vst [vmem:[%s2073_s13 + $0xf0] sm:$0xff] %v1074_v1  ;;  %1107 = vst [vmem:[%s2073_s13 + $0xf8] sm:$0xff] %v1075_v4 }
 0x301   : > { %1472 = shalt.err (!%p1469_p3)
}
 0x302   : > { %s1473_s9 = scalar_lea.hbm %s2116_s17, 4096  ;;  %s1477_s22 = scalar_lea.hbm %s2185_s7, 8192 }
 0x303   : > { %p1474_p4 = scmp.ne.s32.totalorder %s2116_s17, %s1473_s9  ;;  %p1478_p9 = scmp.lt.s32.totalorder %s2116_s17, %s2185_s7 }
 0x304   : > { %p1479_p10 = scmp.lt.s32.totalorder %s1477_s22, %s1473_s9 }
 0x305   : > { %p1475_p7 = pnand %p1474_p4, %p1604_p5 }
 0x306   : > { %p1480_p11 = por %p1479_p10, %p1478_p9 }
 0x307   : > { %p1476_p8 = pneg %p1475_p7 }
 0x309   : > { %p1481_p12 = pnand %p1480_p11, %p1476_p8 }
 0x30b   : > { %1484 = shalt.err (!%p1481_p12)
}
 0x30c   : > { %s1524_s28 = smov 128   ;;  %s1525_s16 = smov 8  }
 0x30d   : > { %1412 = dma.vmem_to_hbm [thread:$0]  (%p1604_p5), %s2118_s15, 4096, %s2116_s17, %s2138_s18, %s1524_s28, %s1524_s28, %s1525_s16  }
 0x30e PF: > { %p1418_p13 = scmp.ge.s32.totalorder %s1519_s27, 2  ;;  %s1137_s20 = sand.u32 1, %s1507_s24  }
 0x30f   : > { %s1138_s21 = scalar_lea.sflag [#allocation3], %s1137_s20 }
 0x310   : > { %p1415_p0 = pnand %p1418_p13, %p1608_p6 }
 0x312   : > { %p1416_p1 = pneg %p1415_p0 }
 0x314   : > { %1502 = dma.done.wait (%p1416_p1), %s1138_s21, 4096  }
 0x315   : > { %1504 = vsyncadd (%p1416_p1), %s1138_s21, 4294963200  ;;  %p17_p2 = scmp.ge.s32.totalorder %s1591_s30, 4   ;;  %s2188_s24 = smov %s1511_s25 }
 0x316   : > { %s2189_s25 = smov %s1515_s26  ;;  %s2190_s26 = smov %s1602_s10 }
 0x317   : > { %s2191_s27 = smov %s1591_s30  ;;  %19 = sbr.rel (!%p17_p2) target bundleno = 3 (0x3), region = 86 }
 0x31c   :  { %1143 = vsyncpa [#allocation3], 1 }
 0x31d   :  { %1145 = vsyncpa [#allocation3 + $0x1], 1 }

// kernel: se_bottleneck_forward.4
= control target key start
LH: loop header
LB: loop body
LE: loop exit
PB: predicated region body
PF: predicated region fallthrough
CT: control target
= control target key end

     0   :  { %s4639_s15 = smov 0   ;;  %s6366_s0 = inlined_call_operand.vmem [shape: f32[2,16,16,64], index: 0, kind: input, shape index: {}]   ;;  %s6367_s1 = inlined_call_operand.vmem [shape: f32[9,64,64], index: 1, kind: input, shape index: {}]   ;;  %s6368_s2 = inlined_call_operand.vmem [shape: f32[1,64], index: 2, kind: input, shape index: {}]   ;;  %s6369_s3 = inlined_call_operand.vmem [shape: f32[1,64], index: 3, kind: input, shape index: {}]   ;;  %s6370_s4 = inlined_call_operand.vmem [shape: f32[2,16,16,64], index: 4, kind: output, shape index: {}]  }
   0x1 LB: > { %s3277_s16 = sadd.s32 4294967295, %s4611_s15   ;;  %p3281_p0 = scmp.ge.s32.totalorder %s4611_s15, 1  ;;  %s4611_s15 = sphi %s4639_s15, %s14_s15  }
   0x2   : > { %p162_p1 = scmp.lt.s32.totalorder %s4611_s15, 3 }
   0x4   : > { %p163_p2 = pnand %p3281_p0, %p162_p1 }
   0x6   : > { %166 = sbr.rel (%p163_p2) target bundleno = 538 (0x21a), region = 36 }
   0xb   : > { %v3293_v0 = vld [vmem:[%s6367_s1 + $0xf8] sm:$0xff]  ;;  %v4653_v1 = vld [vmem:[%s6367_s1 + $0xf0] sm:$0xff]  ;;  %p4657_p3 = scmp.lt.s32.totalorder %s3277_s16, 1  ;;  %vm198_vm0 = vcmask 523264   ;;  %v4613_v2 = vmov 0.0   ;;  %vm201_vm1 = vcmask 517120  }
   0xc   : > { %4580 = vmatprep.subr.mxu1 %v3293_v0  ;;  %4004 = vmatprep.subr.mxu0 %v3293_v0  ;;  %227 = vst.msk [vmem:[#allocation2 + $0xd8] sm:$0xff] %vm198_vm0, %v4613_v2  ;;  %228 = vst.msk [vmem:[#allocation2 + $0xe0] sm:$0xff] %vm198_vm0, %v4613_v2  ;;  %v3291_v3 = vld [vmem:[%s6367_s1 + $0xe8] sm:$0xff]  ;;  %v3290_v4 = vld [vmem:[%s6367_s1 + $0xe0] sm:$0xff] }
   0xd   : > { %199 = vst.msk [vmem:[#allocation2] sm:$0xff] %vm198_vm0, %v4613_v2  ;;  %200 = vst.msk [vmem:[#allocation2 + $0x8] sm:$0xff] %vm198_vm0, %v4613_v2  ;;  %4588 = vmatpush3.msra.mxu1 %v3293_v0  ;;  %4005 = vmatpush3.msra.mxu0 %v3293_v0  ;;  %s6463_s16 = smov (!%p4657_p3, %s3277_s16), 1  ;;  %v3289_v5 = vld [vmem:[%s6367_s1 + $0xd8] sm:$0xff]  ;;  %v3288_v6 = vld [vmem:[%s6367_s1 + $0xd0] sm:$0xff] }
   0xe   : > { %203 = vst.msk [vmem:[#allocation2 + $0x18] sm:$0xff] %vm198_vm0, %v4613_v2  ;;  %204 = vst.msk [vmem:[#allocation2 + $0x20] sm:$0xff] %vm198_vm0, %v4613_v2  ;;  %4581 = vmatprep.subr.mxu1 %v4653_v1  ;;  %4006 = vmatprep.subr.mxu0 %v4653_v1  ;;  %s3642_s26 = sshll.u32 %s6463_s16, 8  ;;  %v3287_v13 = vld [vmem:[%s6367_s1 + $0xc8] sm:$0xff]  ;;  %v3286_v20 = vld [vmem:[%s6367_s1 + $0xc0] sm:$0xff] }
   0xf   : > { %206 = vst.msk [vmem:[#allocation2 + $0x30] sm:$0xff] %vm198_vm0, %v4613_v2  ;;  %207 = vst.msk [vmem:[#allocation2 + $0x38] sm:$0xff] %vm198_vm0, %v4613_v2  ;;  %4589 = vmatpush3.msra.mxu1 %v4653_v1  ;;  %4007 = vmatpush3.msra.mxu0 %v4653_v1  ;;  %s4740_s5 = scalar_lea.vmem %s6366_s0, %s3642_s26  ;;  %v362_v35 = vld [vmem:[%s6367_s1 + $0x38] sm:$0xff]  ;;  %v361_v41 = vld [vmem:[%s6367_s1 + $0x30] sm:$0xff]  ;;  %s6162_s8 = scalar_lea.vmem %s6370_s4, %s3642_s26 }
  0x10   : > { %209 = vst.msk [vmem:[#allocation2 + $0x48] sm:$0xff] %vm198_vm0, %v4613_v2  ;;  %210 = vst.msk [vmem:[#allocation2 + $0x50] sm:$0xff] %vm198_vm0, %v4613_v2  ;;  %4582 = vmatprep.subr.mxu1 %v3291_v3  ;;  %4008 = vmatprep.subr.mxu0 %v3291_v3  ;;  %v270_v7 = vld [vmem:[%s4740_s5 + $0x80] sm:$0xff]  ;;  %v271_v9 = vld [vmem:[%s4740_s5 + $0x88] sm:$0xff] }
  0x11   : > { %212 = vst.msk [vmem:[#allocation2 + $0x60] sm:$0xff] %vm198_vm0, %v4613_v2  ;;  %213 = vst.msk [vmem:[#allocation2 + $0x68] sm:$0xff] %vm198_vm0, %v4613_v2  ;;  %4590 = vmatpush3.msra.mxu1 %v3291_v3  ;;  %4009 = vmatpush3.msra.mxu0 %v3291_v3  ;;  %v254_v8 = vld [vmem:[%s4740_s5] sm:$0xff]  ;;  %v255_v10 = vld [vmem:[%s4740_s5 + $0x8] sm:$0xff] }
  0x12   : > { %215 = vst.msk [vmem:[#allocation2 + $0x78] sm:$0xff] %vm198_vm0, %v4613_v2  ;;  %216 = vst.msk [vmem:[#allocation2 + $0x80] sm:$0xff] %vm198_vm0, %v4613_v2  ;;  %4583 = vmatprep.subr.mxu1 %v3290_v4  ;;  %4010 = vmatprep.subr.mxu0 %v3290_v4  ;;  %v272_v11 = vld [vmem:[%s4740_s5 + $0x90] sm:$0xff]  ;;  %v273_v14 = vld [vmem:[%s4740_s5 + $0x98] sm:$0xff] }
  0x13   : > { %218 = vst.msk [vmem:[#allocation2 + $0x90] sm:$0xff] %vm198_vm0, %v4613_v2  ;;  %219 = vst.msk [vmem:[#allocation2 + $0x98] sm:$0xff] %vm198_vm0, %v4613_v2  ;;  %v256_v12 = vld [vmem:[%s4740_s5 + $0x10] sm:$0xff]  ;;  %4591 = vmatpush3.msra.mxu1 %v3290_v4  ;;  %4011 = vmatpush3.msra.mxu0 %v3290_v4  ;;  %v257_v15 = vld [vmem:[%s4740_s5 + $0x18] sm:$0xff] }
  0x14   : > { %221 = vst.msk [vmem:[#allocation2 + $0xa8] sm:$0xff] %vm198_vm0, %v4613_v2  ;;  %222 = vst.msk [vmem:[#allocation2 + $0xb0] sm:$0xff] %vm198_vm0, %v4613_v2  ;;  %v274_v16 = vld [vmem:[%s4740_s5 + $0xa0] sm:$0xff]  ;;  %4584 = vmatprep.subr.mxu1 %v3289_v5  ;;  %4012 = vmatprep.subr.mxu0 %v3289_v5  ;;  %v275_v18 = vld [vmem:[%s4740_s5 + $0xa8] sm:$0xff] }
  0x15   : > { %224 = vst.msk [vmem:[#allocation2 + $0xc0] sm:$0xff] %vm198_vm0, %v4613_v2  ;;  %225 = vst.msk [vmem:[#allocation2 + $0xc8] sm:$0xff] %vm198_vm0, %v4613_v2  ;;  %v258_v17 = vld [vmem:[%s4740_s5 + $0x20] sm:$0xff]  ;;  %v259_v19 = vld [vmem:[%s4740_s5 + $0x28] sm:$0xff]  ;;  %4592 = vmatpush3.msra.mxu1 %v3289_v5  ;;  %4013 = vmatpush3.msra.mxu0 %v3289_v5 }
  0x16   : > { %230 = vst.msk [vmem:[#allocation2 + $0xf0] sm:$0xff] %vm198_vm0, %v4613_v2  ;;  %231 = vst.msk [vmem:[#allocation2 + $0xf8] sm:$0xff] %vm198_vm0, %v4613_v2  ;;  %v276_v21 = vld [vmem:[%s4740_s5 + $0xb0] sm:$0xff]  ;;  %v277_v23 = vld [vmem:[%s4740_s5 + $0xb8] sm:$0xff]  ;;  %4585 = vmatprep.subr.mxu1 %v3288_v6  ;;  %4014 = vmatprep.subr.mxu0 %v3288_v6 }
  0x17   : > { %233 = vst.msk [vmem:[#allocation2 + $0x108] sm:$0xff] %vm198_vm0, %v4613_v2  ;;  %234 = vst.msk [vmem:[#allocation2 + $0x110] sm:$0xff] %vm198_vm0, %v4613_v2  ;;  %v260_v22 = vld [vmem:[%s4740_s5 + $0x30] sm:$0xff]  ;;  %v261_v24 = vld [vmem:[%s4740_s5 + $0x38] sm:$0xff]  ;;  %4593 = vmatpush3.msra.mxu1 %v3288_v6  ;;  %4015 = vmatpush3.msra.mxu0 %v3288_v6 }
  0x18   : > { %236 = vst.msk [vmem:[#allocation2 + $0x120] sm:$0xff] %vm198_vm0, %v4613_v2  ;;  %237 = vst.msk [vmem:[#allocation2 + $0x128] sm:$0xff] %vm198_vm0, %v4613_v2  ;;  %v278_v25 = vld [vmem:[%s4740_s5 + $0xc0] sm:$0xff]  ;;  %v279_v27 = vld [vmem:[%s4740_s5 + $0xc8] sm:$0xff]  ;;  %4586 = vmatprep.subr.mxu1 %v3287_v13  ;;  %4016 = vmatprep.subr.mxu0 %v3287_v13 }
  0x19   : > { %239 = vst.msk [vmem:[#allocation2 + $0x138] sm:$0xff] %vm198_vm0, %v4613_v2  ;;  %240 = vst.msk [vmem:[#allocation2 + $0x140] sm:$0xff] %vm198_vm0, %v4613_v2  ;;  %v262_v26 = vld [vmem:[%s4740_s5 + $0x40] sm:$0xff]  ;;  %v263_v28 = vld [vmem:[%s4740_s5 + $0x48] sm:$0xff]  ;;  %4594 = vmatpush3.msra.mxu1 %v3287_v13  ;;  %4017 = vmatpush3.msra.mxu0 %v3287_v13 }
  0x1a   : > { %242 = vst.msk [vmem:[#allocation2 + $0x150] sm:$0xff] %vm198_vm0, %v4613_v2  ;;  %243 = vst.msk [vmem:[#allocation2 + $0x158] sm:$0xff] %vm198_vm0, %v4613_v2  ;;  %v280_v29 = vld [vmem:[%s4740_s5 + $0xd0] sm:$0xff]  ;;  %v281_v31 = vld [vmem:[%s4740_s5 + $0xd8] sm:$0xff]  ;;  %4587 = vmatprep.subr.mxu1 %v3286_v20  ;;  %4018 = vmatprep.subr.mxu0 %v3286_v20 }
  0x1b   : > { %245 = vst.msk [vmem:[#allocation2 + $0x168] sm:$0xff] %vm198_vm0, %v4613_v2  ;;  %246 = vst.msk [vmem:[#allocation2 + $0x170] sm:$0xff] %vm198_vm0, %v4613_v2  ;;  %v264_v30 = vld [vmem:[%s4740_s5 + $0x50] sm:$0xff]  ;;  %4595 = vmatpush3.msra.mxu1 %v3286_v20  ;;  %4019 = vmatpush3.msra.mxu0 %v3286_v20  ;;  %v3365_v37 = vld [vmem:[%s6367_s1 + $0x1b8] sm:$0xff] }
  0x1c   : > { %248 = vst.msk [vmem:[#allocation2 + $0x180] sm:$0xff] %vm198_vm0, %v4613_v2  ;;  %249 = vst.msk [vmem:[#allocation2 + $0x188] sm:$0xff] %vm198_vm0, %v4613_v2  ;;  %4068 = vmatprep.subr.mxu1 %v362_v35  ;;  %4132 = vmatprep.subr.mxu0 %v3365_v37  ;;  %v3364_v43 = vld [vmem:[%s6367_s1 + $0x1b0] sm:$0xff]  ;;  %v360_v45 = vld [vmem:[%s6367_s1 + $0x28] sm:$0xff] }
  0x1d   : > { %251 = vst.msk [vmem:[#allocation2 + $0x198] sm:$0xff] %vm198_vm0, %v4613_v2  ;;  %252 = vst.msk [vmem:[#allocation2 + $0x1a0] sm:$0xff] %vm198_vm0, %v4613_v2  ;;  %v265_v46 = vld [vmem:[%s4740_s5 + $0x58] sm:$0xff]  ;;  %v282_v48 = vld [vmem:[%s4740_s5 + $0xe0] sm:$0xff] }
  0x1e   : > { %229 = vst.msk [vmem:[#allocation2 + $0xe8] sm:$0x3] %vm201_vm1, %v4613_v2  ;;  %202 = vst.msk [vmem:[#allocation2 + $0x10] sm:$0x3] %vm201_vm1, %v4613_v2  ;;  %v266_v49 = vld [vmem:[%s4740_s5 + $0x60] sm:$0xff]  ;;  %v3363_v51 = vld [vmem:[%s6367_s1 + $0x1a8] sm:$0xff] }
  0x1f   : > { %205 = vst.msk [vmem:[#allocation2 + $0x28] sm:$0x3] %vm201_vm1, %v4613_v2  ;;  %208 = vst.msk [vmem:[#allocation2 + $0x40] sm:$0x3] %vm201_vm1, %v4613_v2  ;;  %v283_v52 = vld [vmem:[%s4740_s5 + $0xe8] sm:$0xff]  ;;  %v284_v55 = vld [vmem:[%s4740_s5 + $0xf0] sm:$0xff] }
  0x20   : > { %211 = vst.msk [vmem:[#allocation2 + $0x58] sm:$0x3] %vm201_vm1, %v4613_v2  ;;  %214 = vst.msk [vmem:[#allocation2 + $0x70] sm:$0x3] %vm201_vm1, %v4613_v2  ;;  %v267_v53 = vld [vmem:[%s4740_s5 + $0x68] sm:$0xff]  ;;  %v268_v56 = vld [vmem:[%s4740_s5 + $0x70] sm:$0xff] }
  0x21   : > { %217 = vst.msk [vmem:[#allocation2 + $0x88] sm:$0x3] %vm201_vm1, %v4613_v2  ;;  %220 = vst.msk [vmem:[#allocation2 + $0xa0] sm:$0x3] %vm201_vm1, %v4613_v2  ;;  %v285_v58 = vld [vmem:[%s4740_s5 + $0xf8] sm:$0xff]  ;;  %v359_v62 = vld [vmem:[%s6367_s1 + $0x20] sm:$0xff] }
  0x22   : > { %223 = vst.msk [vmem:[#allocation2 + $0xb8] sm:$0x3] %vm201_vm1, %v4613_v2  ;;  %226 = vst.msk [vmem:[#allocation2 + $0xd0] sm:$0x3] %vm201_vm1, %v4613_v2  ;;  %v269_v59 = vld [vmem:[%s4740_s5 + $0x78] sm:$0xff]  ;;  %v3362_v0 = vld [vmem:[%s6367_s1 + $0x1a0] sm:$0xff] }
  0x23   : > { %232 = vst.msk [vmem:[#allocation2 + $0x100] sm:$0x3] %vm201_vm1, %v4613_v2  ;;  %235 = vst.msk [vmem:[#allocation2 + $0x118] sm:$0x3] %vm201_vm1, %v4613_v2  ;;  %v358_v4 = vld [vmem:[%s6367_s1 + $0x18] sm:$0xff] }
  0x24   : > { %238 = vst.msk [vmem:[#allocation2 + $0x130] sm:$0x3] %vm201_vm1, %v4613_v2  ;;  %241 = vst.msk [vmem:[#allocation2 + $0x148] sm:$0x3] %vm201_vm1, %v4613_v2  ;;  %v3361_v6 = vld [vmem:[%s6367_s1 + $0x198] sm:$0xff] }
  0x25   : > { %244 = vst.msk [vmem:[#allocation2 + $0x160] sm:$0x3] %vm201_vm1, %v4613_v2  ;;  %247 = vst.msk [vmem:[#allocation2 + $0x178] sm:$0x3] %vm201_vm1, %v4613_v2 }
  0x26   : > { %250 = vst.msk [vmem:[#allocation2 + $0x190] sm:$0x3] %vm201_vm1, %v4613_v2  ;;  %253 = vst.msk [vmem:[#allocation2 + $0x1a8] sm:$0x3] %vm201_vm1, %v4613_v2 }
  0x27   : > { %303 = vst.msk [vmem:[#allocation2 + $0xd9] sm:$0xff] %vm198_vm0, %v270_v7  ;;  %287 = vst.msk [vmem:[#allocation2 + $0x19] sm:$0xff] %vm198_vm0, %v254_v8 }
  0x28   : > { %304 = vst.msk [vmem:[#allocation2 + $0xe1] sm:$0xff] %vm198_vm0, %v271_v9  ;;  %288 = vst.msk [vmem:[#allocation2 + $0x21] sm:$0xff] %vm198_vm0, %v255_v10  ;;  %v357_v10 = vld [vmem:[%s6367_s1 + $0x10] sm:$0xff] }
  0x29   : > { %305 = vst.msk [vmem:[#allocation2 + $0xf1] sm:$0xff] %vm198_vm0, %v272_v11  ;;  %289 = vst.msk [vmem:[#allocation2 + $0x31] sm:$0xff] %vm198_vm0, %v256_v12  ;;  %v3360_v12 = vld [vmem:[%s6367_s1 + $0x190] sm:$0xff] }
  0x2a   : > { %306 = vst.msk [vmem:[#allocation2 + $0xf9] sm:$0xff] %vm198_vm0, %v273_v14  ;;  %290 = vst.msk [vmem:[#allocation2 + $0x39] sm:$0xff] %vm198_vm0, %v257_v15 }
  0x2b   : > { %307 = vst.msk [vmem:[#allocation2 + $0x109] sm:$0xff] %vm198_vm0, %v274_v16  ;;  %291 = vst.msk [vmem:[#allocation2 + $0x49] sm:$0xff] %vm198_vm0, %v258_v17  ;;  %v356_v16 = vld [vmem:[%s6367_s1 + $0x8] sm:$0xff] }
  0x2c   : > { %308 = vst.msk [vmem:[#allocation2 + $0x111] sm:$0xff] %vm198_vm0, %v275_v18  ;;  %292 = vst.msk [vmem:[#allocation2 + $0x51] sm:$0xff] %vm198_vm0, %v259_v19  ;;  %v3359_v18 = vld [vmem:[%s6367_s1 + $0x188] sm:$0xff] }
  0x2d   : > { %309 = vst.msk [vmem:[#allocation2 + $0x121] sm:$0xff] %vm198_vm0, %v276_v21  ;;  %293 = vst.msk [vmem:[#allocation2 + $0x61] sm:$0xff] %vm198_vm0, %v260_v22  ;;  %v355_v22 = vld [vmem:[%s6367_s1] sm:$0xff] }
  0x2e   : > { %310 = vst.msk [vmem:[#allocation2 + $0x129] sm:$0xff] %vm198_vm0, %v277_v23  ;;  %294 = vst.msk [vmem:[#allocation2 + $0x69] sm:$0xff] %vm198_vm0, %v261_v24  ;;  %v4795_v32 = vld [vmem:[#allocation2 + $0xd8] sm:$0xff]  ;;  %v3358_v24 = vld [vmem:[%s6367_s1 + $0x180] sm:$0xff] }
  0x2f   : > { %311 = vst.msk [vmem:[#allocation2 + $0x139] sm:$0xff] %vm198_vm0, %v278_v25  ;;  %295 = vst.msk [vmem:[#allocation2 + $0x79] sm:$0xff] %vm198_vm0, %v262_v26  ;;  %v4797_v33 = vld [vmem:[#allocation2 + $0x18] sm:$0xff]  ;;  %v4801_v34 = vld [vmem:[#allocation2 + $0xe0] sm:$0xff]  ;;  %4044 = vmatprep.mubr.msk.f32.mxu1 %vm198_vm0, %v4795_v32 }
  0x30   : > { %312 = vst.msk [vmem:[#allocation2 + $0x141] sm:$0xff] %vm198_vm0, %v279_v27  ;;  %296 = vst.msk [vmem:[#allocation2 + $0x81] sm:$0xff] %vm198_vm0, %v263_v28  ;;  %v4808_v36 = vld [vmem:[#allocation2 + $0x20] sm:$0xff]  ;;  %4020 = vmatprep.mubr.msk.f32.mxu0 %vm198_vm0, %v4797_v33  ;;  %v4815_v38 = vld [vmem:[#allocation2 + $0xf0] sm:$0xff]  ;;  %4045 = vmatmul.mubr.msk.f32.vlgmr.msra.gmra.mxu1 %vm198_vm0, %v4801_v34 }
  0x31   : > { %313 = vst.msk [vmem:[#allocation2 + $0x151] sm:$0xff] %vm198_vm0, %v280_v29  ;;  %297 = vst.msk [vmem:[#allocation2 + $0x91] sm:$0xff] %vm198_vm0, %v264_v30  ;;  %v4819_v39 = vld [vmem:[#allocation2 + $0x30] sm:$0xff]  ;;  %4021 = vmatmul.mubr.msk.f32.vlgmr.msra.gmra.mxu0 %vm198_vm0, %v4808_v36  ;;  %4069 = vmatpush3.msra.mxu1 %v362_v35  ;;  %v4823_v40 = vld [vmem:[#allocation2 + $0xf8] sm:$0xff] }
  0x32   : > { %314 = vst.msk [vmem:[#allocation2 + $0x159] sm:$0xff] %vm198_vm0, %v281_v31  ;;  %4047 = vmatprep.mubr.msk.f32.mxu1 %vm198_vm0, %v4815_v38  ;;  %v4830_v42 = vld [vmem:[#allocation2 + $0x38] sm:$0xff]  ;;  %4133 = vmatpush3.msra.mxu0 %v3365_v37  ;;  %v4837_v44 = vld [vmem:[#allocation2 + $0x108] sm:$0xff]  ;;  %298 = vst.msk [vmem:[#allocation2 + $0x99] sm:$0xff] %vm198_vm0, %v265_v46 }
  0x33   : > { %4023 = vmatprep.mubr.msk.f32.mxu0 %vm198_vm0, %v4819_v39  ;;  %4070 = vmatprep.subr.mxu1 %v361_v41  ;;  %v4845_v47 = vld [vmem:[#allocation2 + $0x48] sm:$0xff]  ;;  %v4852_v50 = vld [vmem:[#allocation2 + $0x110] sm:$0xff]  ;;  %315 = vst.msk [vmem:[#allocation2 + $0x169] sm:$0xff] %vm198_vm0, %v282_v48  ;;  %299 = vst.msk [vmem:[#allocation2 + $0xa9] sm:$0xff] %vm198_vm0, %v266_v49 }
  0x34   : > { %4048 = vmatmul.mubr.msk.f32.gmra.mxu1 %vm198_vm0, %v4823_v40  ;;  %4134 = vmatprep.subr.mxu0 %v3364_v43  ;;  %v4863_v54 = vld [vmem:[#allocation2 + $0x50] sm:$0xff]  ;;  %316 = vst.msk [vmem:[#allocation2 + $0x171] sm:$0xff] %vm198_vm0, %v283_v52  ;;  %300 = vst.msk [vmem:[#allocation2 + $0xb1] sm:$0xff] %vm198_vm0, %v267_v53  ;;  %v4871_v57 = vld [vmem:[#allocation2 + $0x120] sm:$0xff] }
  0x35   : > { %4024 = vmatmul.mubr.msk.f32.gmra.mxu0 %vm198_vm0, %v4830_v42  ;;  %4071 = vmatpush3.msra.mxu1 %v361_v41  ;;  %317 = vst.msk [vmem:[#allocation2 + $0x181] sm:$0xff] %vm198_vm0, %v284_v55  ;;  %301 = vst.msk [vmem:[#allocation2 + $0xc1] sm:$0xff] %vm198_vm0, %v268_v56  ;;  %v4879_v60 = vld [vmem:[#allocation2 + $0x60] sm:$0xff]  ;;  %v4885_v61 = vld [vmem:[#allocation2 + $0x128] sm:$0xff] }
  0x36   : > { %4050 = vmatprep.mubr.msk.f32.mxu1 %vm198_vm0, %v4837_v44  ;;  %4135 = vmatpush3.msra.mxu0 %v3364_v43  ;;  %318 = vst.msk [vmem:[#allocation2 + $0x189] sm:$0xff] %vm198_vm0, %v285_v58  ;;  %302 = vst.msk [vmem:[#allocation2 + $0xc9] sm:$0xff] %vm198_vm0, %v269_v59  ;;  %v4892_v63 = vld [vmem:[#allocation2 + $0x68] sm:$0xff]  ;;  %v4899_v1 = vld [vmem:[#allocation2 + $0x138] sm:$0xff] }
  0x37   : > { %4026 = vmatprep.mubr.msk.f32.mxu0 %vm198_vm0, %v4845_v47  ;;  %4072 = vmatprep.subr.mxu1 %v360_v45  ;;  %v4903_v2 = vld [vmem:[#allocation2 + $0x78] sm:$0xff]  ;;  %v4907_v3 = vld [vmem:[#allocation2 + $0x140] sm:$0xff]  ;;  %v320_v26 = vld [vmem:[#allocation2 + $0x8] sm:$0xff] }
  0x38   : > { %4051 = vmatmul.mubr.msk.f32.gmra.mxu1 %vm198_vm0, %v4852_v50  ;;  %4136 = vmatprep.subr.mxu0 %v3363_v51  ;;  %v4914_v5 = vld [vmem:[#allocation2 + $0x80] sm:$0xff]  ;;  %v4921_v7 = vld [vmem:[#allocation2 + $0x150] sm:$0xff]  ;;  %v3405_v27 = vld [vmem:[%s6367_s1 + $0x78] sm:$0xff] }
  0x39   : > { %4027 = vmatmul.mubr.msk.f32.gmra.mxu0 %vm198_vm0, %v4863_v54  ;;  %4073 = vmatpush3.msra.mxu1 %v360_v45  ;;  %v4925_v8 = vld [vmem:[#allocation2 + $0x90] sm:$0xff]  ;;  %v4929_v9 = vld [vmem:[#allocation2 + $0x158] sm:$0xff]  ;;  %v319_v25 = vld [vmem:[#allocation2] sm:$0xff] }
  0x3a   : > { %4053 = vmatprep.mubr.msk.f32.mxu1 %vm198_vm0, %v4871_v57  ;;  %4137 = vmatpush3.msra.mxu0 %v3363_v51  ;;  %v4936_v11 = vld [vmem:[#allocation2 + $0x98] sm:$0xff]  ;;  %v4943_v13 = vld [vmem:[#allocation2 + $0x168] sm:$0xff]  ;;  %v3404_v29 = vld [vmem:[%s6367_s1 + $0x70] sm:$0xff] }
  0x3b   : > { %4029 = vmatprep.mubr.msk.f32.mxu0 %vm198_vm0, %v4879_v60  ;;  %4074 = vmatprep.subr.mxu1 %v359_v62  ;;  %v4947_v14 = vld [vmem:[#allocation2 + $0xa8] sm:$0xff]  ;;  %v4951_v15 = vld [vmem:[#allocation2 + $0x170] sm:$0xff]  ;;  %v3445_v28 = vld [vmem:[%s6367_s1 + $0x138] sm:$0xff] }
  0x3c   : > { %4054 = vmatmul.mubr.msk.f32.gmra.mxu1 %vm198_vm0, %v4885_v61  ;;  %4138 = vmatprep.subr.mxu0 %v3362_v0  ;;  %v4958_v17 = vld [vmem:[#allocation2 + $0xb0] sm:$0xff]  ;;  %v4965_v19 = vld [vmem:[#allocation2 + $0x180] sm:$0xff]  ;;  %v3403_v31 = vld [vmem:[%s6367_s1 + $0x68] sm:$0xff] }
  0x3d   : > { %4030 = vmatmul.mubr.msk.f32.gmra.mxu0 %vm198_vm0, %v4892_v63  ;;  %4075 = vmatpush3.msra.mxu1 %v359_v62  ;;  %v4969_v20 = vld [vmem:[#allocation2 + $0xc0] sm:$0xff]  ;;  %v4973_v21 = vld [vmem:[#allocation2 + $0x188] sm:$0xff]  ;;  %v3444_v30 = vld [vmem:[%s6367_s1 + $0x130] sm:$0xff] }
  0x3e   : > { %4056 = vmatprep.mubr.msk.f32.mxu1 %vm198_vm0, %v4899_v1  ;;  %4139 = vmatpush3.msra.mxu0 %v3362_v0  ;;  %v4980_v23 = vld [vmem:[#allocation2 + $0xc8] sm:$0xff]  ;;  %v3402_v35 = vld [vmem:[%s6367_s1 + $0x60] sm:$0xff]  ;;  %v3401_v37 = vld [vmem:[%s6367_s1 + $0x58] sm:$0xff] }
  0x3f   : > { %4032 = vmatprep.mubr.msk.f32.mxu0 %vm198_vm0, %v4903_v2  ;;  %4076 = vmatprep.subr.mxu1 %v358_v4  ;;  %v3400_v41 = vld [vmem:[%s6367_s1 + $0x50] sm:$0xff]  ;;  %v3399_v43 = vld [vmem:[%s6367_s1 + $0x48] sm:$0xff]  ;;  %v3398_v46 = vld [vmem:[%s6367_s1 + $0x40] sm:$0xff] }
  0x40   : > { %4057 = vmatmul.mubr.msk.f32.gmra.mxu1 %vm198_vm0, %v4907_v3  ;;  %4140 = vmatprep.subr.mxu0 %v3361_v6  ;;  %v3439_v45 = vld [vmem:[%s6367_s1 + $0x108] sm:$0xff]  ;;  %v3485_v48 = vld [vmem:[%s6367_s1 + $0x1f8] sm:$0xff]  ;;  %v3484_v52 = vld [vmem:[%s6367_s1 + $0x1f0] sm:$0xff] }
  0x41   : > { %4033 = vmatmul.mubr.msk.f32.gmra.mxu0 %vm198_vm0, %v4914_v5  ;;  %4077 = vmatpush3.msra.mxu1 %v358_v4  ;;  %v3525_v49 = vld [vmem:[%s6367_s1 + $0xb8] sm:$0xff]  ;;  %v3524_v53 = vld [vmem:[%s6367_s1 + $0xb0] sm:$0xff]  ;;  %v3483_v56 = vld [vmem:[%s6367_s1 + $0x1e8] sm:$0xff] }
  0x42   : > { %4059 = vmatprep.mubr.msk.f32.mxu1 %vm198_vm0, %v4921_v7  ;;  %4141 = vmatpush3.msra.mxu0 %v3361_v6  ;;  %v5172_v51 = vld [vmem:[#allocation2 + $0x31] sm:$0xff]  ;;  %v5186_v55 = vld [vmem:[#allocation2 + $0x49] sm:$0xff]  ;;  %v5203_v59 = vld [vmem:[#allocation2 + $0x61] sm:$0xff] }
  0x43   : > { %4035 = vmatprep.mubr.msk.f32.mxu0 %vm198_vm0, %v4925_v8  ;;  %4078 = vmatprep.subr.mxu1 %v357_v10  ;;  %v5201_v58 = vld [vmem:[#allocation2 + $0x51] sm:$0xff]  ;;  %v5219_v62 = vld [vmem:[#allocation2 + $0x69] sm:$0xff]  ;;  %v5255_v6 = vld [vmem:[#allocation2 + $0x99] sm:$0xff] }
  0x44   : > { %4060 = vmatmul.mubr.msk.f32.gmra.mxu1 %vm198_vm0, %v4929_v9  ;;  %4142 = vmatprep.subr.mxu0 %v3360_v12  ;;  %v3481_v0 = vld [vmem:[%s6367_s1 + $0x1d8] sm:$0xff]  ;;  %v3480_v4 = vld [vmem:[%s6367_s1 + $0x1d0] sm:$0xff] }
  0x45   : > { %4036 = vmatmul.mubr.msk.f32.gmra.mxu0 %vm198_vm0, %v4936_v11  ;;  %4079 = vmatpush3.msra.mxu1 %v357_v10  ;;  %v5273_v10 = vld [vmem:[#allocation2 + $0xb1] sm:$0xff] }
  0x46   : > { %4062 = vmatprep.mubr.msk.f32.mxu1 %vm198_vm0, %v4943_v13  ;;  %4143 = vmatpush3.msra.mxu0 %v3360_v12  ;;  %v3478_v12 = vld [vmem:[%s6367_s1 + $0x1c0] sm:$0xff] }
  0x47   : > { %4038 = vmatprep.mubr.msk.f32.mxu0 %vm198_vm0, %v4947_v14  ;;  %4080 = vmatprep.subr.mxu1 %v356_v16 }
  0x48   : > { %4063 = vmatmul.mubr.msk.f32.gmra.mxu1 %vm198_vm0, %v4951_v15  ;;  %4144 = vmatprep.subr.mxu0 %v3359_v18 }
  0x49   : > { %4039 = vmatmul.mubr.msk.f32.gmra.mxu0 %vm198_vm0, %v4958_v17  ;;  %4081 = vmatpush3.msra.mxu1 %v356_v16  ;;  %v3565_v16 = vld [vmem:[%s6367_s1 + $0x178] sm:$0xff] }
  0x4a   : > { %4065 = vmatprep.mubr.msk.f32.mxu1 %vm198_vm0, %v4965_v19  ;;  %4145 = vmatpush3.msra.mxu0 %v3359_v18  ;;  %v5309_v18 = vld [vmem:[#allocation2 + $0xe1] sm:$0xff] }
  0x4b   : > { %4041 = vmatprep.mubr.msk.f32.mxu0 %vm198_vm0, %v4969_v20  ;;  %4082 = vmatprep.subr.mxu1 %v355_v22 }
  0x4c   : > { %4066 = vmatmul.mubr.msk.f32.gmra.mxu1 %vm198_vm0, %v4973_v21  ;;  %4146 = vmatprep.subr.mxu0 %v3358_v24 }
  0x4d   : > { %4042 = vmatmul.mubr.msk.f32.gmra.mxu0 %vm198_vm0, %v4980_v23  ;;  %4083 = vmatpush3.msra.mxu1 %v355_v22  ;;  %v5333_v22 = vld [vmem:[#allocation2 + $0x111] sm:$0xff] }
  0x4e   : > { %4084 = vmatprep.mubr.msk.f32.mxu1 %vm198_vm0, %v319_v25  ;;  %4147 = vmatpush3.msra.mxu0 %v3358_v24  ;;  %v5345_v24 = vld [vmem:[#allocation2 + $0x129] sm:$0xff]  ;;  %v5347_v25 = vld [vmem:[#allocation2 + $0x139] sm:$0xff] }
  0x4f   : > { %4148 = vmatprep.mubr.msk.f32.mxu0 %vm198_vm0, %v4819_v39  ;;  %4196 = vmatprep.subr.mxu1 %v3405_v27 }
  0x50   : > { %4085 = vmatmul.mubr.msk.f32.vlgmr.msra.gmra.mxu1 %vm198_vm0, %v320_v26  ;;  %4260 = vmatprep.subr.mxu0 %v3445_v28  ;;  %v5357_v26 = vld [vmem:[#allocation2 + $0x141] sm:$0xff] }
  0x51   : > { %4149 = vmatmul.mubr.msk.f32.vlgmr.msra.gmra.mxu0 %vm198_vm0, %v4830_v42  ;;  %4197 = vmatpush3.msra.mxu1 %v3405_v27  ;;  %v5359_v27 = vld [vmem:[#allocation2 + $0x151] sm:$0xff] }
  0x52   : > { %4087 = vmatprep.mubr.msk.f32.mxu1 %vm198_vm0, %v4797_v33  ;;  %4261 = vmatpush3.msra.mxu0 %v3445_v28  ;;  %v3443_v33 = vld [vmem:[%s6367_s1 + $0x128] sm:$0xff]  ;;  %v5369_v28 = vld [vmem:[#allocation2 + $0x159] sm:$0xff] }
  0x53   : > { %4151 = vmatprep.mubr.msk.f32.mxu0 %vm198_vm0, %v4845_v47  ;;  %4198 = vmatprep.subr.mxu1 %v3404_v29 }
  0x54   : > { %4088 = vmatmul.mubr.msk.f32.gmra.mxu1 %vm198_vm0, %v4808_v36  ;;  %4262 = vmatprep.subr.mxu0 %v3444_v30  ;;  %v3442_v36 = vld [vmem:[%s6367_s1 + $0x120] sm:$0xff] }
  0x55   : > { %4152 = vmatmul.mubr.msk.f32.gmra.mxu0 %vm198_vm0, %v4863_v54  ;;  %4090 = vmatprep.mubr.msk.f32.mxu1 %vm198_vm0, %v4819_v39  ;;  %v3441_v39 = vld [vmem:[%s6367_s1 + $0x118] sm:$0xff] }
  0x56   : > { %4154 = vmatprep.mubr.msk.f32.mxu0 %vm198_vm0, %v4879_v60  ;;  %4199 = vmatpush3.msra.mxu1 %v3404_v29  ;;  %v5371_v29 = vld [vmem:[#allocation2 + $0x169] sm:$0xff] }
  0x57   : > { %4200 = vmatprep.subr.mxu1 %v3403_v31  ;;  %4263 = vmatpush3.msra.mxu0 %v3444_v30  ;;  %v5381_v30 = vld [vmem:[#allocation2 + $0x171] sm:$0xff] }
  0x58   : > { %4091 = vmatmul.mubr.msk.f32.gmra.mxu1 %vm198_vm0, %v4830_v42  ;;  %4264 = vmatprep.subr.mxu0 %v3443_v33  ;;  %v3440_v42 = vld [vmem:[%s6367_s1 + $0x110] sm:$0xff] }
  0x59   : > { %4155 = vmatmul.mubr.msk.f32.gmra.mxu0 %vm198_vm0, %v4892_v63  ;;  %4093 = vmatprep.mubr.msk.f32.mxu1 %vm198_vm0, %v4845_v47  ;;  %v3438_v47 = vld [vmem:[%s6367_s1 + $0x100] sm:$0xff] }
  0x5a   : > { %4157 = vmatprep.mubr.msk.f32.mxu0 %vm198_vm0, %v4903_v2  ;;  %4201 = vmatpush3.msra.mxu1 %v3403_v31  ;;  %v5383_v31 = vld [vmem:[#allocation2 + $0x181] sm:$0xff] }
  0x5b   : > { %4202 = vmatprep.subr.mxu1 %v3402_v35  ;;  %4265 = vmatpush3.msra.mxu0 %v3443_v33  ;;  %v5393_v33 = vld [vmem:[#allocation2 + $0x189] sm:$0xff] }
  0x5c   : > { %4094 = vmatmul.mubr.msk.f32.gmra.mxu1 %vm198_vm0, %v4863_v54  ;;  %4266 = vmatprep.subr.mxu0 %v3442_v36  ;;  %v5182_v54 = vld [vmem:[#allocation2 + $0x39] sm:$0xff] }
  0x5d   : > { %4158 = vmatmul.mubr.msk.f32.gmra.mxu0 %vm198_vm0, %v4914_v5  ;;  %4096 = vmatprep.mubr.msk.f32.mxu1 %vm198_vm0, %v4879_v60  ;;  %v3482_v60 = vld [vmem:[%s6367_s1 + $0x1e0] sm:$0xff] }
  0x5e   : > { %4160 = vmatprep.mubr.msk.f32.mxu0 %vm198_vm0, %v4925_v8  ;;  %4203 = vmatpush3.msra.mxu1 %v3402_v35  ;;  %v2138_v35 = vld [vmem:[#allocation2 + $0x2] sm:$0xff] }
  0x5f   : > { %4204 = vmatprep.subr.mxu1 %v3401_v37  ;;  %4267 = vmatpush3.msra.mxu0 %v3442_v36  ;;  %v2139_v36 = vld [vmem:[#allocation2 + $0xa] sm:$0xff] }
  0x60   : > { %4097 = vmatmul.mubr.msk.f32.gmra.mxu1 %vm198_vm0, %v4892_v63  ;;  %4268 = vmatprep.subr.mxu0 %v3441_v39  ;;  %v5221_v63 = vld [vmem:[#allocation2 + $0x79] sm:$0xff] }
  0x61   : > { %4161 = vmatmul.mubr.msk.f32.gmra.mxu0 %vm198_vm0, %v4936_v11  ;;  %4099 = vmatprep.mubr.msk.f32.mxu1 %vm198_vm0, %v4903_v2  ;;  %v5237_v2 = vld [vmem:[#allocation2 + $0x81] sm:$0xff] }
  0x62   : > { %4163 = vmatprep.mubr.msk.f32.mxu0 %vm198_vm0, %v4947_v14  ;;  %4205 = vmatpush3.msra.mxu1 %v3401_v37  ;;  %v5404_v37 = vld [vmem:[#allocation2 + $0x1a] sm:$0xff] }
  0x63   : > { %4206 = vmatprep.subr.mxu1 %v3400_v41  ;;  %4269 = vmatpush3.msra.mxu0 %v3441_v39  ;;  %v3564_v39 = vld [vmem:[%s6367_s1 + $0x170] sm:$0xff] }
  0x64   : > { %4100 = vmatmul.mubr.msk.f32.gmra.mxu1 %vm198_vm0, %v4914_v5  ;;  %4270 = vmatprep.subr.mxu0 %v3440_v42  ;;  %v3520_v5 = vld [vmem:[%s6367_s1 + $0x90] sm:$0xff] }
  0x65   : > { %4164 = vmatmul.mubr.msk.f32.gmra.mxu0 %vm198_vm0, %v4958_v17  ;;  %4102 = vmatprep.mubr.msk.f32.mxu1 %vm198_vm0, %v4925_v8  ;;  %v3479_v8 = vld [vmem:[%s6367_s1 + $0x1c8] sm:$0xff] }
  0x66   : > { %4166 = vmatprep.mubr.msk.f32.mxu0 %vm198_vm0, %v4969_v20  ;;  %4207 = vmatpush3.msra.mxu1 %v3400_v41  ;;  %v3604_v41 = vld [vmem:[%s6367_s1 + $0x230] sm:$0xff] }
  0x67   : > { %4208 = vmatprep.subr.mxu1 %v3399_v43  ;;  %4271 = vmatpush3.msra.mxu0 %v3440_v42  ;;  %v5415_v42 = vld [vmem:[#allocation2 + $0x22] sm:$0xff] }
  0x68   : > { %4103 = vmatmul.mubr.msk.f32.gmra.mxu1 %vm198_vm0, %v4936_v11  ;;  %4272 = vmatprep.subr.mxu0 %v3439_v45  ;;  %v5275_v11 = vld [vmem:[#allocation2 + $0xc1] sm:$0xff] }
  0x69   : > { %4167 = vmatmul.mubr.msk.f32.gmra.mxu0 %vm198_vm0, %v4980_v23  ;;  %4105 = vmatprep.mubr.msk.f32.mxu1 %vm198_vm0, %v4947_v14  ;;  %v5291_v14 = vld [vmem:[#allocation2 + $0xc9] sm:$0xff] }
  0x6a   : > { %4169 = vmatprep.mubr.msk.f32.mxu0 %vm198_vm0, %v4795_v32  ;;  %4209 = vmatpush3.msra.mxu1 %v3399_v43  ;;  %v5419_v43 = vld [vmem:[#allocation2 + $0x32] sm:$0xff] }
  0x6b   : > { %4210 = vmatprep.subr.mxu1 %v3398_v46  ;;  %4273 = vmatpush3.msra.mxu0 %v3439_v45  ;;  %v3563_v45 = vld [vmem:[%s6367_s1 + $0x168] sm:$0xff] }
  0x6c   : > { %4106 = vmatmul.mubr.msk.f32.gmra.mxu1 %vm198_vm0, %v4958_v17  ;;  %4274 = vmatprep.subr.mxu0 %v3438_v47  ;;  %v3605_v17 = vld [vmem:[%s6367_s1 + $0x238] sm:$0xff] }
  0x6d   : > { %4170 = vmatmul.mubr.msk.f32.gmra.mxu0 %vm198_vm0, %v4801_v34  ;;  %4108 = vmatprep.mubr.msk.f32.mxu1 %vm198_vm0, %v4969_v20  ;;  %v5321_v20 = vld [vmem:[#allocation2 + $0xf9] sm:$0xff] }
  0x6e   : > { %4172 = vmatprep.mubr.msk.f32.mxu0 %vm198_vm0, %v4815_v38  ;;  %4211 = vmatpush3.msra.mxu1 %v3398_v46  ;;  %v3603_v46 = vld [vmem:[%s6367_s1 + $0x228] sm:$0xff] }
  0x6f   : > { %4324 = vmatprep.subr.mxu1 %v3485_v48  ;;  %4275 = vmatpush3.msra.mxu0 %v3438_v47  ;;  %v5435_v47 = vld [vmem:[#allocation2 + $0x3a] sm:$0xff] }
  0x70   : > { %4109 = vmatmul.mubr.msk.f32.gmra.mxu1 %vm198_vm0, %v4980_v23  ;;  %4388 = vmatprep.subr.mxu0 %v3525_v49  ;;  %v5335_v23 = vld [vmem:[#allocation2 + $0x121] sm:$0xff] }
  0x71   : > { %4173 = vmatmul.mubr.msk.f32.gmra.mxu0 %vm198_vm0, %v4823_v40  ;;  %4111 = vmatprep.mubr.msk.f32.mxu1 %vm198_vm0, %v4795_v32  ;;  %v353_v32 = vld [vmem:[#allocation2 + $0x198] sm:$0xff] }
  0x72   : > { %4175 = vmatprep.mubr.msk.f32.mxu0 %vm198_vm0, %v4837_v44 }
  0x74   : > { %4112 = vmatmul.mubr.msk.f32.gmra.mxu1 %vm198_vm0, %v4801_v34  ;;  %v354_v34 = vld [vmem:[#allocation2 + $0x1a0] sm:$0xff] }
  0x75   : > { %4176 = vmatmul.mubr.msk.f32.gmra.mxu0 %vm198_vm0, %v4852_v50  ;;  %4114 = vmatprep.mubr.msk.f32.mxu1 %vm198_vm0, %v4815_v38  ;;  %v1196_v38 = vld [vmem:[#allocation2 + $0x1] sm:$0xff] }
  0x76   : > { %4178 = vmatprep.mubr.msk.f32.mxu0 %vm198_vm0, %v4871_v57 }
  0x78   : > { %4115 = vmatmul.mubr.msk.f32.gmra.mxu1 %vm198_vm0, %v4823_v40  ;;  %v1198_v40 = vld [vmem:[#allocation2 + $0x19] sm:$0xff] }
  0x79   : > { %4179 = vmatmul.mubr.msk.f32.gmra.mxu0 %vm198_vm0, %v4885_v61  ;;  %4117 = vmatprep.mubr.msk.f32.mxu1 %vm198_vm0, %v4837_v44  ;;  %v1197_v44 = vld [vmem:[#allocation2 + $0x9] sm:$0xff] }
  0x7a   : > { %4181 = vmatprep.mubr.msk.f32.mxu0 %vm198_vm0, %v4899_v1 }
  0x7c   : > { %4118 = vmatmul.mubr.msk.f32.gmra.mxu1 %vm198_vm0, %v4852_v50  ;;  %v1199_v50 = vld [vmem:[#allocation2 + $0x21] sm:$0xff] }
  0x7d   : > { %4182 = vmatmul.mubr.msk.f32.gmra.mxu0 %vm198_vm0, %v4907_v3  ;;  %4120 = vmatprep.mubr.msk.f32.mxu1 %vm198_vm0, %v4871_v57  ;;  %v3523_v57 = vld [vmem:[%s6367_s1 + $0xa8] sm:$0xff] }
  0x7e   : > { %4184 = vmatprep.mubr.msk.f32.mxu0 %vm198_vm0, %v4921_v7 }
  0x80   : > { %4121 = vmatmul.mubr.msk.f32.gmra.mxu1 %vm198_vm0, %v4885_v61  ;;  %v3522_v61 = vld [vmem:[%s6367_s1 + $0xa0] sm:$0xff] }
  0x81   : > { %4185 = vmatmul.mubr.msk.f32.gmra.mxu0 %vm198_vm0, %v4929_v9  ;;  %4123 = vmatprep.mubr.msk.f32.mxu1 %vm198_vm0, %v4899_v1  ;;  %v3521_v1 = vld [vmem:[%s6367_s1 + $0x98] sm:$0xff] }
  0x82   : > { %4187 = vmatprep.mubr.msk.f32.mxu0 %vm198_vm0, %v4943_v13 }
  0x84   : > { %4124 = vmatmul.mubr.msk.f32.gmra.mxu1 %vm198_vm0, %v4907_v3  ;;  %v5239_v3 = vld [vmem:[#allocation2 + $0x91] sm:$0xff] }
  0x85   : > { %4188 = vmatmul.mubr.msk.f32.gmra.mxu0 %vm198_vm0, %v4951_v15  ;;  %4126 = vmatprep.mubr.msk.f32.mxu1 %vm198_vm0, %v4921_v7  ;;  %v5257_v7 = vld [vmem:[#allocation2 + $0xa9] sm:$0xff] }
  0x86   : > { %4190 = vmatprep.mubr.msk.f32.mxu0 %vm198_vm0, %v4965_v19  ;;  %v5311_v19 = vld [vmem:[#allocation2 + $0xf1] sm:$0xff] }
  0x88   : > { %4127 = vmatmul.mubr.msk.f32.gmra.mxu1 %vm198_vm0, %v4929_v9  ;;  %v3519_v9 = vld [vmem:[%s6367_s1 + $0x88] sm:$0xff] }
  0x89   : > { %4191 = vmatmul.mubr.msk.f32.gmra.mxu0 %vm198_vm0, %v4973_v21  ;;  %4129 = vmatprep.mubr.msk.f32.mxu1 %vm198_vm0, %v4943_v13  ;;  %v3518_v13 = vld [vmem:[%s6367_s1 + $0x80] sm:$0xff]  ;;  %v5323_v21 = vld [vmem:[#allocation2 + $0x109] sm:$0xff] }
  0x8a   : > { %4193 = vmatprep.mubr.msk.f32.mxu0 %vm198_vm0, %v353_v32  ;;  %v3602_v32 = vld [vmem:[%s6367_s1 + $0x220] sm:$0xff] }
  0x8c   : > { %4130 = vmatmul.mubr.msk.f32.gmra.mxu1 %vm198_vm0, %v4951_v15  ;;  %v5293_v15 = vld [vmem:[#allocation2 + $0xd9] sm:$0xff] }
  0x8d   : > { %4194 = vmatmul.mubr.msk.f32.gmra.mxu0 %vm198_vm0, %v354_v34  ;;  %4212 = vmatprep.mubr.msk.f32.mxu1 %vm198_vm0, %v1196_v38  ;;  %v5453_v34 = vld [vmem:[#allocation2 + $0x52] sm:$0xff]  ;;  %v5455_v38 = vld [vmem:[#allocation2 + $0x62] sm:$0xff] }
  0x8e   : > { %4276 = vmatprep.mubr.msk.f32.mxu0 %vm198_vm0, %v1198_v40 }
  0x90   : > { %4213 = vmatmul.mubr.msk.f32.vlgmr.msra.gmra.mxu1 %vm198_vm0, %v1197_v44  ;;  %v3601_v44 = vld [vmem:[%s6367_s1 + $0x218] sm:$0xff] }
  0x91   : > { %4277 = vmatmul.mubr.msk.f32.vlgmr.msra.gmra.mxu0 %vm198_vm0, %v1199_v50  ;;  %4325 = vmatpush3.msra.mxu1 %v3485_v48  ;;  %v5437_v48 = vld [vmem:[#allocation2 + $0x4a] sm:$0xff] }
  0x92   : > { %4215 = vmatprep.mubr.msk.f32.mxu1 %vm198_vm0, %v1198_v40  ;;  %4389 = vmatpush3.msra.mxu0 %v3525_v49  ;;  %v3562_v49 = vld [vmem:[%s6367_s1 + $0x160] sm:$0xff]  ;;  %v3561_v40 = vld [vmem:[%s6367_s1 + $0x158] sm:$0xff] }
  0x93   : > { %4279 = vmatprep.mubr.msk.f32.mxu0 %vm198_vm0, %v5172_v51  ;;  %4326 = vmatprep.subr.mxu1 %v3484_v52 }
  0x94   : > { %4216 = vmatmul.mubr.msk.f32.gmra.mxu1 %vm198_vm0, %v1199_v50  ;;  %4390 = vmatprep.subr.mxu0 %v3524_v53  ;;  %v5471_v50 = vld [vmem:[#allocation2 + $0x6a] sm:$0xff] }
  0x95   : > { %4280 = vmatmul.mubr.msk.f32.gmra.mxu0 %vm198_vm0, %v5182_v54  ;;  %4218 = vmatprep.mubr.msk.f32.mxu1 %vm198_vm0, %v5172_v51 }
  0x96   : > { %4282 = vmatprep.mubr.msk.f32.mxu0 %vm198_vm0, %v5186_v55  ;;  %4327 = vmatpush3.msra.mxu1 %v3484_v52  ;;  %v3560_v52 = vld [vmem:[%s6367_s1 + $0x150] sm:$0xff] }
  0x97   : > { %4391 = vmatpush3.msra.mxu0 %v3524_v53  ;;  %4328 = vmatprep.subr.mxu1 %v3483_v56  ;;  %v3600_v53 = vld [vmem:[%s6367_s1 + $0x210] sm:$0xff] }
  0x98   : > { %4219 = vmatmul.mubr.msk.f32.gmra.mxu1 %vm198_vm0, %v5182_v54  ;;  %4392 = vmatprep.subr.mxu0 %v3523_v57 }
  0x99   : > { %4283 = vmatmul.mubr.msk.f32.gmra.mxu0 %vm198_vm0, %v5201_v58  ;;  %4221 = vmatprep.mubr.msk.f32.mxu1 %vm198_vm0, %v5186_v55 }
  0x9a   : > { %4285 = vmatprep.mubr.msk.f32.mxu0 %vm198_vm0, %v5203_v59  ;;  %4329 = vmatpush3.msra.mxu1 %v3483_v56  ;;  %v3559_v56 = vld [vmem:[%s6367_s1 + $0x148] sm:$0xff] }
  0x9b   : > { %4393 = vmatpush3.msra.mxu0 %v3523_v57  ;;  %4330 = vmatprep.subr.mxu1 %v3482_v60  ;;  %v3599_v57 = vld [vmem:[%s6367_s1 + $0x208] sm:$0xff] }
  0x9c   : > { %4222 = vmatmul.mubr.msk.f32.gmra.mxu1 %vm198_vm0, %v5201_v58  ;;  %4394 = vmatprep.subr.mxu0 %v3522_v61 }
  0x9d   : > { %4286 = vmatmul.mubr.msk.f32.gmra.mxu0 %vm198_vm0, %v5219_v62  ;;  %4224 = vmatprep.mubr.msk.f32.mxu1 %vm198_vm0, %v5203_v59 }
  0x9e   : > { %4288 = vmatprep.mubr.msk.f32.mxu0 %vm198_vm0, %v5221_v63  ;;  %4331 = vmatpush3.msra.mxu1 %v3482_v60  ;;  %v3558_v60 = vld [vmem:[%s6367_s1 + $0x140] sm:$0xff] }
  0x9f   : > { %4395 = vmatpush3.msra.mxu0 %v3522_v61  ;;  %4332 = vmatprep.subr.mxu1 %v3481_v0  ;;  %v3598_v61 = vld [vmem:[%s6367_s1 + $0x200] sm:$0xff] }
  0xa0   : > { %4225 = vmatmul.mubr.msk.f32.gmra.mxu1 %vm198_vm0, %v5219_v62  ;;  %4396 = vmatprep.subr.mxu0 %v3521_v1 }
  0xa1   : > { %4289 = vmatmul.mubr.msk.f32.gmra.mxu0 %vm198_vm0, %v5237_v2  ;;  %4227 = vmatprep.mubr.msk.f32.mxu1 %vm198_vm0, %v5221_v63 }
  0xa2   : > { %4291 = vmatprep.mubr.msk.f32.mxu0 %vm198_vm0, %v5239_v3  ;;  %4333 = vmatpush3.msra.mxu1 %v3481_v0  ;;  %v5537_v0 = vld [vmem:[#allocation2 + $0xca] sm:$0xff] }
  0xa3   : > { %4397 = vmatpush3.msra.mxu0 %v3521_v1  ;;  %4334 = vmatprep.subr.mxu1 %v3480_v4  ;;  %v5539_v1 = vld [vmem:[#allocation2 + $0xda] sm:$0xff] }
  0xa4   : > { %4228 = vmatmul.mubr.msk.f32.gmra.mxu1 %vm198_vm0, %v5237_v2  ;;  %4398 = vmatprep.subr.mxu0 %v3520_v5 }
  0xa5   : > { %4292 = vmatmul.mubr.msk.f32.gmra.mxu0 %vm198_vm0, %v5255_v6  ;;  %4230 = vmatprep.mubr.msk.f32.mxu1 %vm198_vm0, %v5239_v3 }
  0xa6   : > { %4294 = vmatprep.mubr.msk.f32.mxu0 %vm198_vm0, %v5257_v7  ;;  %4335 = vmatpush3.msra.mxu1 %v3480_v4 }
  0xa7   : > { %4399 = vmatpush3.msra.mxu0 %v3520_v5  ;;  %4336 = vmatprep.subr.mxu1 %v3479_v8  ;;  %v5555_v5 = vld [vmem:[#allocation2 + $0xe2] sm:$0xff] }
  0xa8   : > { %4231 = vmatmul.mubr.msk.f32.gmra.mxu1 %vm198_vm0, %v5255_v6  ;;  %4400 = vmatprep.subr.mxu0 %v3519_v9 }
  0xa9   : > { %4295 = vmatmul.mubr.msk.f32.gmra.mxu0 %vm198_vm0, %v5273_v10  ;;  %4233 = vmatprep.mubr.msk.f32.mxu1 %vm198_vm0, %v5257_v7 }
  0xaa   : > { %4297 = vmatprep.mubr.msk.f32.mxu0 %vm198_vm0, %v5275_v11  ;;  %4337 = vmatpush3.msra.mxu1 %v3479_v8 }
  0xab   : > { %4401 = vmatpush3.msra.mxu0 %v3519_v9  ;;  %4338 = vmatprep.subr.mxu1 %v3478_v12 }
  0xac   : > { %4234 = vmatmul.mubr.msk.f32.gmra.mxu1 %vm198_vm0, %v5273_v10  ;;  %4402 = vmatprep.subr.mxu0 %v3518_v13 }
  0xad   : > { %4298 = vmatmul.mubr.msk.f32.gmra.mxu0 %vm198_vm0, %v5291_v14  ;;  %4236 = vmatprep.mubr.msk.f32.mxu1 %vm198_vm0, %v5275_v11 }
  0xae   : > { %4300 = vmatprep.mubr.msk.f32.mxu0 %vm198_vm0, %v5293_v15  ;;  %4339 = vmatpush3.msra.mxu1 %v3478_v12 }
  0xaf   : > { %4403 = vmatpush3.msra.mxu0 %v3518_v13  ;;  %4452 = vmatprep.subr.mxu1 %v3565_v16  ;;  %v5579_v13 = vld [vmem:[#allocation2 + $0x10a] sm:$0xff] }
  0xb0   : > { %4237 = vmatmul.mubr.msk.f32.gmra.mxu1 %vm198_vm0, %v5291_v14  ;;  %4516 = vmatprep.subr.mxu0 %v3605_v17 }
  0xb1   : > { %4301 = vmatmul.mubr.msk.f32.gmra.mxu0 %vm198_vm0, %v5309_v18  ;;  %4239 = vmatprep.mubr.msk.f32.mxu1 %vm198_vm0, %v5293_v15 }
  0xb2   : > { %4303 = vmatprep.mubr.msk.f32.mxu0 %vm198_vm0, %v5311_v19 }
  0xb4   : > { %4240 = vmatmul.mubr.msk.f32.gmra.mxu1 %vm198_vm0, %v5309_v18 }
  0xb5   : > { %4304 = vmatmul.mubr.msk.f32.gmra.mxu0 %vm198_vm0, %v5321_v20  ;;  %4242 = vmatprep.mubr.msk.f32.mxu1 %vm198_vm0, %v5311_v19 }
  0xb6   : > { %4306 = vmatprep.mubr.msk.f32.mxu0 %vm198_vm0, %v5323_v21 }
  0xb8   : > { %4243 = vmatmul.mubr.msk.f32.gmra.mxu1 %vm198_vm0, %v5321_v20 }
  0xb9   : > { %4307 = vmatmul.mubr.msk.f32.gmra.mxu0 %vm198_vm0, %v5333_v22  ;;  %4245 = vmatprep.mubr.msk.f32.mxu1 %vm198_vm0, %v5323_v21 }
  0xba   : > { %4309 = vmatprep.mubr.msk.f32.mxu0 %vm198_vm0, %v5335_v23 }
  0xbc   : > { %4246 = vmatmul.mubr.msk.f32.gmra.mxu1 %vm198_vm0, %v5333_v22 }
  0xbd   : > { %4310 = vmatmul.mubr.msk.f32.gmra.mxu0 %vm198_vm0, %v5345_v24  ;;  %4248 = vmatprep.mubr.msk.f32.mxu1 %vm198_vm0, %v5335_v23 }
  0xbe   : > { %4312 = vmatprep.mubr.msk.f32.mxu0 %vm198_vm0, %v5347_v25 }
  0xc0   : > { %4249 = vmatmul.mubr.msk.f32.gmra.mxu1 %vm198_vm0, %v5345_v24 }
  0xc1   : > { %4313 = vmatmul.mubr.msk.f32.gmra.mxu0 %vm198_vm0, %v5357_v26  ;;  %4251 = vmatprep.mubr.msk.f32.mxu1 %vm198_vm0, %v5347_v25 }
  0xc2   : > { %4315 = vmatprep.mubr.msk.f32.mxu0 %vm198_vm0, %v5359_v27 }
  0xc4   : > { %4252 = vmatmul.mubr.msk.f32.gmra.mxu1 %vm198_vm0, %v5357_v26 }
  0xc5   : > { %4316 = vmatmul.mubr.msk.f32.gmra.mxu0 %vm198_vm0, %v5369_v28  ;;  %4254 = vmatprep.mubr.msk.f32.mxu1 %vm198_vm0, %v5359_v27 }
  0xc6   : > { %4318 = vmatprep.mubr.msk.f32.mxu0 %vm198_vm0, %v5371_v29 }
  0xc8   : > { %4255 = vmatmul.mubr.msk.f32.gmra.mxu1 %vm198_vm0, %v5369_v28 }
  0xc9   : > { %4319 = vmatmul.mubr.msk.f32.gmra.mxu0 %vm198_vm0, %v5381_v30  ;;  %4257 = vmatprep.mubr.msk.f32.mxu1 %vm198_vm0, %v5371_v29 }
  0xca   : > { %4321 = vmatprep.mubr.msk.f32.mxu0 %vm198_vm0, %v5383_v31 }
  0xcc   : > { %4258 = vmatmul.mubr.msk.f32.gmra.mxu1 %vm198_vm0, %v5381_v30 }
  0xcd   : > { %4322 = vmatmul.mubr.msk.f32.gmra.mxu0 %vm198_vm0, %v5393_v33  ;;  %4340 = vmatprep.mubr.msk.f32.mxu1 %vm198_vm0, %v5172_v51  ;;  %v5473_v51 = vld [vmem:[#allocation2 + $0x7a] sm:$0xff] }
  0xce   : > { %4404 = vmatprep.mubr.msk.f32.mxu0 %vm198_vm0, %v2138_v35 }
  0xd0   : > { %4341 = vmatmul.mubr.msk.f32.vlgmr.msra.gmra.mxu1 %vm198_vm0, %v5182_v54  ;;  %v5489_v54 = vld [vmem:[#allocation2 + $0x82] sm:$0xff] }
  0xd1   : > { %4405 = vmatmul.mubr.msk.f32.vlgmr.msra.gmra.mxu0 %vm198_vm0, %v2139_v36  ;;  %4453 = vmatpush3.msra.mxu1 %v3565_v16  ;;  %v5635_v36 = vld [vmem:[#allocation2 + $0x142] sm:$0xff] }
  0xd2   : > { %4343 = vmatprep.mubr.msk.f32.mxu1 %vm198_vm0, %v5186_v55  ;;  %4517 = vmatpush3.msra.mxu0 %v3605_v17  ;;  %v5491_v55 = vld [vmem:[#allocation2 + $0x92] sm:$0xff] }
  0xd3   : > { %4407 = vmatprep.mubr.msk.f32.mxu0 %vm198_vm0, %v5404_v37  ;;  %4454 = vmatprep.subr.mxu1 %v3564_v39  ;;  %v5595_v17 = vld [vmem:[#allocation2 + $0x112] sm:$0xff] }
  0xd4   : > { %4344 = vmatmul.mubr.msk.f32.gmra.mxu1 %vm198_vm0, %v5201_v58  ;;  %4518 = vmatprep.subr.mxu0 %v3604_v41  ;;  %v5507_v58 = vld [vmem:[#allocation2 + $0x9a] sm:$0xff] }
  0xd5   : > { %4408 = vmatmul.mubr.msk.f32.gmra.mxu0 %vm198_vm0, %v5415_v42  ;;  %4346 = vmatprep.mubr.msk.f32.mxu1 %vm198_vm0, %v5203_v59  ;;  %v5509_v59 = vld [vmem:[#allocation2 + $0xaa] sm:$0xff] }
  0xd6   : > { %4410 = vmatprep.mubr.msk.f32.mxu0 %vm198_vm0, %v5419_v43  ;;  %4455 = vmatpush3.msra.mxu1 %v3564_v39 }
  0xd7   : > { %4519 = vmatpush3.msra.mxu0 %v3604_v41  ;;  %4456 = vmatprep.subr.mxu1 %v3563_v45  ;;  %v5639_v41 = vld [vmem:[#allocation2 + $0x152] sm:$0xff] }
  0xd8   : > { %4347 = vmatmul.mubr.msk.f32.gmra.mxu1 %vm198_vm0, %v5219_v62  ;;  %4520 = vmatprep.subr.mxu0 %v3603_v46  ;;  %v5525_v62 = vld [vmem:[#allocation2 + $0xb2] sm:$0xff] }
  0xd9   : > { %4411 = vmatmul.mubr.msk.f32.gmra.mxu0 %vm198_vm0, %v5435_v47  ;;  %4349 = vmatprep.mubr.msk.f32.mxu1 %vm198_vm0, %v5221_v63  ;;  %v5527_v63 = vld [vmem:[#allocation2 + $0xc2] sm:$0xff] }
  0xda   : > { %4413 = vmatprep.mubr.msk.f32.mxu0 %vm198_vm0, %v5437_v48  ;;  %4457 = vmatpush3.msra.mxu1 %v3563_v45 }
  0xdb   : > { %4521 = vmatpush3.msra.mxu0 %v3603_v46  ;;  %4458 = vmatprep.subr.mxu1 %v3562_v49  ;;  %v5655_v46 = vld [vmem:[#allocation2 + $0x15a] sm:$0xff] }
  0xdc   : > { %4350 = vmatmul.mubr.msk.f32.gmra.mxu1 %vm198_vm0, %v5237_v2  ;;  %4522 = vmatprep.subr.mxu0 %v3602_v32 }
  0xdd   : > { %4414 = vmatmul.mubr.msk.f32.gmra.mxu0 %vm198_vm0, %v5453_v34  ;;  %4352 = vmatprep.mubr.msk.f32.mxu1 %vm198_vm0, %v5239_v3 }
  0xde   : > { %4416 = vmatprep.mubr.msk.f32.mxu0 %vm198_vm0, %v5455_v38  ;;  %4459 = vmatpush3.msra.mxu1 %v3562_v49  ;;  %v1230_v49 = vld [vmem:[#allocation2 + $0x199] sm:$0xff] }
  0xdf   : > { %4523 = vmatpush3.msra.mxu0 %v3602_v32  ;;  %4460 = vmatprep.subr.mxu1 %v3561_v40 }
  0xe0   : > { %4353 = vmatmul.mubr.msk.f32.gmra.mxu1 %vm198_vm0, %v5255_v6  ;;  %4524 = vmatprep.subr.mxu0 %v3601_v44 }
  0xe1   : > { %4417 = vmatmul.mubr.msk.f32.gmra.mxu0 %vm198_vm0, %v5471_v50  ;;  %4355 = vmatprep.mubr.msk.f32.mxu1 %vm198_vm0, %v5257_v7  ;;  %v5559_v7 = vld [vmem:[#allocation2 + $0xf2] sm:$0xff] }
  0xe2   : > { %4419 = vmatprep.mubr.msk.f32.mxu0 %vm198_vm0, %v5473_v51  ;;  %4461 = vmatpush3.msra.mxu1 %v3561_v40  ;;  %v5659_v40 = vld [vmem:[#allocation2 + $0x16a] sm:$0xff] }
  0xe3   : > { %4525 = vmatpush3.msra.mxu0 %v3601_v44  ;;  %4462 = vmatprep.subr.mxu1 %v3560_v52 }
  0xe4   : > { %4356 = vmatmul.mubr.msk.f32.gmra.mxu1 %vm198_vm0, %v5273_v10  ;;  %4526 = vmatprep.subr.mxu0 %v3600_v53 }
  0xe5   : > { %4420 = vmatmul.mubr.msk.f32.gmra.mxu0 %vm198_vm0, %v5489_v54  ;;  %4358 = vmatprep.mubr.msk.f32.mxu1 %vm198_vm0, %v5275_v11  ;;  %v5575_v11 = vld [vmem:[#allocation2 + $0xfa] sm:$0xff] }
  0xe6   : > { %4422 = vmatprep.mubr.msk.f32.mxu0 %vm198_vm0, %v5491_v55  ;;  %4463 = vmatpush3.msra.mxu1 %v3560_v52 }
  0xe7   : > { %4527 = vmatpush3.msra.mxu0 %v3600_v53  ;;  %4464 = vmatprep.subr.mxu1 %v3559_v56  ;;  %v5674_v53 = vld [vmem:[#allocation2 + $0x172] sm:$0xff] }
  0xe8   : > { %4359 = vmatmul.mubr.msk.f32.gmra.mxu1 %vm198_vm0, %v5291_v14  ;;  %4528 = vmatprep.subr.mxu0 %v3599_v57 }
  0xe9   : > { %4423 = vmatmul.mubr.msk.f32.gmra.mxu0 %vm198_vm0, %v5507_v58  ;;  %4361 = vmatprep.mubr.msk.f32.mxu1 %vm198_vm0, %v5293_v15 }
  0xea   : > { %4425 = vmatprep.mubr.msk.f32.mxu0 %vm198_vm0, %v5509_v59  ;;  %4465 = vmatpush3.msra.mxu1 %v3559_v56 }
  0xeb   : > { %4529 = vmatpush3.msra.mxu0 %v3599_v57  ;;  %4466 = vmatprep.subr.mxu1 %v3558_v60 }
  0xec   : > { %4362 = vmatmul.mubr.msk.f32.gmra.mxu1 %vm198_vm0, %v5309_v18  ;;  %4530 = vmatprep.subr.mxu0 %v3598_v61 }
  0xed   : > { %4426 = vmatmul.mubr.msk.f32.gmra.mxu0 %vm198_vm0, %v5525_v62  ;;  %4364 = vmatprep.mubr.msk.f32.mxu1 %vm198_vm0, %v5311_v19  ;;  %v5599_v19 = vld [vmem:[#allocation2 + $0x122] sm:$0xff] }
  0xee   : > { %4428 = vmatprep.mubr.msk.f32.mxu0 %vm198_vm0, %v5527_v63  ;;  %4467 = vmatpush3.msra.mxu1 %v3558_v60 }
  0xef   : > { %4531 = vmatpush3.msra.mxu0 %v3598_v61 }
  0xf0   : > { %v5541_v2 = vpop.f32.mrf.mxu1  ;;  %4365 = vmatmul.mubr.msk.f32.gmra.mxu1 %vm198_vm0, %v5321_v20 }
  0xf1   : > { %v5545_v3 = vpop.f32.mrf.mxu0  ;;  %4429 = vmatmul.mubr.msk.f32.gmra.mxu0 %vm198_vm0, %v5537_v0  ;;  %4367 = vmatprep.mubr.msk.f32.mxu1 %vm198_vm0, %v5323_v21 }
  0xf2   : > { %v5551_v4 = vpop.f32.mrf.mxu1  ;;  %4431 = vmatprep.mubr.msk.f32.mxu0 %vm198_vm0, %v5539_v1 }
  0xf3   : > { %v5557_v6 = vpop.f32.mrf.mxu0 }
  0xf4   : > { %v5561_v8 = vpop.f32.mrf.mxu1  ;;  %4368 = vmatmul.mubr.msk.f32.gmra.mxu1 %vm198_vm0, %v5333_v22 }
  0xf5   : > { %v5565_v9 = vpop.f32.mrf.mxu0  ;;  %4432 = vmatmul.mubr.msk.f32.gmra.mxu0 %vm198_vm0, %v5555_v5  ;;  %4370 = vmatprep.mubr.msk.f32.mxu1 %vm198_vm0, %v5335_v23  ;;  %v5615_v23 = vld [vmem:[#allocation2 + $0x12a] sm:$0xff] }
  0xf6   : > { %v5571_v10 = vpop.f32.mrf.mxu1  ;;  %4434 = vmatprep.mubr.msk.f32.mxu0 %vm198_vm0, %v5559_v7 }
  0xf7   : > { %v5577_v12 = vpop.f32.mrf.mxu0 }
  0xf8   : > { %v5581_v14 = vpop.f32.mrf.mxu1  ;;  %4371 = vmatmul.mubr.msk.f32.gmra.mxu1 %vm198_vm0, %v5345_v24 }
  0xf9   : > { %v5585_v15 = vpop.f32.mrf.mxu0  ;;  %4435 = vmatmul.mubr.msk.f32.gmra.mxu0 %vm198_vm0, %v5575_v11  ;;  %4373 = vmatprep.mubr.msk.f32.mxu1 %vm198_vm0, %v5347_v25  ;;  %v5619_v25 = vld [vmem:[#allocation2 + $0x13a] sm:$0xff] }
  0xfa   : > { %v5591_v16 = vpop.f32.mrf.mxu1  ;;  %4437 = vmatprep.mubr.msk.f32.mxu0 %vm198_vm0, %v5579_v13 }
  0xfb   : > { %v5597_v18 = vpop.f32.mrf.mxu0 }
  0xfc   : > { %v5601_v20 = vpop.f32.mrf.mxu1  ;;  %4374 = vmatmul.mubr.msk.f32.gmra.mxu1 %vm198_vm0, %v5357_v26 }
  0xfd   : > { %v5605_v21 = vpop.f32.mrf.mxu0  ;;  %4438 = vmatmul.mubr.msk.f32.gmra.mxu0 %vm198_vm0, %v5595_v17  ;;  %4376 = vmatprep.mubr.msk.f32.mxu1 %vm198_vm0, %v5359_v27 }
  0xfe   : > { %v5611_v22 = vpop.f32.mrf.mxu1  ;;  %4440 = vmatprep.mubr.msk.f32.mxu0 %vm198_vm0, %v5599_v19 }
  0xff   : > { %v5617_v24 = vpop.f32.mrf.mxu0 }
 0x100   : > { %v5621_v26 = vpop.f32.mrf.mxu1  ;;  %4377 = vmatmul.mubr.msk.f32.gmra.mxu1 %vm198_vm0, %v5369_v28 }
 0x101   : > { %v5625_v35 = vpop.f32.mrf.mxu0  ;;  %4441 = vmatmul.mubr.msk.f32.gmra.mxu0 %vm198_vm0, %v5615_v23  ;;  %4379 = vmatprep.mubr.msk.f32.mxu1 %vm198_vm0, %v5371_v29 }
 0x102   : > { %v5631_v27 = vpop.f32.mrf.mxu1  ;;  %4443 = vmatprep.mubr.msk.f32.mxu0 %vm198_vm0, %v5619_v25 }
 0x103   : > { %v5637_v39 = vpop.f32.mrf.mxu0 }
 0x104   : > { %v5641_v28 = vpop.f32.mrf.mxu1  ;;  %4380 = vmatmul.mubr.msk.f32.gmra.mxu1 %vm198_vm0, %v5381_v30 }
 0x105   : > { %v5645_v45 = vpop.f32.mrf.mxu0  ;;  %4444 = vmatmul.mubr.msk.f32.gmra.mxu0 %vm198_vm0, %v5635_v36  ;;  %4382 = vmatprep.mubr.msk.f32.mxu1 %vm198_vm0, %v5383_v31  ;;  %v1231_v31 = vld [vmem:[#allocation2 + $0x1a1] sm:$0xff] }
 0x106   : > { %v5651_v29 = vpop.f32.mrf.mxu1  ;;  %4446 = vmatprep.mubr.msk.f32.mxu0 %vm198_vm0, %v5639_v41 }
 0x107   : > { %6372 = vst [vmem:[#allocation3_spill] sm:$0xff] %v5651_v29  ;;  %v5657_v32 = vpop.f32.mrf.mxu0 }
 0x108   : > { %v5661_v30 = vpop.f32.mrf.mxu1  ;;  %4383 = vmatmul.mubr.msk.f32.gmra.mxu1 %vm198_vm0, %v5393_v33 }
 0x109   : > { %6373 = vst [vmem:[#allocation4_spill] sm:$0xff] %v5661_v30  ;;  %v5665_v44 = vpop.f32.mrf.mxu0  ;;  %4447 = vmatmul.mubr.msk.f32.gmra.mxu0 %vm198_vm0, %v5655_v46  ;;  %4385 = vmatprep.mubr.msk.f32.mxu1 %vm198_vm0, %v1230_v49 }
 0x10a   : > { %v5670_v52 = vpop.f32.mrf.mxu1  ;;  %4449 = vmatprep.mubr.msk.f32.mxu0 %vm198_vm0, %v5659_v40 }
 0x10b   : > { %6374 = vst [vmem:[#allocation5_spill] sm:$0xff] %v5670_v52  ;;  %v5676_v56 = vpop.f32.mrf.mxu0 }
 0x10c   : > { %v5678_v57 = vpop.f32.mrf.mxu1  ;;  %4386 = vmatmul.mubr.msk.f32.gmra.mxu1 %vm198_vm0, %v1231_v31 }
 0x10d   : > { %6375 = vst [vmem:[#allocation6_spill] sm:$0xff] %v5678_v57  ;;  %v5681_v33 = vpop.f32.mrf.mxu0  ;;  %4450 = vmatmul.mubr.msk.f32.gmra.mxu0 %vm198_vm0, %v5674_v53  ;;  %4468 = vmatprep.mubr.msk.f32.mxu1 %vm198_vm0, %v5404_v37 }
 0x10e   : > { %v5687_v60 = vpop.f32.mrf.mxu1  ;;  %4532 = vmatprep.mubr.msk.f32.mxu0 %vm198_vm0, %v5419_v43 }
 0x10f   : > { %6376 = vst [vmem:[#allocation7_spill] sm:$0xff] %v5687_v60  ;;  %v5691_v61 = vpop.f32.mrf.mxu0 }
 0x110   : > { %v4086_v49 = vpop.f32.mrf.mxu1  ;;  %4469 = vmatmul.mubr.msk.f32.vlgmr.msra.gmra.mxu1 %vm198_vm0, %v5415_v42 }
 0x111   : > { %v771_v31 = vadd.f32 %v4086_v49, %v5545_v3  ;;  %v4150_v57 = vpop.f32.mrf.mxu0  ;;  %4533 = vmatmul.mubr.msk.f32.vlgmr.msra.gmra.mxu0 %vm198_vm0, %v5435_v47  ;;  %4471 = vmatprep.mubr.msk.f32.mxu1 %vm198_vm0, %v5419_v43 }
 0x112   : > { %v765_v37 = vpop.f32.mrf.mxu1  ;;  %4535 = vmatprep.mubr.msk.f32.mxu0 %vm198_vm0, %v5437_v48 }
 0x113   : > { %v5702_v60 = vadd.f32 %v4150_v57, %v771_v31  ;;  %v766_v52 = vadd.f32 %v765_v37, %v5557_v6  ;;  %v1005_v30 = vpop.f32.mrf.mxu0 }
 0x114   : > { %v4089_v29 = vpop.f32.mrf.mxu1  ;;  %4472 = vmatmul.mubr.msk.f32.gmra.mxu1 %vm198_vm0, %v5435_v47 }
 0x115   : > { %v5707_v42 = vadd.f32 %v1005_v30, %v766_v52  ;;  %v781_v3 = vadd.f32 %v4089_v29, %v5565_v9  ;;  %v4153_v49 = vpop.f32.mrf.mxu0  ;;  %4536 = vmatmul.mubr.msk.f32.gmra.mxu0 %vm198_vm0, %v5453_v34  ;;  %4474 = vmatprep.mubr.msk.f32.mxu1 %vm198_vm0, %v5437_v48 }
 0x116   : > { %v775_v43 = vpop.f32.mrf.mxu1  ;;  %4538 = vmatprep.mubr.msk.f32.mxu0 %vm198_vm0, %v5455_v38 }
 0x117   : > { %v5716_v6 = vadd.f32 %v4153_v49, %v781_v3  ;;  %v776_v57 = vadd.f32 %v775_v43, %v5577_v12  ;;  %v1015_v47 = vpop.f32.mrf.mxu0 }
 0x118   : > { %v4092_v30 = vpop.f32.mrf.mxu1  ;;  %4475 = vmatmul.mubr.msk.f32.gmra.mxu1 %vm198_vm0, %v5453_v34 }
 0x119   : > { %v5721_v9 = vadd.f32 %v1015_v47, %v776_v57  ;;  %v791_v29 = vadd.f32 %v4092_v30, %v5585_v15  ;;  %v4156_v52 = vpop.f32.mrf.mxu0  ;;  %4539 = vmatmul.mubr.msk.f32.gmra.mxu0 %vm198_vm0, %v5471_v50  ;;  %4477 = vmatprep.mubr.msk.f32.mxu1 %vm198_vm0, %v5455_v38 }
 0x11a   : > { %v785_v48 = vpop.f32.mrf.mxu1  ;;  %4541 = vmatprep.mubr.msk.f32.mxu0 %vm198_vm0, %v5473_v51 }
 0x11b   : > { %v5730_v12 = vadd.f32 %v4156_v52, %v791_v29  ;;  %v786_v31 = vadd.f32 %v785_v48, %v5597_v18  ;;  %v1025_v34 = vpop.f32.mrf.mxu0 }
 0x11c   : > { %v4095_v37 = vpop.f32.mrf.mxu1  ;;  %4478 = vmatmul.mubr.msk.f32.gmra.mxu1 %vm198_vm0, %v5471_v50 }
 0x11d   : > { %v5735_v15 = vadd.f32 %v1025_v34, %v786_v31  ;;  %v801_v3 = vadd.f32 %v4095_v37, %v5605_v21  ;;  %v4159_v49 = vpop.f32.mrf.mxu0  ;;  %4542 = vmatmul.mubr.msk.f32.gmra.mxu0 %vm198_vm0, %v5489_v54  ;;  %4480 = vmatprep.mubr.msk.f32.mxu1 %vm198_vm0, %v5473_v51 }
 0x11e   : > { %v795_v38 = vpop.f32.mrf.mxu1  ;;  %4544 = vmatprep.mubr.msk.f32.mxu0 %vm198_vm0, %v5491_v55 }
 0x11f   : > { %v5744_v18 = vadd.f32 %v4159_v49, %v801_v3  ;;  %v796_v43 = vadd.f32 %v795_v38, %v5617_v24  ;;  %v1035_v50 = vpop.f32.mrf.mxu0 }
 0x120   : > { %v4098_v57 = vpop.f32.mrf.mxu1  ;;  %4481 = vmatmul.mubr.msk.f32.gmra.mxu1 %vm198_vm0, %v5489_v54 }
 0x121   : > { %v5749_v21 = vadd.f32 %v1035_v50, %v796_v43  ;;  %v811_v47 = vadd.f32 %v4098_v57, %v5625_v35  ;;  %v4162_v30 = vpop.f32.mrf.mxu0  ;;  %4545 = vmatmul.mubr.msk.f32.gmra.mxu0 %vm198_vm0, %v5507_v58  ;;  %4483 = vmatprep.mubr.msk.f32.mxu1 %vm198_vm0, %v5491_v55 }
 0x122   : > { %v805_v51 = vpop.f32.mrf.mxu1  ;;  %4547 = vmatprep.mubr.msk.f32.mxu0 %vm198_vm0, %v5509_v59 }
 0x123   : > { %v5758_v24 = vadd.f32 %v4162_v30, %v811_v47  ;;  %v806_v29 = vadd.f32 %v805_v51, %v5637_v39  ;;  %v1045_v54 = vpop.f32.mrf.mxu0 }
 0x124   : > { %v4101_v52 = vpop.f32.mrf.mxu1  ;;  %4484 = vmatmul.mubr.msk.f32.gmra.mxu1 %vm198_vm0, %v5507_v58 }
 0x125   : > { %v5763_v35 = vadd.f32 %v1045_v54, %v806_v29  ;;  %v821_v48 = vadd.f32 %v4101_v52, %v5645_v45  ;;  %v4165_v31 = vpop.f32.mrf.mxu0  ;;  %4548 = vmatmul.mubr.msk.f32.gmra.mxu0 %vm198_vm0, %v5525_v62  ;;  %4486 = vmatprep.mubr.msk.f32.mxu1 %vm198_vm0, %v5509_v59 }
 0x126   : > { %v815_v55 = vpop.f32.mrf.mxu1  ;;  %4550 = vmatprep.mubr.msk.f32.mxu0 %vm198_vm0, %v5527_v63 }
 0x127   : > { %v5772_v39 = vadd.f32 %v4165_v31, %v821_v48  ;;  %v816_v34 = vadd.f32 %v815_v55, %v5657_v32  ;;  %v1055_v58 = vpop.f32.mrf.mxu0 }
 0x128   : > { %v4104_v37 = vpop.f32.mrf.mxu1  ;;  %4487 = vmatmul.mubr.msk.f32.gmra.mxu1 %vm198_vm0, %v5525_v62 }
 0x129   : > { %v5777_v45 = vadd.f32 %v1055_v58, %v816_v34  ;;  %v831_v3 = vadd.f32 %v4104_v37, %v5665_v44  ;;  %v4168_v49 = vpop.f32.mrf.mxu0  ;;  %4551 = vmatmul.mubr.msk.f32.gmra.mxu0 %vm198_vm0, %v5537_v0  ;;  %4489 = vmatprep.mubr.msk.f32.mxu1 %vm198_vm0, %v5527_v63 }
 0x12a   : > { %v825_v59 = vpop.f32.mrf.mxu1  ;;  %4553 = vmatprep.mubr.msk.f32.mxu0 %vm198_vm0, %v5539_v1 }
 0x12b   : > { %v5786_v32 = vadd.f32 %v4168_v49, %v831_v3  ;;  %v826_v38 = vadd.f32 %v825_v59, %v5676_v56  ;;  %v1065_v62 = vpop.f32.mrf.mxu0 }
 0x12c   : > { %v4107_v43 = vpop.f32.mrf.mxu1  ;;  %4490 = vmatmul.mubr.msk.f32.gmra.mxu1 %vm198_vm0, %v5537_v0 }
 0x12d   : > { %v5791_v44 = vadd.f32 %v1065_v62, %v826_v38  ;;  %v841_v50 = vadd.f32 %v4107_v43, %v5681_v33  ;;  %v4171_v57 = vpop.f32.mrf.mxu0  ;;  %4554 = vmatmul.mubr.msk.f32.gmra.mxu0 %vm198_vm0, %v5555_v5  ;;  %4492 = vmatprep.mubr.msk.f32.mxu1 %vm198_vm0, %v5539_v1 }
 0x12e   : > { %v835_v63 = vpop.f32.mrf.mxu1  ;;  %4556 = vmatprep.mubr.msk.f32.mxu0 %vm198_vm0, %v5559_v7 }
 0x12f   : > { %v5800_v56 = vadd.f32 %v4171_v57, %v841_v50  ;;  %v836_v47 = vadd.f32 %v835_v63, %v5691_v61  ;;  %v1075_v0 = vpop.f32.mrf.mxu0 }
 0x130   : > { %v4110_v30 = vpop.f32.mrf.mxu1  ;;  %4493 = vmatmul.mubr.msk.f32.gmra.mxu1 %vm198_vm0, %v5555_v5 }
 0x131   : > { %v5805_v33 = vadd.f32 %v1075_v0, %v836_v47  ;;  %v851_v51 = vadd.f32 %v4110_v30, %v5541_v2  ;;  %v4174_v29 = vpop.f32.mrf.mxu0  ;;  %4557 = vmatmul.mubr.msk.f32.gmra.mxu0 %vm198_vm0, %v5575_v11  ;;  %4495 = vmatprep.mubr.msk.f32.mxu1 %vm198_vm0, %v5559_v7  ;;  %v2170_v47 = vld [vmem:[#allocation2 + $0x182] sm:$0xff] }
 0x132   : > { %v845_v1 = vpop.f32.mrf.mxu1  ;;  %4559 = vmatprep.mubr.msk.f32.mxu0 %vm198_vm0, %v5579_v13 }
 0x133   : > { %v5814_v61 = vadd.f32 %v4174_v29, %v851_v51  ;;  %v846_v54 = vadd.f32 %v845_v1, %v5551_v4  ;;  %v1085_v5 = vpop.f32.mrf.mxu0  ;;  %v6377_v1 = vld [vmem:[#allocation3_spill] sm:$0xff] }
 0x134   : > { %v4113_v52 = vpop.f32.mrf.mxu1  ;;  %4496 = vmatmul.mubr.msk.f32.gmra.mxu1 %vm198_vm0, %v5575_v11 }
 0x135   : > { %v5819_v2 = vadd.f32 %v1085_v5, %v846_v54  ;;  %v861_v48 = vadd.f32 %v4113_v52, %v5561_v8  ;;  %v4177_v31 = vpop.f32.mrf.mxu0  ;;  %4560 = vmatmul.mubr.msk.f32.gmra.mxu0 %vm198_vm0, %v5595_v17  ;;  %4498 = vmatprep.mubr.msk.f32.mxu1 %vm198_vm0, %v5579_v13  ;;  %v2172_v5 = vld [vmem:[#allocation2 + $0x19a] sm:$0xff] }
 0x136   : > { %v855_v7 = vpop.f32.mrf.mxu1  ;;  %4562 = vmatprep.mubr.msk.f32.mxu0 %vm198_vm0, %v5599_v19 }
 0x137   : > { %v5828_v4 = vadd.f32 %v4177_v31, %v861_v48  ;;  %v856_v55 = vadd.f32 %v855_v7, %v5571_v10  ;;  %v1095_v11 = vpop.f32.mrf.mxu0  ;;  %v6378_v48 = vld [vmem:[#allocation4_spill] sm:$0xff] }
 0x138   : > { %v4116_v34 = vpop.f32.mrf.mxu1  ;;  %4499 = vmatmul.mubr.msk.f32.gmra.mxu1 %vm198_vm0, %v5595_v17 }
 0x139   : > { %v5833_v8 = vadd.f32 %v1095_v11, %v856_v55  ;;  %v871_v58 = vadd.f32 %v4116_v34, %v5581_v14  ;;  %v4180_v37 = vpop.f32.mrf.mxu0  ;;  %4563 = vmatmul.mubr.msk.f32.gmra.mxu0 %vm198_vm0, %v5615_v23  ;;  %4501 = vmatprep.mubr.msk.f32.mxu1 %vm198_vm0, %v5599_v19  ;;  %v2173_v55 = vld [vmem:[#allocation2 + $0x1a2] sm:$0xff] }
 0x13a   : > { %v865_v13 = vpop.f32.mrf.mxu1  ;;  %4565 = vmatprep.mubr.msk.f32.mxu0 %vm198_vm0, %v5619_v25  ;;  %v6379_v34 = vld [vmem:[#allocation5_spill] sm:$0xff] }
 0x13b   : > { %v5842_v10 = vadd.f32 %v4180_v37, %v871_v58  ;;  %v866_v3 = vadd.f32 %v865_v13, %v5591_v16  ;;  %v1105_v17 = vpop.f32.mrf.mxu0 }
 0x13c   : > { %v4119_v49 = vpop.f32.mrf.mxu1  ;;  %4502 = vmatmul.mubr.msk.f32.gmra.mxu1 %vm198_vm0, %v5615_v23 }
 0x13d   : > { %v5847_v14 = vadd.f32 %v1105_v17, %v866_v3  ;;  %v881_v59 = vadd.f32 %v4119_v49, %v5601_v20  ;;  %v4183_v38 = vpop.f32.mrf.mxu0  ;;  %4566 = vmatmul.mubr.msk.f32.gmra.mxu0 %vm198_vm0, %v5635_v36  ;;  %4504 = vmatprep.mubr.msk.f32.mxu1 %vm198_vm0, %v5619_v25  ;;  %v6380_v3 = vld [vmem:[#allocation6_spill] sm:$0xff] }
 0x13e   : > { %v875_v19 = vpop.f32.mrf.mxu1  ;;  %4568 = vmatprep.mubr.msk.f32.mxu0 %vm198_vm0, %v5639_v41 }
 0x13f   : > { %v5856_v16 = vadd.f32 %v4183_v38, %v881_v59  ;;  %v876_v62 = vadd.f32 %v875_v19, %v5611_v22  ;;  %v1115_v23 = vpop.f32.mrf.mxu0  ;;  %v6381_v19 = vld [vmem:[#allocation7_spill] sm:$0xff] }
 0x140   : > { %v4122_v43 = vpop.f32.mrf.mxu1  ;;  %4505 = vmatmul.mubr.msk.f32.gmra.mxu1 %vm198_vm0, %v5635_v36 }
 0x141   : > { %v5861_v20 = vadd.f32 %v1115_v23, %v876_v62  ;;  %v891_v50 = vadd.f32 %v4122_v43, %v5621_v26  ;;  %v4186_v57 = vpop.f32.mrf.mxu0  ;;  %4569 = vmatmul.mubr.msk.f32.gmra.mxu0 %vm198_vm0, %v5655_v46  ;;  %4507 = vmatprep.mubr.msk.f32.mxu1 %vm198_vm0, %v5639_v41 }
 0x142   : > { %v885_v25 = vpop.f32.mrf.mxu1  ;;  %4571 = vmatprep.mubr.msk.f32.mxu0 %vm198_vm0, %v5659_v40 }
 0x143   : > { %v5870_v22 = vadd.f32 %v4186_v57, %v891_v50  ;;  %v886_v63 = vadd.f32 %v885_v25, %v5631_v27  ;;  %v1125_v36 = vpop.f32.mrf.mxu0  ;;  %v2171_v27 = vld [vmem:[#allocation2 + $0x18a] sm:$0xff] }
 0x144   : > { %v4125_v0 = vpop.f32.mrf.mxu1  ;;  %4508 = vmatmul.mubr.msk.f32.gmra.mxu1 %vm198_vm0, %v5655_v46 }
 0x145   : > { %v5875_v26 = vadd.f32 %v1125_v36, %v886_v63  ;;  %v901_v30 = vadd.f32 %v4125_v0, %v5641_v28  ;;  %v4189_v51 = vpop.f32.mrf.mxu0  ;;  %4572 = vmatmul.mubr.msk.f32.gmra.mxu0 %vm198_vm0, %v5674_v53  ;;  %4510 = vmatprep.mubr.msk.f32.mxu1 %vm198_vm0, %v5659_v40 }
 0x146   : > { %v895_v41 = vpop.f32.mrf.mxu1  ;;  %4574 = vmatprep.mubr.msk.f32.mxu0 %vm198_vm0, %v2170_v47 }
 0x147   : > { %v5883_v29 = vadd.f32 %v4189_v51, %v901_v30  ;;  %v896_v54 = vadd.f32 %v895_v41, %v6377_v1  ;;  %v1135_v46 = vpop.f32.mrf.mxu0 }
 0x148   : > { %v4128_v52 = vpop.f32.mrf.mxu1  ;;  %4511 = vmatmul.mubr.msk.f32.gmra.mxu1 %vm198_vm0, %v5674_v53 }
 0x149   : > { %v5888_v28 = vadd.f32 %v1135_v46, %v896_v54  ;;  %v911_v31 = vadd.f32 %v4128_v52, %v6378_v48  ;;  %v4192_v7 = vpop.f32.mrf.mxu0  ;;  %4575 = vmatmul.mubr.msk.f32.gmra.mxu0 %vm198_vm0, %v2171_v27  ;;  %4513 = vmatprep.mubr.msk.f32.mxu1 %vm198_vm0, %v2170_v47 }
 0x14a   : > { %v905_v40 = vpop.f32.mrf.mxu1  ;;  %4577 = vmatprep.mubr.msk.f32.mxu0 %vm198_vm0, %v2172_v5 }
 0x14b   : > { %v5894_v11 = vadd.f32 %v4192_v7, %v911_v31  ;;  %v906_v58 = vadd.f32 %v905_v40, %v6379_v34  ;;  %v1145_v37 = vpop.f32.mrf.mxu0 }
 0x14c   : > { %v4131_v13 = vpop.f32.mrf.mxu1  ;;  %4514 = vmatmul.mubr.msk.f32.gmra.mxu1 %vm198_vm0, %v2171_v27 }
 0x14d   : > { %v5898_v53 = vadd.f32 %v1145_v37, %v906_v58  ;;  %v921_v17 = vadd.f32 %v4131_v13, %v6380_v3  ;;  %v4195_v49 = vpop.f32.mrf.mxu0  ;;  %4578 = vmatmul.mubr.msk.f32.gmra.mxu0 %vm198_vm0, %v2173_v55 }
 0x14e   : > { %v915_v59 = vpop.f32.mrf.mxu1 }
 0x14f   : > { %v5902_v38 = vadd.f32 %v4195_v49, %v921_v17  ;;  %v916_v62 = vadd.f32 %v915_v59, %v6381_v19  ;;  %v1155_v23 = vpop.f32.mrf.mxu0 }
 0x150   : > { %v4214_v43 = vpop.f32.mrf.mxu1 }
 0x151   : > { %v5905_v50 = vadd.f32 %v1155_v23, %v916_v62  ;;  %v1563_v57 = vadd.f32 %v4214_v43, %v5702_v60  ;;  %v4278_v25 = vpop.f32.mrf.mxu0 }
 0x152   : > { %v1403_v63 = vpop.f32.mrf.mxu1 }
 0x153   : > { %v5908_v36 = vadd.f32 %v4278_v25, %v1563_v57  ;;  %v1562_v47 = vadd.f32 %v1403_v63, %v5707_v42  ;;  %v1675_v0 = vpop.f32.mrf.mxu0 }
 0x154   : > { %v4217_v30 = vpop.f32.mrf.mxu1 }
 0x155   : > { %v5911_v51 = vadd.f32 %v1675_v0, %v1562_v47  ;;  %v1565_v41 = vadd.f32 %v4217_v30, %v5716_v6  ;;  %v4281_v27 = vpop.f32.mrf.mxu0 }
 0x156   : > { %v1413_v1 = vpop.f32.mrf.mxu1 }
 0x157   : > { %v5914_v54 = vadd.f32 %v4281_v27, %v1565_v41  ;;  %v1564_v46 = vadd.f32 %v1413_v1, %v5721_v9  ;;  %v1685_v5 = vpop.f32.mrf.mxu0 }
 0x158   : > { %v4220_v60 = vpop.f32.mrf.mxu1 }
 0x159   : > { %v5917_v52 = vadd.f32 %v1685_v5, %v1564_v46  ;;  %v1567_v48 = vadd.f32 %v4220_v60, %v5730_v12  ;;  %v4284_v31 = vpop.f32.mrf.mxu0 }
 0x15a   : > { %v1423_v42 = vpop.f32.mrf.mxu1 }
 0x15b   : > { %v5920_v7 = vadd.f32 %v4284_v31, %v1567_v48  ;;  %v1566_v40 = vadd.f32 %v1423_v42, %v5735_v15  ;;  %v1695_v55 = vpop.f32.mrf.mxu0 }
 0x15c   : > { %v4223_v6 = vpop.f32.mrf.mxu1 }
 0x15d   : > { %v5923_v34 = vadd.f32 %v1695_v55, %v1566_v40  ;;  %v1569_v58 = vadd.f32 %v4223_v6, %v5744_v18  ;;  %v4287_v37 = vpop.f32.mrf.mxu0 }
 0x15e   : > { %v1433_v9 = vpop.f32.mrf.mxu1 }
 0x15f   : > { %v5926_v13 = vadd.f32 %v4287_v37, %v1569_v58  ;;  %v1568_v3 = vadd.f32 %v1433_v9, %v5749_v21  ;;  %v1705_v17 = vpop.f32.mrf.mxu0 }
 0x160   : > { %v4226_v12 = vpop.f32.mrf.mxu1 }
 0x161   : > { %v5929_v49 = vadd.f32 %v1705_v17, %v1568_v3  ;;  %v1571_v59 = vadd.f32 %v4226_v12, %v5758_v24  ;;  %v4290_v19 = vpop.f32.mrf.mxu0 }
 0x162   : > { %v1443_v15 = vpop.f32.mrf.mxu1 }
 0x163   : > { %v5932_v62 = vadd.f32 %v4290_v19, %v1571_v59  ;;  %v1570_v23 = vadd.f32 %v1443_v15, %v5763_v35  ;;  %v1715_v43 = vpop.f32.mrf.mxu0 }
 0x164   : > { %v4229_v18 = vpop.f32.mrf.mxu1 }
 0x165   : > { %v5935_v57 = vadd.f32 %v1715_v43, %v1570_v23  ;;  %v1573_v25 = vadd.f32 %v4229_v18, %v5772_v39  ;;  %v4293_v63 = vpop.f32.mrf.mxu0 }
 0x166   : > { %v1453_v21 = vpop.f32.mrf.mxu1 }
 0x167   : > { %v5938_v47 = vadd.f32 %v4293_v63, %v1573_v25  ;;  %v1572_v0 = vadd.f32 %v1453_v21, %v5777_v45  ;;  %v1725_v30 = vpop.f32.mrf.mxu0 }
 0x168   : > { %v4232_v24 = vpop.f32.mrf.mxu1 }
 0x169   : > { %v5941_v41 = vadd.f32 %v1725_v30, %v1572_v0  ;;  %v1575_v27 = vadd.f32 %v4232_v24, %v5786_v32  ;;  %v4296_v1 = vpop.f32.mrf.mxu0 }
 0x16a   : > { %v1463_v35 = vpop.f32.mrf.mxu1 }
 0x16b   : > { %v5944_v46 = vadd.f32 %v4296_v1, %v1575_v27  ;;  %v1574_v5 = vadd.f32 %v1463_v35, %v5791_v44  ;;  %v1735_v60 = vpop.f32.mrf.mxu0 }
 0x16c   : > { %v4235_v39 = vpop.f32.mrf.mxu1 }
 0x16d   : > { %v5947_v48 = vadd.f32 %v1735_v60, %v1574_v5  ;;  %v1577_v31 = vadd.f32 %v4235_v39, %v5800_v56  ;;  %v4299_v42 = vpop.f32.mrf.mxu0 }
 0x16e   : > { %v1473_v45 = vpop.f32.mrf.mxu1 }
 0x16f   : > { %v5950_v40 = vadd.f32 %v4299_v42, %v1577_v31  ;;  %v1576_v55 = vadd.f32 %v1473_v45, %v5805_v33  ;;  %v1745_v6 = vpop.f32.mrf.mxu0 }
 0x170   : > { %v4238_v32 = vpop.f32.mrf.mxu1 }
 0x171   : > { %v5953_v58 = vadd.f32 %v1745_v6, %v1576_v55  ;;  %v1579_v37 = vadd.f32 %v4238_v32, %v5814_v61  ;;  %v4302_v9 = vpop.f32.mrf.mxu0 }
 0x172   : > { %v1483_v44 = vpop.f32.mrf.mxu1 }
 0x173   : > { %v5956_v3 = vadd.f32 %v4302_v9, %v1579_v37  ;;  %v1578_v17 = vadd.f32 %v1483_v44, %v5819_v2  ;;  %v1755_v12 = vpop.f32.mrf.mxu0 }
 0x174   : > { %v4241_v56 = vpop.f32.mrf.mxu1 }
 0x175   : > { %v5959_v59 = vadd.f32 %v1755_v12, %v1578_v17  ;;  %v1581_v19 = vadd.f32 %v4241_v56, %v5828_v4  ;;  %v4305_v15 = vpop.f32.mrf.mxu0 }
 0x176   : > { %v1493_v33 = vpop.f32.mrf.mxu1 }
 0x177   : > { %v5962_v23 = vadd.f32 %v4305_v15, %v1581_v19  ;;  %v1580_v43 = vadd.f32 %v1493_v33, %v5833_v8  ;;  %v1765_v18 = vpop.f32.mrf.mxu0 }
 0x178   : > { %v4244_v61 = vpop.f32.mrf.mxu1 }
 0x179   : > { %6382 = vst [vmem:[#allocation3_spill] sm:$0xff] %v5962_v23  ;;  %v5965_v25 = vadd.f32 %v1765_v18, %v1580_v43  ;;  %v1583_v63 = vadd.f32 %v4244_v61, %v5842_v10  ;;  %v4308_v21 = vpop.f32.mrf.mxu0 }
 0x17a   : > { %v1503_v2 = vpop.f32.mrf.mxu1 }
 0x17b   : > { %6383 = vst [vmem:[#allocation4_spill] sm:$0xff] %v5965_v25  ;;  %v5968_v0 = vadd.f32 %v4308_v21, %v1583_v63  ;;  %v1582_v30 = vadd.f32 %v1503_v2, %v5847_v14  ;;  %v1775_v24 = vpop.f32.mrf.mxu0 }
 0x17c   : > { %v4247_v4 = vpop.f32.mrf.mxu1 }
 0x17d   : > { %6384 = vst [vmem:[#allocation5_spill] sm:$0xff] %v5968_v0  ;;  %v5971_v27 = vadd.f32 %v1775_v24, %v1582_v30  ;;  %v1585_v1 = vadd.f32 %v4247_v4, %v5856_v16  ;;  %v4311_v35 = vpop.f32.mrf.mxu0 }
 0x17e   : > { %v1513_v8 = vpop.f32.mrf.mxu1 }
 0x17f   : > { %6385 = vst [vmem:[#allocation6_spill] sm:$0xff] %v5971_v27  ;;  %v5974_v5 = vadd.f32 %v4311_v35, %v1585_v1  ;;  %v1584_v60 = vadd.f32 %v1513_v8, %v5861_v20  ;;  %v1785_v39 = vpop.f32.mrf.mxu0 }
 0x180   : > { %v4250_v10 = vpop.f32.mrf.mxu1 }
 0x181   : > { %6386 = vst [vmem:[#allocation7_spill] sm:$0xff] %v5974_v5  ;;  %v5977_v31 = vadd.f32 %v1785_v39, %v1584_v60  ;;  %v1587_v42 = vadd.f32 %v4250_v10, %v5870_v22  ;;  %v4314_v45 = vpop.f32.mrf.mxu0 }
 0x182   : > { %v1523_v14 = vpop.f32.mrf.mxu1 }
 0x183   : > { %6387 = vst [vmem:[#allocation8_spill] sm:$0xff] %v5977_v31  ;;  %v5980_v55 = vadd.f32 %v4314_v45, %v1587_v42  ;;  %v1586_v6 = vadd.f32 %v1523_v14, %v5875_v26  ;;  %v1795_v32 = vpop.f32.mrf.mxu0 }
 0x184   : > { %v4253_v16 = vpop.f32.mrf.mxu1 }
 0x185   : > { %6388 = vst [vmem:[#allocation9_spill] sm:$0xff] %v5980_v55  ;;  %v5983_v37 = vadd.f32 %v1795_v32, %v1586_v6  ;;  %v1589_v9 = vadd.f32 %v4253_v16, %v5883_v29  ;;  %v4317_v44 = vpop.f32.mrf.mxu0 }
 0x186   : > { %v1533_v20 = vpop.f32.mrf.mxu1 }
 0x187   : > { %6389 = vst [vmem:[#allocation10_spill] sm:$0xff] %v5983_v37  ;;  %v5986_v17 = vadd.f32 %v4317_v44, %v1589_v9  ;;  %v1588_v12 = vadd.f32 %v1533_v20, %v5888_v28  ;;  %v1805_v56 = vpop.f32.mrf.mxu0 }
 0x188   : > { %v4256_v22 = vpop.f32.mrf.mxu1 }
 0x189   : > { %6390 = vst [vmem:[#allocation11_spill] sm:$0xff] %v5986_v17  ;;  %v5989_v19 = vadd.f32 %v1805_v56, %v1588_v12  ;;  %v1591_v15 = vadd.f32 %v4256_v22, %v5894_v11  ;;  %v4320_v33 = vpop.f32.mrf.mxu0 }
 0x18a   : > { %v1543_v26 = vpop.f32.mrf.mxu1 }
 0x18b   : > { %6391 = vst [vmem:[#allocation12_spill] sm:$0xff] %v5989_v19  ;;  %v5992_v43 = vadd.f32 %v4320_v33, %v1591_v15  ;;  %v1590_v18 = vadd.f32 %v1543_v26, %v5898_v53  ;;  %v1815_v61 = vpop.f32.mrf.mxu0 }
 0x18c   : > { %v4259_v29 = vpop.f32.mrf.mxu1 }
 0x18d   : > { %6392 = vst [vmem:[#allocation13_spill] sm:$0xff] %v5992_v43  ;;  %v5995_v63 = vadd.f32 %v1815_v61, %v1590_v18  ;;  %v1593_v21 = vadd.f32 %v4259_v29, %v5902_v38  ;;  %v4323_v2 = vpop.f32.mrf.mxu0 }
 0x18e   : > { %v1553_v28 = vpop.f32.mrf.mxu1 }
 0x18f   : > { %6393 = vst [vmem:[#allocation14_spill] sm:$0xff] %v5995_v63  ;;  %v5998_v30 = vadd.f32 %v4323_v2, %v1593_v21  ;;  %v1592_v24 = vadd.f32 %v1553_v28, %v5905_v50  ;;  %v1825_v4 = vpop.f32.mrf.mxu0 }
 0x190   : > { %v4342_v11 = vpop.f32.mrf.mxu1 }
 0x191   : > { %6394 = vst [vmem:[#allocation15_spill] sm:$0xff] %v5998_v30  ;;  %v6001_v1 = vadd.f32 %v1825_v4, %v1592_v24  ;;  %v6003_v35 = vpop.f32.mrf.mxu0 }
 0x192   : > { %v1947_v8 = vpop.f32.mrf.mxu1 }
 0x193   : > { %6395 = vst [vmem:[#allocation16_spill] sm:$0xff] %v6001_v1  ;;  %v6005_v53 = vpop.f32.mrf.mxu0 }
 0x194   : > { %v4345_v60 = vpop.f32.mrf.mxu1 }
 0x195   : > { %v6007_v39 = vpop.f32.mrf.mxu0 }
 0x196   : > { %v6009_v10 = vpop.f32.mrf.mxu1 }
 0x197   : > { %v6011_v38 = vpop.f32.mrf.mxu0 }
 0x198   : > { %v6013_v42 = vpop.f32.mrf.mxu1 }
 0x199   : > { %v6015_v45 = vpop.f32.mrf.mxu0 }
 0x19a   : > { %v6017_v50 = vpop.f32.mrf.mxu1 }
 0x19b   : > { %v6019_v14 = vpop.f32.mrf.mxu0 }
 0x19c   : > { %v6021_v6 = vpop.f32.mrf.mxu1 }
 0x19d   : > { %v6023_v32 = vpop.f32.mrf.mxu0 }
 0x19e   : > { %v6025_v16 = vpop.f32.mrf.mxu1 }
 0x19f   : > { %v6027_v9 = vpop.f32.mrf.mxu0 }
 0x1a0   : > { %v6029_v44 = vpop.f32.mrf.mxu1 }
 0x1a1   : > { %v6031_v20 = vpop.f32.mrf.mxu0 }
 0x1a2   : > { %v6033_v12 = vpop.f32.mrf.mxu1 }
 0x1a3   : > { %v6035_v56 = vpop.f32.mrf.mxu0 }
 0x1a4   : > { %v6037_v22 = vpop.f32.mrf.mxu1 }
 0x1a5   : > { %v6039_v15 = vpop.f32.mrf.mxu0 }
 0x1a6   : > { %v6041_v33 = vpop.f32.mrf.mxu1 }
 0x1a7   : > { %v6043_v26 = vpop.f32.mrf.mxu0 }
 0x1a8   : > { %v6045_v18 = vpop.f32.mrf.mxu1 }
 0x1a9   : > { %v6047_v61 = vpop.f32.mrf.mxu0 }
 0x1aa   : > { %v6049_v29 = vpop.f32.mrf.mxu1 }
 0x1ab   : > { %v6051_v21 = vpop.f32.mrf.mxu0 }
 0x1ac   : > { %v6053_v2 = vpop.f32.mrf.mxu1 }
 0x1ad   : > { %v6055_v28 = vpop.f32.mrf.mxu0 }
 0x1ae   : > { %v6057_v24 = vpop.f32.mrf.mxu1 }
 0x1af   : > { %v6059_v4 = vpop.f32.mrf.mxu0 }
 0x1b0   : > { %v6061_v1 = vpop.f32.mrf.mxu1 }
 0x1b1   : > { %v6063_v30 = vpop.f32.mrf.mxu0 }
 0x1b2   : > { %v6065_v63 = vpop.f32.mrf.mxu1 }
 0x1b3   : > { %v6067_v43 = vpop.f32.mrf.mxu0 }
 0x1b4   : > { %6396 = vst [vmem:[#allocation17_spill] sm:$0xff] %v6067_v43  ;;  %v6069_v19 = vpop.f32.mrf.mxu1 }
 0x1b5   : > { %6397 = vst [vmem:[#allocation18_spill] sm:$0xff] %v6069_v19  ;;  %v6071_v17 = vpop.f32.mrf.mxu0 }
 0x1b6   : > { %6398 = vst [vmem:[#allocation19_spill] sm:$0xff] %v6071_v17  ;;  %v6073_v37 = vpop.f32.mrf.mxu1 }
 0x1b7   : > { %6399 = vst [vmem:[#allocation20_spill] sm:$0xff] %v6073_v37  ;;  %v6075_v55 = vpop.f32.mrf.mxu0 }
 0x1b8   : > { %6400 = vst [vmem:[#allocation21_spill] sm:$0xff] %v6075_v55  ;;  %v6077_v31 = vpop.f32.mrf.mxu1 }
 0x1b9   : > { %6401 = vst [vmem:[#allocation22_spill] sm:$0xff] %v6077_v31  ;;  %v6079_v5 = vpop.f32.mrf.mxu0 }
 0x1ba   : > { %6402 = vst [vmem:[#allocation23_spill] sm:$0xff] %v6079_v5  ;;  %v6081_v27 = vpop.f32.mrf.mxu1 }
 0x1bb   : > { %6403 = vst [vmem:[#allocation24_spill] sm:$0xff] %v6081_v27  ;;  %v6083_v0 = vpop.f32.mrf.mxu0 }
 0x1bc   : > { %6404 = vst [vmem:[#allocation25_spill] sm:$0xff] %v6083_v0  ;;  %v6085_v25 = vpop.f32.mrf.mxu1 }
 0x1bd   : > { %6405 = vst [vmem:[#allocation26_spill] sm:$0xff] %v6085_v25  ;;  %v6087_v23 = vpop.f32.mrf.mxu0 }
 0x1be   : > { %6406 = vst [vmem:[#allocation27_spill] sm:$0xff] %v6087_v23  ;;  %v6089_v43 = vpop.f32.mrf.mxu1 }
 0x1bf   : > { %6407 = vst [vmem:[#allocation28_spill] sm:$0xff] %v6089_v43  ;;  %v6091_v19 = vpop.f32.mrf.mxu0 }
 0x1c0   : > { %6408 = vst [vmem:[#allocation29_spill] sm:$0xff] %v6091_v19  ;;  %v6093_v17 = vpop.f32.mrf.mxu1 }
 0x1c1   : > { %6409 = vst [vmem:[#allocation30_spill] sm:$0xff] %v6093_v17  ;;  %v6095_v37 = vpop.f32.mrf.mxu0 }
 0x1c2   : > { %6410 = vst [vmem:[#allocation31_spill] sm:$0xff] %v6095_v37  ;;  %v6097_v55 = vpop.f32.mrf.mxu1  ;;  %v2107_v37 = vadd.f32 %v4342_v11, %v5908_v36  ;;  %v2108_v36 = vadd.f32 %v6009_v10, %v5917_v52  ;;  %v6145_v52 = vld [vmem:[%s6369_s3] ss:$0 sm:$0xff] }
 0x1c3   : > { %6411 = vst [vmem:[#allocation32_spill] sm:$0xff] %v6097_v55  ;;  %v6099_v31 = vpop.f32.mrf.mxu0 }
 0x1c4   : > { %6412 = vst [vmem:[#allocation33_spill] sm:$0xff] %v6099_v31  ;;  %v6101_v5 = vpop.f32.mrf.mxu1  ;;  %v2106_v31 = vadd.f32 %v1947_v8, %v5911_v51  ;;  %v6135_v51 = vld [vmem:[%s6368_s2] ss:$0 sm:$0xff] }
 0x1c5   : > { %6413 = vst [vmem:[#allocation34_spill] sm:$0xff] %v6101_v5  ;;  %v6103_v27 = vpop.f32.mrf.mxu0 }
 0x1c6   : > { %6414 = vst [vmem:[#allocation35_spill] sm:$0xff] %v6103_v27  ;;  %v6105_v0 = vpop.f32.mrf.mxu1 }
 0x1c7   : > { %6415 = vst [vmem:[#allocation36_spill] sm:$0xff] %v6105_v0  ;;  %v6107_v25 = vpop.f32.mrf.mxu0 }
 0x1c8   : > { %6416 = vst [vmem:[#allocation37_spill] sm:$0xff] %v6107_v25  ;;  %v6109_v23 = vpop.f32.mrf.mxu1  ;;  %v2505_v25 = vadd.f32 %v6003_v35, %v2107_v37 }
 0x1c9   : > { %6417 = vst [vmem:[#allocation38_spill] sm:$0xff] %v6109_v23  ;;  %v6111_v43 = vpop.f32.mrf.mxu0  ;;  %v2109_v23 = vadd.f32 %v4345_v60, %v5914_v54 }
 0x1ca   : > { %6418 = vst [vmem:[#allocation39_spill] sm:$0xff] %v6111_v43  ;;  %v6113_v19 = vpop.f32.mrf.mxu1 }
 0x1cb   : > { %6419 = vst [vmem:[#allocation40_spill] sm:$0xff] %v6113_v19  ;;  %v6116_v17 = vpop.f32.mrf.mxu0  ;;  %v2504_v19 = vadd.f32 %v6005_v53, %v2106_v31  ;;  %v2507_v37 = vadd.f32 %v6007_v39, %v2109_v23  ;;  %v2110_v31 = vadd.f32 %v6017_v50, %v5923_v34 }
 0x1cc   : > { %6420 = vst [vmem:[#allocation41_spill] sm:$0xff] %v6116_v17  ;;  %v6118_v55 = vpop.f32.mrf.mxu1 }
 0x1cd   : > { %v6121_v5 = vpop.f32.mrf.mxu0 }
 0x1ce   : > { %v6123_v27 = vpop.f32.mrf.mxu1 }
 0x1cf   : > { %v6127_v0 = vpop.f32.mrf.mxu0 }
 0x1d0   : > { %6421 = vst [vmem:[#allocation42_spill] sm:$0xff] %v6127_v0  ;;  %v4470_v43 = vpop.f32.mrf.mxu1  ;;  %v2111_v0 = vadd.f32 %v6013_v42, %v5920_v7  ;;  %v2113_v7 = vadd.f32 %v6021_v6, %v5926_v13 }
 0x1d1   : > { %v2777_v11 = vadd.f32 %v4470_v43, %v2505_v25  ;;  %v4534_v17 = vpop.f32.mrf.mxu0  ;;  %v2506_v43 = vadd.f32 %v6011_v38, %v2108_v36  ;;  %v2508_v38 = vadd.f32 %v6019_v14, %v2110_v31  ;;  %v2112_v36 = vadd.f32 %v6025_v16, %v5929_v49 }
 0x1d2   : > { %v2617_v8 = vpop.f32.mrf.mxu1  ;;  %v2511_v14 = vadd.f32 %v6023_v32, %v2113_v7  ;;  %v2115_v49 = vadd.f32 %v6029_v44, %v5932_v62 }
 0x1d3   : > { %v3049_v35 = vadd.f32 %v4534_v17, %v2777_v11  ;;  %v2776_v54 = vadd.f32 %v2617_v8, %v2504_v19  ;;  %v2889_v60 = vpop.f32.mrf.mxu0  ;;  %v2509_v8 = vadd.f32 %v6015_v45, %v2111_v0 }
 0x1d4   : > { %v4473_v25 = vpop.f32.mrf.mxu1 }
 0x1d5   : > { %v3088_v23 = vmul.f32 %v6135_v51, %v3049_v35  ;;  %v3048_v17 = vadd.f32 %v2889_v60, %v2776_v54  ;;  %v2779_v19 = vadd.f32 %v4473_v25, %v2507_v37  ;;  %v4537_v53 = vpop.f32.mrf.mxu0 }
 0x1d6   : > { %v2627_v39 = vpop.f32.mrf.mxu1 }
 0x1d7   : > { %v3127_v34 = vadd.f32 %v6145_v52, %v3088_v23  ;;  %v3087_v10 = vmul.f32 %v6135_v51, %v3048_v17  ;;  %v3051_v42 = vadd.f32 %v4537_v53, %v2779_v19  ;;  %v2778_v50 = vadd.f32 %v2627_v39, %v2506_v43  ;;  %v2899_v11 = vpop.f32.mrf.mxu0 }
 0x1d8   : > { %v4476_v13 = vpop.f32.mrf.mxu1  ;;  %v2510_v17 = vadd.f32 %v6027_v9, %v2112_v36 }
 0x1d9   : > { %v3159_v6 = vmax.f32 %v3127_v34, 0.0  ;;  %v3126_v37 = vadd.f32 %v6145_v52, %v3087_v10  ;;  %v3090_v35 = vmul.f32 %v6135_v51, %v3051_v42  ;;  %v3050_v0 = vadd.f32 %v2899_v11, %v2778_v50  ;;  %v4540_v45 = vpop.f32.mrf.mxu0 }
 0x1da   : > { %v2781_v16 = vadd.f32 %v4476_v13, %v2509_v8  ;;  %v2637_v54 = vpop.f32.mrf.mxu1  ;;  %v2513_v34 = vadd.f32 %v6031_v20, %v2115_v49  ;;  %v2114_v10 = vadd.f32 %v6033_v12, %v5935_v57  ;;  %v2117_v42 = vadd.f32 %v6037_v22, %v5938_v47 }
 0x1db   : > { %3191 = vst.msk [vmem:[%s6162_s8 + $0x8] sm:$0xff] %vm198_vm0, %v3159_v6  ;;  %v3158_v60 = vmax.f32 %v3126_v37, 0.0  ;;  %v3129_v31 = vadd.f32 %v6145_v52, %v3090_v35  ;;  %v3089_v25 = vmul.f32 %v6135_v51, %v3050_v0  ;;  %v2780_v43 = vadd.f32 %v2637_v54, %v2508_v38  ;;  %v2909_v23 = vpop.f32.mrf.mxu0 }
 0x1dc   : > { %v3053_v19 = vadd.f32 %v4540_v45, %v2781_v16  ;;  %v4479_v53 = vpop.f32.mrf.mxu1  ;;  %v2116_v20 = vadd.f32 %v6041_v33, %v5941_v41  ;;  %v2512_v0 = vadd.f32 %v6035_v56, %v2114_v10  ;;  %v2515_v45 = vadd.f32 %v6039_v15, %v2117_v42 }
 0x1dd   : > { %3190 = vst.msk [vmem:[%s6162_s8] sm:$0xff] %vm198_vm0, %v3158_v60  ;;  %v3161_v32 = vmax.f32 %v3129_v31, 0.0  ;;  %v3128_v62 = vadd.f32 %v6145_v52, %v3089_v25  ;;  %v3052_v44 = vadd.f32 %v2909_v23, %v2780_v43  ;;  %v2783_v7 = vadd.f32 %v4479_v53, %v2511_v14  ;;  %v4543_v39 = vpop.f32.mrf.mxu0 }
 0x1de   : > { %v3092_v9 = vmul.f32 %v6135_v51, %v3053_v19  ;;  %v2647_v50 = vpop.f32.mrf.mxu1  ;;  %v2119_v41 = vadd.f32 %v6045_v18, %v5944_v46  ;;  %v2514_v25 = vadd.f32 %v6043_v26, %v2116_v20  ;;  %v2118_v56 = vadd.f32 %v6049_v29, %v5947_v48 }
 0x1df   : > { %3193 = vst.msk [vmem:[%s6162_s8 + $0x18] sm:$0xff] %vm198_vm0, %v3161_v32  ;;  %v3160_v11 = vmax.f32 %v3128_v62, 0.0  ;;  %v3091_v8 = vmul.f32 %v6135_v51, %v3052_v44  ;;  %v3055_v38 = vadd.f32 %v4543_v39, %v2783_v7  ;;  %v2782_v36 = vadd.f32 %v2647_v50, %v2510_v17  ;;  %v2919_v13 = vpop.f32.mrf.mxu0 }
 0x1e0   : > { %v3131_v6 = vadd.f32 %v6145_v52, %v3092_v9  ;;  %v4482_v57 = vpop.f32.mrf.mxu1  ;;  %v2517_v53 = vadd.f32 %v6047_v61, %v2119_v41  ;;  %v2516_v39 = vadd.f32 %v6051_v21, %v2118_v56  ;;  %v2120_v10 = vadd.f32 %v6057_v24, %v5953_v58  ;;  %v6422_v41 = vld [vmem:[#allocation3_spill] sm:$0xff] }
 0x1e1   : > { %3192 = vst.msk [vmem:[%s6162_s8 + $0x10] sm:$0xff] %vm198_vm0, %v3160_v11  ;;  %v3130_v47 = vadd.f32 %v6145_v52, %v3091_v8  ;;  %v3094_v12 = vmul.f32 %v6135_v51, %v3055_v38  ;;  %v3054_v22 = vadd.f32 %v2919_v13, %v2782_v36  ;;  %v2785_v37 = vadd.f32 %v4482_v57, %v2513_v34  ;;  %v4546_v35 = vpop.f32.mrf.mxu0 }
 0x1e2   : > { %v3163_v33 = vmax.f32 %v3131_v6, 0.0  ;;  %v2657_v14 = vpop.f32.mrf.mxu1  ;;  %v2121_v34 = vadd.f32 %v6053_v2, %v5950_v40  ;;  %v2123_v21 = vadd.f32 %v6061_v1, %v5956_v3  ;;  %v2518_v57 = vadd.f32 %v6059_v4, %v2120_v10 }
 0x1e3   : > { %v3162_v49 = vmax.f32 %v3130_v47, 0.0  ;;  %v3133_v16 = vadd.f32 %v6145_v52, %v3094_v12  ;;  %v3093_v54 = vmul.f32 %v6135_v51, %v3054_v22  ;;  %v3057_v60 = vadd.f32 %v4546_v35, %v2785_v37  ;;  %v2929_v31 = vpop.f32.mrf.mxu0 }
 0x1e4   : > { %3195 = vst.msk [vmem:[%s6162_s8 + $0x28] sm:$0xff] %vm198_vm0, %v3163_v33  ;;  %v2784_v15 = vadd.f32 %v2657_v14, %v2512_v0  ;;  %v4485_v43 = vpop.f32.mrf.mxu1  ;;  %v2519_v6 = vadd.f32 %v6055_v28, %v2121_v34  ;;  %v2122_v3 = vadd.f32 %v6065_v63, %v5959_v59  ;;  %v6423_v33 = vld [vmem:[#allocation18_spill] sm:$0xff] }
 0x1e5   : > { %3194 = vst.msk [vmem:[%s6162_s8 + $0x20] sm:$0xff] %vm198_vm0, %v3162_v49  ;;  %v3165_v46 = vmax.f32 %v3133_v16, 0.0  ;;  %v3132_v18 = vadd.f32 %v6145_v52, %v3093_v54  ;;  %v3096_v23 = vmul.f32 %v6135_v51, %v3057_v60  ;;  %v2787_v17 = vadd.f32 %v4485_v43, %v2515_v45  ;;  %v4549_v19 = vpop.f32.mrf.mxu0  ;;  %v6424_v60 = vld [vmem:[#allocation17_spill] sm:$0xff] }
 0x1e6   : > { %v3056_v26 = vadd.f32 %v2929_v31, %v2784_v15  ;;  %v2667_v32 = vpop.f32.mrf.mxu1  ;;  %v2521_v45 = vadd.f32 %v6063_v30, %v2123_v21  ;;  %v2125_v28 = vadd.f32 %v6423_v33, %v6422_v41  ;;  %v2520_v31 = vadd.f32 %v6424_v60, %v2122_v3  ;;  %v6437_v33 = vld [vmem:[#allocation8_spill] sm:$0xff] }
 0x1e7   : > { %3197 = vst.msk [vmem:[%s6162_s8 + $0x38] sm:$0xff] %vm198_vm0, %v3165_v46  ;;  %v3164_v48 = vmax.f32 %v3132_v18, 0.0  ;;  %v3135_v29 = vadd.f32 %v6145_v52, %v3096_v23  ;;  %v3059_v62 = vadd.f32 %v4549_v19, %v2787_v17  ;;  %v2786_v44 = vadd.f32 %v2667_v32, %v2514_v25  ;;  %v2939_v7 = vpop.f32.mrf.mxu0  ;;  %v6425_v23 = vld [vmem:[#allocation19_spill] sm:$0xff]  ;;  %v6426_v19 = vld [vmem:[#allocation4_spill] sm:$0xff]  ;;  %v6428_v32 = vld [vmem:[#allocation5_spill] sm:$0xff] }
 0x1e8   : > { %v3095_v61 = vmul.f32 %v6135_v51, %v3056_v26  ;;  %v4488_v42 = vpop.f32.mrf.mxu1  ;;  %v2523_v17 = vadd.f32 %v6425_v23, %v2125_v28  ;;  %v6438_v28 = vld [vmem:[#allocation28_spill] sm:$0xff] }
 0x1e9   : > { %3196 = vst.msk [vmem:[%s6162_s8 + $0x30] sm:$0xff] %vm198_vm0, %v3164_v48  ;;  %v3167_v9 = vmax.f32 %v3135_v29, 0.0  ;;  %v3098_v50 = vmul.f32 %v6135_v51, %v3059_v62  ;;  %v3058_v11 = vadd.f32 %v2939_v7, %v2786_v44  ;;  %v2789_v8 = vadd.f32 %v4488_v42, %v2517_v53  ;;  %v4552_v38 = vpop.f32.mrf.mxu0  ;;  %v6427_v53 = vld [vmem:[#allocation20_spill] sm:$0xff]  ;;  %v6429_v48 = vld [vmem:[#allocation22_spill] sm:$0xff] }
 0x1ea   : > { %v3134_v36 = vadd.f32 %v6145_v52, %v3095_v61  ;;  %v2677_v40 = vpop.f32.mrf.mxu1  ;;  %v2124_v26 = vadd.f32 %v6427_v53, %v6426_v19  ;;  %v2127_v29 = vadd.f32 %v6429_v48, %v6428_v32  ;;  %v6430_v42 = vld [vmem:[#allocation6_spill] sm:$0xff]  ;;  %v6441_v53 = vld [vmem:[#allocation9_spill] sm:$0xff] }
 0x1eb   : > { %3199 = vst.msk [vmem:[%s6162_s8 + $0x48] sm:$0xff] %vm198_vm0, %v3167_v9  ;;  %v3137_v58 = vadd.f32 %v6145_v52, %v3098_v50  ;;  %v3097_v2 = vmul.f32 %v6135_v51, %v3058_v11  ;;  %v3061_v24 = vadd.f32 %v4552_v38, %v2789_v8  ;;  %v2788_v13 = vadd.f32 %v2677_v40, %v2516_v39  ;;  %v2949_v20 = vpop.f32.mrf.mxu0  ;;  %v6431_v9 = vld [vmem:[#allocation24_spill] sm:$0xff]  ;;  %v6443_v48 = vld [vmem:[#allocation10_spill] sm:$0xff] }
 0x1ec   : > { %v3166_v1 = vmax.f32 %v3134_v36, 0.0  ;;  %v4491_v47 = vpop.f32.mrf.mxu1  ;;  %v2126_v50 = vadd.f32 %v6431_v9, %v6430_v42  ;;  %v6445_v9 = vld [vmem:[#allocation11_spill] sm:$0xff] }
 0x1ed   : > { %v3169_v12 = vmax.f32 %v3137_v58, 0.0  ;;  %v3136_v22 = vadd.f32 %v6145_v52, %v3097_v2  ;;  %v3100_v37 = vmul.f32 %v6135_v51, %v3061_v24  ;;  %v3060_v35 = vadd.f32 %v2949_v20, %v2788_v13  ;;  %v4555_v0 = vpop.f32.mrf.mxu0  ;;  %v6432_v2 = vld [vmem:[#allocation21_spill] sm:$0xff]  ;;  %v6433_v13 = vld [vmem:[#allocation23_spill] sm:$0xff] }
 0x1ee   : > { %3198 = vst.msk [vmem:[%s6162_s8 + $0x40] sm:$0xff] %vm198_vm0, %v3166_v1  ;;  %v2791_v4 = vadd.f32 %v4491_v47, %v2519_v6  ;;  %v2687_v14 = vpop.f32.mrf.mxu1  ;;  %v2522_v24 = vadd.f32 %v6432_v2, %v2124_v26  ;;  %v2525_v20 = vadd.f32 %v6433_v13, %v2127_v29  ;;  %v6434_v6 = vld [vmem:[#allocation7_spill] sm:$0xff]  ;;  %v6442_v26 = vld [vmem:[#allocation30_spill] sm:$0xff]  ;;  %v6444_v29 = vld [vmem:[#allocation32_spill] sm:$0xff] }
 0x1ef   : > { %3201 = vst.msk [vmem:[%s6162_s8 + $0x58] sm:$0xff] %vm198_vm0, %v3169_v12  ;;  %v3168_v59 = vmax.f32 %v3136_v22, 0.0  ;;  %v3139_v63 = vadd.f32 %v6145_v52, %v3100_v37  ;;  %v3099_v49 = vmul.f32 %v6135_v51, %v3060_v35  ;;  %v2790_v16 = vadd.f32 %v2687_v14, %v2518_v57  ;;  %v2959_v54 = vpop.f32.mrf.mxu0  ;;  %v6435_v57 = vld [vmem:[#allocation26_spill] sm:$0xff] }
 0x1f0   : > { %v3063_v30 = vadd.f32 %v4555_v0, %v2791_v4  ;;  %v4494_v25 = vpop.f32.mrf.mxu1  ;;  %v2129_v3 = vadd.f32 %v6435_v57, %v6434_v6  ;;  %v2128_v4 = vadd.f32 %v6438_v28, %v6437_v33  ;;  %v2131_v32 = vadd.f32 %v6442_v26, %v6441_v53  ;;  %v6449_v57 = vld [vmem:[#allocation12_spill] sm:$0xff]  ;;  %v6452_v28 = vld [vmem:[#allocation13_spill] sm:$0xff]  ;;  %v6456_v26 = vld [vmem:[#allocation14_spill] sm:$0xff] }
 0x1f1   : > { %3200 = vst.msk [vmem:[%s6162_s8 + $0x50] sm:$0xff] %vm198_vm0, %v3168_v59  ;;  %v3171_v56 = vmax.f32 %v3139_v63, 0.0  ;;  %v3138_v15 = vadd.f32 %v6145_v52, %v3099_v49  ;;  %v3062_v43 = vadd.f32 %v2959_v54, %v2790_v16  ;;  %v2793_v46 = vadd.f32 %v4494_v25, %v2521_v45  ;;  %v4558_v18 = vpop.f32.mrf.mxu0  ;;  %v6436_v45 = vld [vmem:[#allocation25_spill] sm:$0xff] }
 0x1f2   : > { %v3102_v62 = vmul.f32 %v6135_v51, %v3063_v30  ;;  %v2697_v44 = vpop.f32.mrf.mxu1  ;;  %v2524_v41 = vadd.f32 %v6436_v45, %v2126_v50  ;;  %v6446_v50 = vld [vmem:[#allocation34_spill] sm:$0xff] }
 0x1f3   : > { %3203 = vst.msk [vmem:[%s6162_s8 + $0x68] sm:$0xff] %vm198_vm0, %v3171_v56  ;;  %v3170_v7 = vmax.f32 %v3138_v15, 0.0  ;;  %v3101_v39 = vmul.f32 %v6135_v51, %v3062_v43  ;;  %v3065_v34 = vadd.f32 %v4558_v18, %v2793_v46  ;;  %v2792_v10 = vadd.f32 %v2697_v44, %v2520_v31  ;;  %v2969_v61 = vpop.f32.mrf.mxu0  ;;  %v6439_v31 = vld [vmem:[#allocation27_spill] sm:$0xff] }
 0x1f4   : > { %v3141_v11 = vadd.f32 %v6145_v52, %v3102_v62  ;;  %v4497_v8 = vpop.f32.mrf.mxu1  ;;  %v2527_v30 = vadd.f32 %v6439_v31, %v2129_v3  ;;  %v2130_v62 = vadd.f32 %v6444_v29, %v6443_v48  ;;  %v6450_v3 = vld [vmem:[#allocation36_spill] sm:$0xff]  ;;  %v6458_v29 = vld [vmem:[#allocation15_spill] sm:$0xff] }
 0x1f5   : > { %3202 = vst.msk [vmem:[%s6162_s8 + $0x60] sm:$0xff] %vm198_vm0, %v3170_v7  ;;  %v3140_v38 = vadd.f32 %v6145_v52, %v3101_v39  ;;  %v3104_v21 = vmul.f32 %v6135_v51, %v3065_v34  ;;  %v3064_v36 = vadd.f32 %v2969_v61, %v2792_v10  ;;  %v2795_v40 = vadd.f32 %v4497_v8, %v2523_v17  ;;  %v4561_v58 = vpop.f32.mrf.mxu0  ;;  %v6440_v17 = vld [vmem:[#allocation29_spill] sm:$0xff] }
 0x1f6   : > { %v3173_v1 = vmax.f32 %v3141_v11, 0.0  ;;  %v2707_v47 = vpop.f32.mrf.mxu1  ;;  %v2526_v19 = vadd.f32 %v6440_v17, %v2128_v4  ;;  %v2133_v11 = vadd.f32 %v6446_v50, %v6445_v9  ;;  %v6453_v4 = vld [vmem:[#allocation38_spill] sm:$0xff]  ;;  %v6459_v9 = vld [vmem:[#allocation16_spill] sm:$0xff] }
 0x1f7   : > { %v3172_v12 = vmax.f32 %v3140_v38, 0.0  ;;  %v3143_v22 = vadd.f32 %v6145_v52, %v3104_v21  ;;  %v3103_v37 = vmul.f32 %v6135_v51, %v3064_v36  ;;  %v3067_v35 = vadd.f32 %v4561_v58, %v2795_v40  ;;  %v2979_v0 = vpop.f32.mrf.mxu0 }
 0x1f8   : > { %3205 = vst.msk [vmem:[%s6162_s8 + $0x78] sm:$0xff] %vm198_vm0, %v3173_v1  ;;  %v2794_v14 = vadd.f32 %v2707_v47, %v2522_v24  ;;  %v4500_v59 = vpop.f32.mrf.mxu1  ;;  %v6447_v24 = vld [vmem:[#allocation31_spill] sm:$0xff]  ;;  %v2132_v1 = vadd.f32 %v6450_v3, %v6449_v57  ;;  %v2136_v50 = vadd.f32 %v6123_v27, %v6459_v9 }
 0x1f9   : > { %3204 = vst.msk [vmem:[%s6162_s8 + $0x70] sm:$0xff] %vm198_vm0, %v3172_v12  ;;  %v3175_v63 = vmax.f32 %v3143_v22, 0.0  ;;  %v3142_v49 = vadd.f32 %v6145_v52, %v3103_v37  ;;  %v3106_v16 = vmul.f32 %v6135_v51, %v3067_v35  ;;  %v2797_v54 = vadd.f32 %v4500_v59, %v2525_v20  ;;  %v4564_v60 = vpop.f32.mrf.mxu0  ;;  %v6448_v20 = vld [vmem:[#allocation33_spill] sm:$0xff] }
 0x1fa   : > { %v3066_v25 = vadd.f32 %v2979_v0, %v2794_v14  ;;  %v2717_v56 = vpop.f32.mrf.mxu1  ;;  %v2529_v13 = vadd.f32 %v6447_v24, %v2131_v32  ;;  %v2528_v6 = vadd.f32 %v6448_v20, %v2130_v62  ;;  %v2135_v14 = vadd.f32 %v6453_v4, %v6452_v28  ;;  %v6457_v32 = vld [vmem:[#allocation40_spill] sm:$0xff] }
 0x1fb   : > { %3207 = vst.msk [vmem:[%s6162_s8 + $0x88] sm:$0xff] %vm198_vm0, %v3175_v63  ;;  %v3174_v15 = vmax.f32 %v3142_v49, 0.0  ;;  %v3145_v43 = vadd.f32 %v6145_v52, %v3106_v16  ;;  %v3069_v46 = vadd.f32 %v4564_v60, %v2797_v54  ;;  %v2796_v18 = vadd.f32 %v2717_v56, %v2524_v41  ;;  %v2989_v23 = vpop.f32.mrf.mxu0  ;;  %v6451_v41 = vld [vmem:[#allocation35_spill] sm:$0xff] }
 0x1fc   : > { %v3105_v44 = vmul.f32 %v6135_v51, %v3066_v25  ;;  %v4503_v7 = vpop.f32.mrf.mxu1  ;;  %v2531_v33 = vadd.f32 %v6451_v41, %v2133_v11  ;;  %v2134_v48 = vadd.f32 %v6457_v32, %v6456_v26  ;;  %v2137_v62 = vadd.f32 %v6118_v55, %v6458_v29 }
 0x1fd   : > { %3206 = vst.msk [vmem:[%s6162_s8 + $0x80] sm:$0xff] %vm198_vm0, %v3174_v15  ;;  %v3177_v39 = vmax.f32 %v3145_v43, 0.0  ;;  %v3108_v34 = vmul.f32 %v6135_v51, %v3069_v46  ;;  %v3068_v10 = vadd.f32 %v2989_v23, %v2796_v18  ;;  %v2799_v61 = vadd.f32 %v4503_v7, %v2527_v30  ;;  %v4567_v42 = vpop.f32.mrf.mxu0  ;;  %v6454_v30 = vld [vmem:[#allocation37_spill] sm:$0xff] }
 0x1fe   : > { %v3144_v8 = vadd.f32 %v6145_v52, %v3105_v44  ;;  %v2727_v38 = vpop.f32.mrf.mxu1  ;;  %v2530_v25 = vadd.f32 %v6454_v30, %v2132_v1  ;;  %v2535_v24 = vadd.f32 %v6121_v5, %v2137_v62 }
 0x1ff   : > { %3209 = vst.msk [vmem:[%s6162_s8 + $0x98] sm:$0xff] %vm198_vm0, %v3177_v39  ;;  %v3147_v21 = vadd.f32 %v6145_v52, %v3108_v34  ;;  %v3107_v36 = vmul.f32 %v6135_v51, %v3068_v10  ;;  %v3071_v40 = vadd.f32 %v4567_v42, %v2799_v61  ;;  %v2798_v58 = vadd.f32 %v2727_v38, %v2526_v19  ;;  %v2999_v2 = vpop.f32.mrf.mxu0  ;;  %v6455_v19 = vld [vmem:[#allocation39_spill] sm:$0xff] }
 0x200   : > { %v3176_v47 = vmax.f32 %v3144_v8, 0.0  ;;  %v4506_v12 = vpop.f32.mrf.mxu1  ;;  %v2533_v53 = vadd.f32 %v6455_v19, %v2135_v14 }
 0x201   : > { %v3179_v22 = vmax.f32 %v3147_v21, 0.0  ;;  %v3146_v37 = vadd.f32 %v6145_v52, %v3107_v36  ;;  %v3110_v35 = vmul.f32 %v6135_v51, %v3071_v40  ;;  %v3070_v0 = vadd.f32 %v2999_v2, %v2798_v58  ;;  %v4570_v45 = vpop.f32.mrf.mxu0  ;;  %v6460_v58 = vld [vmem:[#allocation41_spill] sm:$0xff] }
 0x202   : > { %3208 = vst.msk [vmem:[%s6162_s8 + $0x90] sm:$0xff] %vm198_vm0, %v3176_v47  ;;  %v2801_v59 = vadd.f32 %v4506_v12, %v2529_v13  ;;  %v2737_v63 = vpop.f32.mrf.mxu1  ;;  %v2532_v2 = vadd.f32 %v6460_v58, %v2134_v48  ;;  %v6461_v47 = vld [vmem:[#allocation42_spill] sm:$0xff] }
 0x203   : > { %3211 = vst.msk [vmem:[%s6162_s8 + $0xa8] sm:$0xff] %vm198_vm0, %v3179_v22  ;;  %v3178_v49 = vmax.f32 %v3146_v37, 0.0  ;;  %v3149_v16 = vadd.f32 %v6145_v52, %v3110_v35  ;;  %v3109_v54 = vmul.f32 %v6135_v51, %v3070_v0  ;;  %v2800_v60 = vadd.f32 %v2737_v63, %v2528_v6  ;;  %v3009_v31 = vpop.f32.mrf.mxu0 }
 0x204   : > { %v3073_v56 = vadd.f32 %v4570_v45, %v2801_v59  ;;  %v4509_v15 = vpop.f32.mrf.mxu1  ;;  %v2534_v12 = vadd.f32 %v6461_v47, %v2136_v50 }
 0x205   : > { %3210 = vst.msk [vmem:[%s6162_s8 + $0xa0] sm:$0xff] %vm198_vm0, %v3178_v49  ;;  %v3181_v43 = vmax.f32 %v3149_v16, 0.0  ;;  %v3148_v46 = vadd.f32 %v6145_v52, %v3109_v54  ;;  %v3072_v18 = vadd.f32 %v3009_v31, %v2800_v60  ;;  %v2803_v23 = vadd.f32 %v4509_v15, %v2531_v33  ;;  %v4573_v17 = vpop.f32.mrf.mxu0 }
 0x206   : > { %v3112_v44 = vmul.f32 %v6135_v51, %v3073_v56  ;;  %v2747_v7 = vpop.f32.mrf.mxu1 }
 0x207   : > { %3213 = vst.msk [vmem:[%s6162_s8 + $0xb8] sm:$0xff] %vm198_vm0, %v3181_v43  ;;  %v3180_v39 = vmax.f32 %v3148_v46, 0.0  ;;  %v3111_v34 = vmul.f32 %v6135_v51, %v3072_v18  ;;  %v3075_v10 = vadd.f32 %v4573_v17, %v2803_v23  ;;  %v2802_v61 = vadd.f32 %v2747_v7, %v2530_v25  ;;  %v3019_v42 = vpop.f32.mrf.mxu0 }
 0x208   : > { %v3151_v11 = vadd.f32 %v6145_v52, %v3112_v44  ;;  %v4512_v8 = vpop.f32.mrf.mxu1 }
 0x209   : > { %3212 = vst.msk [vmem:[%s6162_s8 + $0xb0] sm:$0xff] %vm198_vm0, %v3180_v39  ;;  %v3150_v55 = vadd.f32 %v6145_v52, %v3111_v34  ;;  %v3114_v38 = vmul.f32 %v6135_v51, %v3075_v10  ;;  %v3074_v21 = vadd.f32 %v3019_v42, %v2802_v61  ;;  %v2805_v36 = vadd.f32 %v4512_v8, %v2533_v53  ;;  %v4576_v40 = vpop.f32.mrf.mxu0 }
 0x20a   : > { %v3183_v13 = vmax.f32 %v3151_v11, 0.0  ;;  %v2757_v27 = vpop.f32.mrf.mxu1 }
 0x20b   : > { %v3182_v20 = vmax.f32 %v3150_v55, 0.0  ;;  %v3153_v6 = vadd.f32 %v6145_v52, %v3114_v38  ;;  %v3113_v57 = vmul.f32 %v6135_v51, %v3074_v21  ;;  %v3077_v3 = vadd.f32 %v4576_v40, %v2805_v36  ;;  %v3029_v1 = vpop.f32.mrf.mxu0 }
 0x20c   : > { %3215 = vst.msk [vmem:[%s6162_s8 + $0xc8] sm:$0xff] %vm198_vm0, %v3183_v13  ;;  %v2804_v22 = vadd.f32 %v2757_v27, %v2532_v2  ;;  %v4515_v37 = vpop.f32.mrf.mxu1 }
 0x20d   : > { %3214 = vst.msk [vmem:[%s6162_s8 + $0xc0] sm:$0xff] %vm198_vm0, %v3182_v20  ;;  %v3185_v5 = vmax.f32 %v3153_v6, 0.0  ;;  %v3152_v35 = vadd.f32 %v6145_v52, %v3113_v57  ;;  %v3116_v0 = vmul.f32 %v6135_v51, %v3077_v3  ;;  %v2807_v45 = vadd.f32 %v4515_v37, %v2535_v24  ;;  %v4579_v41 = vpop.f32.mrf.mxu0 }
 0x20e   : > { %v3076_v33 = vadd.f32 %v3029_v1, %v2804_v22  ;;  %v2767_v28 = vpop.f32.mrf.mxu1 }
 0x20f   : > { %3217 = vst.msk [vmem:[%s6162_s8 + $0xd8] sm:$0xff] %vm198_vm0, %v3185_v5  ;;  %v3184_v4 = vmax.f32 %v3152_v35, 0.0  ;;  %v3155_v14 = vadd.f32 %v6145_v52, %v3116_v0  ;;  %v3079_v59 = vadd.f32 %v4579_v41, %v2807_v45  ;;  %v2806_v63 = vadd.f32 %v2767_v28, %v2534_v12  ;;  %v3039_v16 = vpop.f32.mrf.mxu0 }
 0x210   : > { %v3115_v49 = vmul.f32 %v6135_v51, %v3076_v33 }
 0x211   : > { %3216 = vst.msk [vmem:[%s6162_s8 + $0xd0] sm:$0xff] %vm198_vm0, %v3184_v4  ;;  %v3187_v54 = vmax.f32 %v3155_v14, 0.0  ;;  %v3118_v60 = vmul.f32 %v6135_v51, %v3079_v59  ;;  %v3078_v31 = vadd.f32 %v3039_v16, %v2806_v63 }
 0x212   : > { %v3154_v30 = vadd.f32 %v6145_v52, %v3115_v49 }
 0x213   : > { %3219 = vst.msk [vmem:[%s6162_s8 + $0xe8] sm:$0xff] %vm198_vm0, %v3187_v54  ;;  %v3157_v25 = vadd.f32 %v6145_v52, %v3118_v60  ;;  %v3117_v56 = vmul.f32 %v6135_v51, %v3078_v31 }
 0x214   : > { %v3186_v15 = vmax.f32 %v3154_v30, 0.0 }
 0x215   : > { %v3189_v43 = vmax.f32 %v3157_v25, 0.0  ;;  %v3156_v46 = vadd.f32 %v6145_v52, %v3117_v56 }
 0x216   : > { %3218 = vst.msk [vmem:[%s6162_s8 + $0xe0] sm:$0xff] %vm198_vm0, %v3186_v15 }
 0x217   : > { %3221 = vst.msk [vmem:[%s6162_s8 + $0xf8] sm:$0xff] %vm198_vm0, %v3189_v43  ;;  %v3188_v18 = vmax.f32 %v3156_v46, 0.0 }
 0x219   : > { %3220 = vst.msk [vmem:[%s6162_s8 + $0xf0] sm:$0xff] %vm198_vm0, %v3188_v18 }
 0x21a PF: > { %s14_s15 = sadd.s32 1, %s4611_s15  }
 0x21b   : > { %p11_p4 = scmp.ge.s32.totalorder %s14_s15, 4  }
 0x21d   :  { %13 = sbr.rel (!%p11_p4) target bundleno = 1 (0x1), region = 75 }

</bundles_post_ra>
